<compile_context>
chip_gen: v6e
topology: v6e:2x2x1
jax: 0.10.0
libtpu: 0.0.40
codegen_flags: <defaults>
</compile_context>

<pallas_src>
import functools

import jax
import jax.numpy as jnp
from jax import lax
from jax.experimental import pallas as pl
from jax.experimental.pallas import tpu as pltpu


def _round_up(x, m):
    return ((x + m - 1) // m) * m


# ----------------------------------------------------------------------------
# Pallas kernels
# ----------------------------------------------------------------------------

def _conv1_kernel(v00, v01, v02, v10, v11, v12, w_ref, b_ref, o_ref, *, Ho, Wo, Cin):
    """3x3 / stride-2 conv (+ bias + ReLU) on one (n, d) image slice.

    v{rh}{kw}: row-parity-rh, column-shift-kw flattened view of the padded
    input, shape (1, (Ho+1)*Wo, Cin).  Tap (kh, kw) of the 3x3 kernel is
    rows [(kh//2)*Wo : (kh//2)*Wo + Ho*Wo) of view v[kh%2][kw].
    """
    views = ((v00, v01, v02), (v10, v11, v12))
    rows = Ho * Wo
    acc = jnp.zeros((rows, w_ref.shape[1]), jnp.float32)
    for kh in range(3):
        for kw in range(3):
            start = (kh // 2) * Wo
            lhs = views[kh % 2][kw][0, start:start + rows, :]
            rhs = w_ref[(kh * 3 + kw) * Cin:(kh * 3 + kw + 1) * Cin, :]
            acc = acc + jnp.dot(lhs, rhs, preferred_element_type=jnp.float32)
    acc = jnp.maximum(acc + b_ref[...], 0.0)
    o_ref[0] = acc.astype(o_ref.dtype)


def _convt_kernel(z00, z01, z02, z10, z11, z12, z20, z21, z22,
                  w_ref, b_ref, o_ref, *, Ho, Wo, C1):
    """Phase-decomposed ConvTranspose3d(k=(3,4,4), s=(1,2,2), p=(1,1,1)).

    z{ow}{t}: column-shift-ow view of the (depth & spatially) zero-padded
    conv1 output at depth offset t (input depth d-1+t), shape
    (1, 1, (Ho+2)*Wo, C1).  The 27 (t, oh, ow) offsets hit a (C1, 4*Cout)
    weight slab whose 4 column groups are the 4 (H, W) output phases, so the
    zero-dilated input of the naive transposed conv never exists.
    """
    zv = ((z00, z01, z02), (z10, z11, z12), (z20, z21, z22))
    rows = Ho * Wo
    acc = jnp.zeros((rows, w_ref.shape[1]), jnp.float32)
    for t in range(3):
        for oh in range(3):
            for ow in range(3):
                idx = t * 9 + oh * 3 + ow
                lhs = zv[ow][t][0, 0, oh * Wo:oh * Wo + rows, :]
                rhs = w_ref[idx * C1:(idx + 1) * C1, :]
                acc = acc + jnp.dot(lhs, rhs, preferred_element_type=jnp.float32)
    o_ref[0, 0] = (acc + b_ref[...]).astype(o_ref.dtype)


def _conv2_kernel(x0, x1, x2, t0, t1, t2, wx_ref, wt_ref, bmap_ref, o_ref,
                  *, H, W, Cx, Ct):
    """3x3 / stride-1 conv with fused (folded) BatchNorm + bias + ReLU.

    cat([x, convT(x)]) is never materialized: the two channel groups come in
    as separate column-shifted views and hit their own BN-scaled weight
    slabs; the BN shift (plus the conv bias) arrives as a border-corrected
    bias map (the conv's zero padding happens *after* BN in the reference).
    """
    xv = (x0, x1, x2)
    tv = (t0, t1, t2)
    rows = H * W
    acc = bmap_ref[0].astype(jnp.float32)
    for kh in range(3):
        for kw in range(3):
            start = kh * W
            k = kh * 3 + kw
            acc = acc + jnp.dot(xv[kw][0, start:start + rows, :],
                                wx_ref[k * Cx:(k + 1) * Cx, :],
                                preferred_element_type=jnp.float32)
            acc = acc + jnp.dot(tv[kw][0, start:start + rows, :],
                                wt_ref[k * Ct:(k + 1) * Ct, :],
                                preferred_element_type=jnp.float32)
    o_ref[0] = jnp.maximum(acc, 0.0).astype(o_ref.dtype)


def _stats_kernel(x_ref, s_ref, q_ref):
    """Per-channel sum / sum-of-squares, accumulated over the (arbitrary) row grid."""
    @pl.when(pl.program_id(0) == 0)
    def _init():
        s_ref[...] = jnp.zeros_like(s_ref)
        q_ref[...] = jnp.zeros_like(q_ref)

    x = x_ref[...]
    s_ref[...] += jnp.sum(x, axis=0, keepdims=True)
    q_ref[...] += jnp.sum(x * x, axis=0, keepdims=True)


# ----------------------------------------------------------------------------
# pallas_call wrappers
# ----------------------------------------------------------------------------

def _conv1_call(views, w1m, b1, NI, Ho, Wo, Cin, C1):
    rows_in = views[0].shape[1]
    in_specs = [pl.BlockSpec((1, rows_in, Cin), lambda i: (i, 0, 0)) for _ in range(6)]
    in_specs += [pl.BlockSpec((9 * Cin, C1), lambda i: (0, 0)),     # resident weights
                 pl.BlockSpec((1, C1), lambda i: (0, 0))]           # resident bias
    return pl.pallas_call(
        functools.partial(_conv1_kernel, Ho=Ho, Wo=Wo, Cin=Cin),
        out_shape=jax.ShapeDtypeStruct((NI, Ho * Wo, C1), jnp.float32),
        grid=(NI,),
        in_specs=in_specs,
        out_specs=pl.BlockSpec((1, Ho * Wo, C1), lambda i: (i, 0, 0)),
        compiler_params=pltpu.CompilerParams(dimension_semantics=("parallel",)),
    )(*views, w1m, b1)


def _convt_call(zviews, wtm, bt4, N, D, Ho, Wo, C1):
    rows_in = zviews[0].shape[2]
    C4 = wtm.shape[1]
    args, in_specs = [], []
    for ow in range(3):
        for t in range(3):
            args.append(zviews[ow])
            in_specs.append(pl.BlockSpec((1, 1, rows_in, C1),
                                         lambda n, d, tt=t: (n, d + tt, 0, 0)))
    in_specs += [pl.BlockSpec((27 * C1, C4), lambda n, d: (0, 0)),
                 pl.BlockSpec((1, C4), lambda n, d: (0, 0))]
    return pl.pallas_call(
        functools.partial(_convt_kernel, Ho=Ho, Wo=Wo, C1=C1),
        out_shape=jax.ShapeDtypeStruct((N, D, Ho * Wo, C4), jnp.float32),
        grid=(N, D),
        in_specs=in_specs,
        out_specs=pl.BlockSpec((1, 1, Ho * Wo, C4), lambda n, d: (n, d, 0, 0)),
        compiler_params=pltpu.CompilerParams(
            dimension_semantics=("parallel", "parallel")),
    )(*args, wtm, bt4)


def _conv2_call(xviews, tviews, wx, wt2, bmap, NI, H, W, Cx, Ct, Cout):
    rows_in = xviews[0].shape[1]
    in_specs = [pl.BlockSpec((1, rows_in, Cx), lambda i: (i, 0, 0)) for _ in range(3)]
    in_specs += [pl.BlockSpec((1, rows_in, Ct), lambda i: (i, 0, 0)) for _ in range(3)]
    in_specs += [pl.BlockSpec((9 * Cx, Cout), lambda i: (0, 0)),
                 pl.BlockSpec((9 * Ct, Cout), lambda i: (0, 0)),
                 pl.BlockSpec((1, H * W, Cout), lambda i: (0, 0, 0))]
    return pl.pallas_call(
        functools.partial(_conv2_kernel, H=H, W=W, Cx=Cx, Ct=Ct),
        out_shape=jax.ShapeDtypeStruct((NI, H * W, Cout), jnp.float32),
        grid=(NI,),
        in_specs=in_specs,
        out_specs=pl.BlockSpec((1, H * W, Cout), lambda i: (i, 0, 0)),
        compiler_params=pltpu.CompilerParams(dimension_semantics=("parallel",)),
    )(*xviews, *tviews, wx, wt2, bmap)


def _channel_stats(x2d, tile_rows=512):
    """Biased per-channel mean / var of an (M, C) f32 array via a tiled reduction."""
    M, C = x2d.shape
    tm = tile_rows if M >= tile_rows else _round_up(M, 8)
    Mp = _round_up(M, tm)
    if Mp != M:
        x2d = jnp.pad(x2d, ((0, Mp - M), (0, 0)))     # zero rows: no effect on sums
    s, q = pl.pallas_call(
        _stats_kernel,
        out_shape=(jax.ShapeDtypeStruct((1, C), jnp.float32),
                   jax.ShapeDtypeStruct((1, C), jnp.float32)),
        grid=(Mp // tm,),
        in_specs=[pl.BlockSpec((tm, C), lambda i: (i, 0))],
        out_specs=(pl.BlockSpec((1, C), lambda i: (0, 0)),
                   pl.BlockSpec((1, C), lambda i: (0, 0))),
        compiler_params=pltpu.CompilerParams(dimension_semantics=("arbitrary",)),
    )(x2d)
    mean = s[0] / M
    var = jnp.maximum(q[0] / M - mean * mean, 0.0)
    return mean, var


# ----------------------------------------------------------------------------
# parameter preparation (one-time, outside the jitted forward)
# ----------------------------------------------------------------------------

def prepare_params(raw):
    w1 = raw["w1"]                      # (32, Cin, 1, 3, 3)
    c1, cin = w1.shape[0], w1.shape[1]
    wt = raw["wt"]                      # (32, 16, 3, 4, 4)  (Cin, Cout, kd, kh, kw)
    ct = wt.shape[1]
    w2 = raw["w2"]                      # (Cout, Cin+ct, 1, 3, 3)
    cout = w2.shape[0]

    # conv1 matmul weight, tap-major: row (kh*3+kw)*Cin + ci -> w1[co, ci, 0, kh, kw]
    w1m = jnp.transpose(w1[:, :, 0], (2, 3, 1, 0)).reshape(9 * cin, c1)

    # ConvTranspose phase weights: offset (t, oh, ow) reads input depth d-1+t,
    # row p-1+oh, col q-1+ow; phase (rh, rw) owns columns [(2*rh+rw)*ct, ...).
    # k_d = 2 - t, k_h = rh + 3 - 2*oh, k_w = rw + 3 - 2*ow (when in [0, 3]).
    wtm = jnp.zeros((27 * c1, 4 * ct), jnp.float32)
    for t in range(3):
        kd = 2 - t
        for oh in range(3):
            for ow in range(3):
                idx = t * 9 + oh * 3 + ow
                for rh in range(2):
                    kh = rh + 3 - 2 * oh
                    if not 0 <= kh <= 3:
                        continue
                    for rw in range(2):
                        kw = rw + 3 - 2 * ow
                        if not 0 <= kw <= 3:
                            continue
                        ph = 2 * rh + rw
                        wtm = wtm.at[idx * c1:(idx + 1) * c1,
                                     ph * ct:(ph + 1) * ct].set(wt[:, :, kd, kh, kw])
    bt4 = jnp.tile(raw["bt"], 4).reshape(1, 4 * ct)

    # conv2 matmul weights, split into the x-channel block and the convT-channel block
    w2x = jnp.transpose(w2[:, :cin, 0], (2, 3, 1, 0)).reshape(9 * cin, cout)
    w2t = jnp.transpose(w2[:, cin:, 0], (2, 3, 1, 0)).reshape(9 * ct, cout)

    return dict(w1m=w1m, b1=raw["b1"].reshape(1, c1),
                wtm=wtm, bt4=bt4,
                w2x=w2x, w2t=w2t, b2=raw["b2"],
                gamma=raw["gamma"], beta=raw["beta"])


# ----------------------------------------------------------------------------
# EndecBlock forward
# ----------------------------------------------------------------------------

def endec_block_forward(x_ncdhw, p):
    N, cin, D, H, W = x_ncdhw.shape
    assert H % 2 == 0 and W % 2 == 0, "EndecBlock requires even H, W"
    c1 = p["b1"].shape[1]
    ct = p["bt4"].shape[1] // 4
    cout = p["w2x"].shape[1]
    NI = N * D
    Ho, Wo = H // 2, W // 2

    x_cl = jnp.transpose(x_ncdhw, (0, 2, 3, 4, 1))              # (N, D, H, W, Cin)
    x_img = x_cl.reshape(NI, H, W, cin)

    # ---- Conv3DRelu1: k=(1,3,3), s=(1,2,2), p=(0,1,1) -----------------------
    xpad1 = jnp.pad(x_img, ((0, 0), (1, 1), (1, 1), (0, 0)))
    views1 = []
    for rh in range(2):
        for kw in range(3):
            v = xpad1[:, rh:rh + 2 * (Ho + 1):2, kw:kw + 2 * Wo:2, :]
            views1.append(v.reshape(NI, (Ho + 1) * Wo, cin))
    y1 = _conv1_call(views1, p["w1m"], p["b1"], NI, Ho, Wo, cin, c1)
    z = y1.reshape(N, D, Ho, Wo, c1)                            # conv1 output (ch-last)

    # ---- ConvTranspose3d: k=(3,4,4), s=(1,2,2), p=(1,1,1), phase-decomposed -
    zp = jnp.pad(z, ((0, 0), (1, 1), (1, 1), (1, 1), (0, 0)))   # (N, D+2, Ho+2, Wo+2, c1)
    zviews = [zp[:, :, :, ow:ow + Wo, :].reshape(N, D + 2, (Ho + 2) * Wo, c1)
              for ow in range(3)]
    yt_ph = _convt_call(zviews, p["wtm"], p["bt4"], N, D, Ho, Wo, c1)  # (N, D, Ho*Wo, 4*ct)
    yt_cl = (yt_ph.reshape(N, D, Ho, Wo, 2, 2, ct)
             .transpose(0, 1, 2, 4, 3, 5, 6)
             .reshape(N, D, H, W, ct))
    yt_img = yt_cl.reshape(NI, H, W, ct)

    # ---- BatchNorm3d over cat([x, yt]) (training-mode batch stats) ----------
    M = N * D * H * W
    mean_x, var_x = _channel_stats(x_cl.reshape(M, cin))
    mean_t, var_t = _channel_stats(yt_cl.reshape(M, ct))
    mean = jnp.concatenate([mean_x, mean_t])
    var = jnp.concatenate([var_x, var_t])
    scale = p["gamma"] * lax.rsqrt(var + 1e-5)
    shift = p["beta"] - mean * scale

    # fold BN into conv2: scale -> weights; shift (+ conv bias) -> a bias map
    # with border correction (conv2's zero-padding is applied *after* BN).
    w2x_f = p["w2x"] * jnp.tile(scale[:cin], 9)[:, None]
    w2t_f = p["w2t"] * jnp.tile(scale[cin:], 9)[:, None]
    s_tap = (jnp.einsum("c,kcd->kd", shift[:cin], p["w2x"].reshape(9, cin, cout)) +
             jnp.einsum("c,kcd->kd", shift[cin:], p["w2t"].reshape(9, ct, cout)))
    hh = jnp.arange(H)
    ww = jnp.arange(W)
    mh = jnp.stack([hh >= 1, jnp.ones((H,), dtype=bool), hh <= H - 2],
                   axis=1).astype(jnp.float32)                  # (H, 3): tap in-bounds
    mw = jnp.stack([ww >= 1, jnp.ones((W,), dtype=bool), ww <= W - 2],
                   axis=1).astype(jnp.float32)                  # (W, 3)
    bmap = p["b2"][None, None, :] + jnp.einsum("hk,wl,klc->hwc",
                                               mh, mw, s_tap.reshape(3, 3, cout))
    bmap = bmap.reshape(1, H * W, cout)

    # ---- Conv3DRelu2: k=(1,3,3), s=1, p=(0,1,1); concat + BN fused in --------
    xpad2 = jnp.pad(x_img, ((0, 0), (1, 1), (1, 1), (0, 0)))
    tpad2 = jnp.pad(yt_img, ((0, 0), (1, 1), (1, 1), (0, 0)))
    xviews2 = [xpad2[:, :, kw:kw + W, :].reshape(NI, (H + 2) * W, cin) for kw in range(3)]
    tviews2 = [tpad2[:, :, kw:kw + W, :].reshape(NI, (H + 2) * W, ct) for kw in range(3)]
    y2 = _conv2_call(xviews2, tviews2, w2x_f, w2t_f, bmap, NI, H, W, cin, ct, cout)

    # back to PyTorch NCDHW layout
    x_out = jnp.transpose(z, (0, 4, 1, 2, 3))                               # (N, 32, D, H/2, W/2)
    x_out2 = jnp.transpose(y2.reshape(N, D, H, W, cout), (0, 4, 1, 2, 3))   # (N, Cout, D, H, W)
    return x_out, x_out2


# ----------------------------------------------------------------------------
# example parameters, pure-XLA reference (for the self-check), and main
# ----------------------------------------------------------------------------

def init_params(key, in_channels=16, out_channels=16):
    c_cat = in_channels + 16
    ks = jax.random.split(key, 8)
    return dict(
        # nn.Conv3d(in_channels, 32, (1,3,3)) weight / bias
        w1=0.1 * jax.random.normal(ks[0], (32, in_channels, 1, 3, 3), jnp.float32),
        b1=0.1 * jax.random.normal(ks[1], (32,), jnp.float32),
        # nn.ConvTranspose3d(32, 16, (3,4,4)) weight / bias  (shape (Cin,Cout,kd,kh,kw))
        wt=0.1 * jax.random.normal(ks[2], (32, 16, 3, 4, 4), jnp.float32),
        bt=0.1 * jax.random.normal(ks[3], (16,), jnp.float32),
        # nn.BatchNorm3d(c_cat) affine params (non-trivial values to exercise folding)
        gamma=1.0 + 0.1 * jax.random.normal(ks[4], (c_cat,), jnp.float32),
        beta=0.1 * jax.random.normal(ks[5], (c_cat,), jnp.float32),
        # nn.Conv3d(c_cat, out_channels, (1,3,3)) weight / bias
        w2=0.1 * jax.random.normal(ks[6], (out_channels, c_cat, 1, 3, 3), jnp.float32),
        b2=0.1 * jax.random.normal(ks[7], (out_channels,), jnp.float32),
    )


def _reference_forward(x, raw):
    """Plain-XLA reference with PyTorch semantics (self-test only)."""
    dn = ("NCDHW", "OIDHW", "NCDHW")
    y1 = lax.conv_general_dilated(x, raw["w1"], (1, 2, 2),
                                  ((0, 0), (1, 1), (1, 1)), dimension_numbers=dn)
    y1 = jnp.maximum(y1 + raw["b1"].reshape(1, -1, 1, 1, 1), 0.0)
    wr = jnp.flip(raw["wt"], axis=(2, 3, 4)).transpose(1, 0, 2, 3, 4)
    yt = lax.conv_general_dilated(y1, wr, (1, 1, 1),
                                  ((1, 1), (2, 2), (2, 2)),
                                  lhs_dilation=(1, 2, 2), dimension_numbers=dn)
    yt = yt + raw["bt"].reshape(1, -1, 1, 1, 1)
    cat = jnp.concatenate([x, yt], axis=1)
    mean = jnp.mean(cat, axis=(0, 2, 3, 4), keepdims=True)
    var = jnp.mean((cat - mean) ** 2, axis=(0, 2, 3, 4), keepdims=True)
    bn = ((cat - mean) * lax.rsqrt(var + 1e-5)
          * raw["gamma"].reshape(1, -1, 1, 1, 1) + raw["beta"].reshape(1, -1, 1, 1, 1))
    y2 = lax.conv_general_dilated(bn, raw["w2"], (1, 1, 1),
                                  ((0, 0), (1, 1), (1, 1)), dimension_numbers=dn)
    y2 = jnp.maximum(y2 + raw["b2"].reshape(1, -1, 1, 1, 1), 0.0)
    return y1, y2


if __name__ == "__main__":
    key = jax.random.PRNGKey(0)
    k_param, k_x = jax.random.split(key)
    raw = init_params(k_param, in_channels=16, out_channels=16)
    params = prepare_params(raw)

    # NCDHW input consistent with the module: (N=2, C=16, D=2, H=8, W=8)
    x = jax.random.normal(k_x, (2, 16, 2, 8, 8), jnp.float32)

    x_enc, x_dec = jax.jit(endec_block_forward)(x, params)
    jax.block_until_ready((x_enc, x_dec))

    assert x_enc.shape == (2, 32, 2, 4, 4), x_enc.shape
    assert x_dec.shape == (2, 16, 2, 8, 8), x_dec.shape

    # numerical self-check against the plain-XLA reference of the PyTorch module
    r_enc, r_dec = _reference_forward(x, raw)
    err1 = float(jnp.max(jnp.abs(x_enc - r_enc)))
    err2 = float(jnp.max(jnp.abs(x_dec - r_dec)))
    assert err1 < 1e-3 and err2 < 1e-3, (err1, err2)

    print("KERNEL_OK")
</pallas_src>

<mosaic_0001>
module attributes {stable_mosaic.version = 11 : i64} {
  func.func @_conv1_kernel(%arg0: i32, %arg1: memref<1x20x16xf32, #tpu.memory_space<vmem>>, %arg2: memref<1x20x16xf32, #tpu.memory_space<vmem>>, %arg3: memref<1x20x16xf32, #tpu.memory_space<vmem>>, %arg4: memref<1x20x16xf32, #tpu.memory_space<vmem>>, %arg5: memref<1x20x16xf32, #tpu.memory_space<vmem>>, %arg6: memref<1x20x16xf32, #tpu.memory_space<vmem>>, %arg7: memref<144x32xf32, #tpu.memory_space<vmem>>, %arg8: memref<1x32xf32, #tpu.memory_space<vmem>>, %arg9: memref<1x16x32xf32, #tpu.memory_space<vmem>>) attributes {dimension_semantics = [#tpu.dimension_semantics<parallel>], iteration_bounds = array<i64: 4>, scalar_prefetch = 0 : i64, scratch_operands = 0 : i64, tpu.core_type = #tpu.core_type<tc>, window_params = [{transform_indices = @transform_0, window_bounds = array<i64: 1, 20, 16>}, {transform_indices = @transform_1, window_bounds = array<i64: 1, 20, 16>}, {transform_indices = @transform_2, window_bounds = array<i64: 1, 20, 16>}, {transform_indices = @transform_3, window_bounds = array<i64: 1, 20, 16>}, {transform_indices = @transform_4, window_bounds = array<i64: 1, 20, 16>}, {transform_indices = @transform_5, window_bounds = array<i64: 1, 20, 16>}, {pipeline_mode = #tpu.pipeline_mode<synchronous>, transform_indices = @transform_6, window_bounds = array<i64: 144, 32>}, {pipeline_mode = #tpu.pipeline_mode<synchronous>, transform_indices = @transform_7, window_bounds = array<i64: 1, 32>}, {transform_indices = @transform_8, window_bounds = array<i64: 1, 16, 32>}]} {
    %cst = arith.constant 0.000000e+00 : f32
    %0 = vector.broadcast %cst : f32 to vector<16x32xf32>
    %c0 = arith.constant 0 : index
    %c0_0 = arith.constant 0 : index
    %c0_1 = arith.constant 0 : index
    %1 = vector.load %arg1[%c0, %c0_0, %c0_1] : memref<1x20x16xf32, #tpu.memory_space<vmem>>, vector<1x16x16xf32>
    %2 = vector.shape_cast %1 : vector<1x16x16xf32> to vector<16x16xf32>
    %c0_2 = arith.constant 0 : index
    %c0_3 = arith.constant 0 : index
    %3 = vector.load %arg7[%c0_2, %c0_3] : memref<144x32xf32, #tpu.memory_space<vmem>>, vector<16x32xf32>
    %cst_4 = arith.constant dense<0.000000e+00> : vector<16x32xf32>
    %4 = tpu.matmul %2, %3, %cst_4 {dimension_numbers = #tpu.dot_dimension_numbers<[1], [0], [0], [1], [0, 0, 1, 1], [], []>} : vector<16x16xf32>, vector<16x32xf32>, vector<16x32xf32> -> vector<16x32xf32>
    %5 = arith.addf %0, %4 : vector<16x32xf32>
    %c0_5 = arith.constant 0 : index
    %c0_6 = arith.constant 0 : index
    %c0_7 = arith.constant 0 : index
    %6 = vector.load %arg2[%c0_5, %c0_6, %c0_7] : memref<1x20x16xf32, #tpu.memory_space<vmem>>, vector<1x16x16xf32>
    %7 = vector.shape_cast %6 : vector<1x16x16xf32> to vector<16x16xf32>
    %c16 = arith.constant 16 : index
    %c0_8 = arith.constant 0 : index
    %8 = vector.load %arg7[%c16, %c0_8] : memref<144x32xf32, #tpu.memory_space<vmem>>, vector<16x32xf32>
    %cst_9 = arith.constant dense<0.000000e+00> : vector<16x32xf32>
    %9 = tpu.matmul %7, %8, %cst_9 {dimension_numbers = #tpu.dot_dimension_numbers<[1], [0], [0], [1], [0, 0, 1, 1], [], []>} : vector<16x16xf32>, vector<16x32xf32>, vector<16x32xf32> -> vector<16x32xf32>
    %10 = arith.addf %5, %9 : vector<16x32xf32>
    %c0_10 = arith.constant 0 : index
    %c0_11 = arith.constant 0 : index
    %c0_12 = arith.constant 0 : index
    %11 = vector.load %arg3[%c0_10, %c0_11, %c0_12] : memref<1x20x16xf32, #tpu.memory_space<vmem>>, vector<1x16x16xf32>
    %12 = vector.shape_cast %11 : vector<1x16x16xf32> to vector<16x16xf32>
    %c32 = arith.constant 32 : index
    %c0_13 = arith.constant 0 : index
    %13 = vector.load %arg7[%c32, %c0_13] : memref<144x32xf32, #tpu.memory_space<vmem>>, vector<16x32xf32>
    %cst_14 = arith.constant dense<0.000000e+00> : vector<16x32xf32>
    %14 = tpu.matmul %12, %13, %cst_14 {dimension_numbers = #tpu.dot_dimension_numbers<[1], [0], [0], [1], [0, 0, 1, 1], [], []>} : vector<16x16xf32>, vector<16x32xf32>, vector<16x32xf32> -> vector<16x32xf32>
    %15 = arith.addf %10, %14 : vector<16x32xf32>
    %c0_15 = arith.constant 0 : index
    %c0_16 = arith.constant 0 : index
    %c0_17 = arith.constant 0 : index
    %16 = vector.load %arg4[%c0_15, %c0_16, %c0_17] : memref<1x20x16xf32, #tpu.memory_space<vmem>>, vector<1x16x16xf32>
    %17 = vector.shape_cast %16 : vector<1x16x16xf32> to vector<16x16xf32>
    %c48 = arith.constant 48 : index
    %c0_18 = arith.constant 0 : index
    %18 = vector.load %arg7[%c48, %c0_18] : memref<144x32xf32, #tpu.memory_space<vmem>>, vector<16x32xf32>
    %cst_19 = arith.constant dense<0.000000e+00> : vector<16x32xf32>
    %19 = tpu.matmul %17, %18, %cst_19 {dimension_numbers = #tpu.dot_dimension_numbers<[1], [0], [0], [1], [0, 0, 1, 1], [], []>} : vector<16x16xf32>, vector<16x32xf32>, vector<16x32xf32> -> vector<16x32xf32>
    %20 = arith.addf %15, %19 : vector<16x32xf32>
    %c0_20 = arith.constant 0 : index
    %c0_21 = arith.constant 0 : index
    %c0_22 = arith.constant 0 : index
    %21 = vector.load %arg5[%c0_20, %c0_21, %c0_22] : memref<1x20x16xf32, #tpu.memory_space<vmem>>, vector<1x16x16xf32>
    %22 = vector.shape_cast %21 : vector<1x16x16xf32> to vector<16x16xf32>
    %c64 = arith.constant 64 : index
    %c0_23 = arith.constant 0 : index
    %23 = vector.load %arg7[%c64, %c0_23] : memref<144x32xf32, #tpu.memory_space<vmem>>, vector<16x32xf32>
    %cst_24 = arith.constant dense<0.000000e+00> : vector<16x32xf32>
    %24 = tpu.matmul %22, %23, %cst_24 {dimension_numbers = #tpu.dot_dimension_numbers<[1], [0], [0], [1], [0, 0, 1, 1], [], []>} : vector<16x16xf32>, vector<16x32xf32>, vector<16x32xf32> -> vector<16x32xf32>
    %25 = arith.addf %20, %24 : vector<16x32xf32>
    %c0_25 = arith.constant 0 : index
    %c0_26 = arith.constant 0 : index
    %c0_27 = arith.constant 0 : index
    %26 = vector.load %arg6[%c0_25, %c0_26, %c0_27] : memref<1x20x16xf32, #tpu.memory_space<vmem>>, vector<1x16x16xf32>
    %27 = vector.shape_cast %26 : vector<1x16x16xf32> to vector<16x16xf32>
    %c80 = arith.constant 80 : index
    %c0_28 = arith.constant 0 : index
    %28 = vector.load %arg7[%c80, %c0_28] : memref<144x32xf32, #tpu.memory_space<vmem>>, vector<16x32xf32>
    %cst_29 = arith.constant dense<0.000000e+00> : vector<16x32xf32>
    %29 = tpu.matmul %27, %28, %cst_29 {dimension_numbers = #tpu.dot_dimension_numbers<[1], [0], [0], [1], [0, 0, 1, 1], [], []>} : vector<16x16xf32>, vector<16x32xf32>, vector<16x32xf32> -> vector<16x32xf32>
    %30 = arith.addf %25, %29 : vector<16x32xf32>
    %c0_30 = arith.constant 0 : index
    %c4 = arith.constant 4 : index
    %c0_31 = arith.constant 0 : index
    %31 = vector.load %arg1[%c0_30, %c4, %c0_31] : memref<1x20x16xf32, #tpu.memory_space<vmem>>, vector<1x16x16xf32>
    %32 = vector.shape_cast %31 : vector<1x16x16xf32> to vector<16x16xf32>
    %c96 = arith.constant 96 : index
    %c0_32 = arith.constant 0 : index
    %33 = vector.load %arg7[%c96, %c0_32] : memref<144x32xf32, #tpu.memory_space<vmem>>, vector<16x32xf32>
    %cst_33 = arith.constant dense<0.000000e+00> : vector<16x32xf32>
    %34 = tpu.matmul %32, %33, %cst_33 {dimension_numbers = #tpu.dot_dimension_numbers<[1], [0], [0], [1], [0, 0, 1, 1], [], []>} : vector<16x16xf32>, vector<16x32xf32>, vector<16x32xf32> -> vector<16x32xf32>
    %35 = arith.addf %30, %34 : vector<16x32xf32>
    %c0_34 = arith.constant 0 : index
    %c4_35 = arith.constant 4 : index
    %c0_36 = arith.constant 0 : index
    %36 = vector.load %arg2[%c0_34, %c4_35, %c0_36] : memref<1x20x16xf32, #tpu.memory_space<vmem>>, vector<1x16x16xf32>
    %37 = vector.shape_cast %36 : vector<1x16x16xf32> to vector<16x16xf32>
    %c112 = arith.constant 112 : index
    %c0_37 = arith.constant 0 : index
    %38 = vector.load %arg7[%c112, %c0_37] : memref<144x32xf32, #tpu.memory_space<vmem>>, vector<16x32xf32>
    %cst_38 = arith.constant dense<0.000000e+00> : vector<16x32xf32>
    %39 = tpu.matmul %37, %38, %cst_38 {dimension_numbers = #tpu.dot_dimension_numbers<[1], [0], [0], [1], [0, 0, 1, 1], [], []>} : vector<16x16xf32>, vector<16x32xf32>, vector<16x32xf32> -> vector<16x32xf32>
    %40 = arith.addf %35, %39 : vector<16x32xf32>
    %c0_39 = arith.constant 0 : index
    %c4_40 = arith.constant 4 : index
    %c0_41 = arith.constant 0 : index
    %41 = vector.load %arg3[%c0_39, %c4_40, %c0_41] : memref<1x20x16xf32, #tpu.memory_space<vmem>>, vector<1x16x16xf32>
    %42 = vector.shape_cast %41 : vector<1x16x16xf32> to vector<16x16xf32>
    %c128 = arith.constant 128 : index
    %c0_42 = arith.constant 0 : index
    %43 = vector.load %arg7[%c128, %c0_42] : memref<144x32xf32, #tpu.memory_space<vmem>>, vector<16x32xf32>
    %cst_43 = arith.constant dense<0.000000e+00> : vector<16x32xf32>
    %44 = tpu.matmul %42, %43, %cst_43 {dimension_numbers = #tpu.dot_dimension_numbers<[1], [0], [0], [1], [0, 0, 1, 1], [], []>} : vector<16x16xf32>, vector<16x32xf32>, vector<16x32xf32> -> vector<16x32xf32>
    %45 = arith.addf %40, %44 : vector<16x32xf32>
    %c0_44 = arith.constant 0 : index
    %c0_45 = arith.constant 0 : index
    %46 = vector.load %arg8[%c0_44, %c0_45] : memref<1x32xf32, #tpu.memory_space<vmem>>, vector<1x32xf32>
    %47 = vector.broadcast %46 : vector<1x32xf32> to vector<16x32xf32>
    %48 = arith.addf %45, %47 : vector<16x32xf32>
    %cst_46 = arith.constant 0.000000e+00 : f32
    %49 = vector.broadcast %cst_46 : f32 to vector<16x32xf32>
    %50 = arith.maximumf %48, %49 : vector<16x32xf32>
    %c0_47 = arith.constant 0 : index
    %c0_48 = arith.constant 0 : index
    %c0_49 = arith.constant 0 : index
    %51 = vector.load %arg9[%c0_47, %c0_48, %c0_49] : memref<1x16x32xf32, #tpu.memory_space<vmem>>, vector<1x16x32xf32>
    %52 = vector.shape_cast %51 : vector<1x16x32xf32> to vector<16x32xf32>
    %53 = vector.shape_cast %50 : vector<16x32xf32> to vector<1x16x32xf32>
    tpu.vector_store %arg9[%c0_47, %c0_48, %c0_49], %53 {strides = array<i32>} : memref<1x16x32xf32, #tpu.memory_space<vmem>>, vector<1x16x32xf32>,
    return
  }
  func.func @transform_0(%arg0: i32) -> (i32, i32, i32) {
    %c0_i32 = arith.constant 0 : i32
    %c0_i32_0 = arith.constant 0 : i32
    %c0_i32_1 = arith.constant 0 : i32
    return %arg0, %c0_i32, %c0_i32_0 : i32, i32, i32
  }
  func.func @transform_1(%arg0: i32) -> (i32, i32, i32) {
    %c0_i32 = arith.constant 0 : i32
    %c0_i32_0 = arith.constant 0 : i32
    %c0_i32_1 = arith.constant 0 : i32
    return %arg0, %c0_i32, %c0_i32_0 : i32, i32, i32
  }
  func.func @transform_2(%arg0: i32) -> (i32, i32, i32) {
    %c0_i32 = arith.constant 0 : i32
    %c0_i32_0 = arith.constant 0 : i32
    %c0_i32_1 = arith.constant 0 : i32
    return %arg0, %c0_i32, %c0_i32_0 : i32, i32, i32
  }
  func.func @transform_3(%arg0: i32) -> (i32, i32, i32) {
    %c0_i32 = arith.constant 0 : i32
    %c0_i32_0 = arith.constant 0 : i32
    %c0_i32_1 = arith.constant 0 : i32
    return %arg0, %c0_i32, %c0_i32_0 : i32, i32, i32
  }
  func.func @transform_4(%arg0: i32) -> (i32, i32, i32) {
    %c0_i32 = arith.constant 0 : i32
    %c0_i32_0 = arith.constant 0 : i32
    %c0_i32_1 = arith.constant 0 : i32
    return %arg0, %c0_i32, %c0_i32_0 : i32, i32, i32
  }
  func.func @transform_5(%arg0: i32) -> (i32, i32, i32) {
    %c0_i32 = arith.constant 0 : i32
    %c0_i32_0 = arith.constant 0 : i32
    %c0_i32_1 = arith.constant 0 : i32
    return %arg0, %c0_i32, %c0_i32_0 : i32, i32, i32
  }
  func.func @transform_6(%arg0: i32) -> (i32, i32) {
    %c0_i32 = arith.constant 0 : i32
    %c0_i32_0 = arith.constant 0 : i32
    %c0_i32_1 = arith.constant 0 : i32
    return %c0_i32, %c0_i32_0 : i32, i32
  }
  func.func @transform_7(%arg0: i32) -> (i32, i32) {
    %c0_i32 = arith.constant 0 : i32
    %c0_i32_0 = arith.constant 0 : i32
    %c0_i32_1 = arith.constant 0 : i32
    return %c0_i32, %c0_i32_0 : i32, i32
  }
  func.func @transform_8(%arg0: i32) -> (i32, i32, i32) {
    %c0_i32 = arith.constant 0 : i32
    %c0_i32_0 = arith.constant 0 : i32
    %c0_i32_1 = arith.constant 0 : i32
    return %arg0, %c0_i32, %c0_i32_0 : i32, i32, i32
  }
}

module attributes {stable_mosaic.version = 11 : i64} {
  func.func @_convt_kernel(%arg0: i32, %arg1: i32, %arg2: memref<1x1x24x32xf32, #tpu.memory_space<vmem>>, %arg3: memref<1x1x24x32xf32, #tpu.memory_space<vmem>>, %arg4: memref<1x1x24x32xf32, #tpu.memory_space<vmem>>, %arg5: memref<1x1x24x32xf32, #tpu.memory_space<vmem>>, %arg6: memref<1x1x24x32xf32, #tpu.memory_space<vmem>>, %arg7: memref<1x1x24x32xf32, #tpu.memory_space<vmem>>, %arg8: memref<1x1x24x32xf32, #tpu.memory_space<vmem>>, %arg9: memref<1x1x24x32xf32, #tpu.memory_space<vmem>>, %arg10: memref<1x1x24x32xf32, #tpu.memory_space<vmem>>, %arg11: memref<864x64xf32, #tpu.memory_space<vmem>>, %arg12: memref<1x64xf32, #tpu.memory_space<vmem>>, %arg13: memref<1x1x16x64xf32, #tpu.memory_space<vmem>>) attributes {dimension_semantics = [#tpu.dimension_semantics<parallel>, #tpu.dimension_semantics<parallel>], iteration_bounds = array<i64: 2, 2>, scalar_prefetch = 0 : i64, scratch_operands = 0 : i64, tpu.core_type = #tpu.core_type<tc>, window_params = [{transform_indices = @transform_0, window_bounds = array<i64: 1, 1, 24, 32>}, {transform_indices = @transform_1, window_bounds = array<i64: 1, 1, 24, 32>}, {transform_indices = @transform_2, window_bounds = array<i64: 1, 1, 24, 32>}, {transform_indices = @transform_3, window_bounds = array<i64: 1, 1, 24, 32>}, {transform_indices = @transform_4, window_bounds = array<i64: 1, 1, 24, 32>}, {transform_indices = @transform_5, window_bounds = array<i64: 1, 1, 24, 32>}, {transform_indices = @transform_6, window_bounds = array<i64: 1, 1, 24, 32>}, {transform_indices = @transform_7, window_bounds = array<i64: 1, 1, 24, 32>}, {transform_indices = @transform_8, window_bounds = array<i64: 1, 1, 24, 32>}, {pipeline_mode = #tpu.pipeline_mode<synchronous>, transform_indices = @transform_9, window_bounds = array<i64: 864, 64>}, {pipeline_mode = #tpu.pipeline_mode<synchronous>, transform_indices = @transform_10, window_bounds = array<i64: 1, 64>}, {transform_indices = @transform_11, window_bounds = array<i64: 1, 1, 16, 64>}]} {
    %cst = arith.constant 0.000000e+00 : f32
    %0 = vector.broadcast %cst : f32 to vector<16x64xf32>
    %c0 = arith.constant 0 : index
    %c0_0 = arith.constant 0 : index
    %c0_1 = arith.constant 0 : index
    %c0_2 = arith.constant 0 : index
    %1 = vector.load %arg2[%c0, %c0_0, %c0_1, %c0_2] : memref<1x1x24x32xf32, #tpu.memory_space<vmem>>, vector<1x1x16x32xf32>
    %2 = vector.shape_cast %1 : vector<1x1x16x32xf32> to vector<16x32xf32>
    %c0_3 = arith.constant 0 : index
    %c0_4 = arith.constant 0 : index
    %3 = vector.load %arg11[%c0_3, %c0_4] : memref<864x64xf32, #tpu.memory_space<vmem>>, vector<32x64xf32>
    %cst_5 = arith.constant dense<0.000000e+00> : vector<16x64xf32>
    %4 = tpu.matmul %2, %3, %cst_5 {dimension_numbers = #tpu.dot_dimension_numbers<[1], [0], [0], [1], [0, 0, 1, 1], [], []>} : vector<16x32xf32>, vector<32x64xf32>, vector<16x64xf32> -> vector<16x64xf32>
    %5 = arith.addf %0, %4 : vector<16x64xf32>
    %c0_6 = arith.constant 0 : index
    %c0_7 = arith.constant 0 : index
    %c0_8 = arith.constant 0 : index
    %c0_9 = arith.constant 0 : index
    %6 = vector.load %arg5[%c0_6, %c0_7, %c0_8, %c0_9] : memref<1x1x24x32xf32, #tpu.memory_space<vmem>>, vector<1x1x16x32xf32>
    %7 = vector.shape_cast %6 : vector<1x1x16x32xf32> to vector<16x32xf32>
    %c32 = arith.constant 32 : index
    %c0_10 = arith.constant 0 : index
    %8 = vector.load %arg11[%c32, %c0_10] : memref<864x64xf32, #tpu.memory_space<vmem>>, vector<32x64xf32>
    %cst_11 = arith.constant dense<0.000000e+00> : vector<16x64xf32>
    %9 = tpu.matmul %7, %8, %cst_11 {dimension_numbers = #tpu.dot_dimension_numbers<[1], [0], [0], [1], [0, 0, 1, 1], [], []>} : vector<16x32xf32>, vector<32x64xf32>, vector<16x64xf32> -> vector<16x64xf32>
    %10 = arith.addf %5, %9 : vector<16x64xf32>
    %c0_12 = arith.constant 0 : index
    %c0_13 = arith.constant 0 : index
    %c0_14 = arith.constant 0 : index
    %c0_15 = arith.constant 0 : index
    %11 = vector.load %arg8[%c0_12, %c0_13, %c0_14, %c0_15] : memref<1x1x24x32xf32, #tpu.memory_space<vmem>>, vector<1x1x16x32xf32>
    %12 = vector.shape_cast %11 : vector<1x1x16x32xf32> to vector<16x32xf32>
    %c64 = arith.constant 64 : index
    %c0_16 = arith.constant 0 : index
    %13 = vector.load %arg11[%c64, %c0_16] : memref<864x64xf32, #tpu.memory_space<vmem>>, vector<32x64xf32>
    %cst_17 = arith.constant dense<0.000000e+00> : vector<16x64xf32>
    %14 = tpu.matmul %12, %13, %cst_17 {dimension_numbers = #tpu.dot_dimension_numbers<[1], [0], [0], [1], [0, 0, 1, 1], [], []>} : vector<16x32xf32>, vector<32x64xf32>, vector<16x64xf32> -> vector<16x64xf32>
    %15 = arith.addf %10, %14 : vector<16x64xf32>
    %c0_18 = arith.constant 0 : index
    %c0_19 = arith.constant 0 : index
    %c4 = arith.constant 4 : index
    %c0_20 = arith.constant 0 : index
    %16 = vector.load %arg2[%c0_18, %c0_19, %c4, %c0_20] : memref<1x1x24x32xf32, #tpu.memory_space<vmem>>, vector<1x1x16x32xf32>
    %17 = vector.shape_cast %16 : vector<1x1x16x32xf32> to vector<16x32xf32>
    %c96 = arith.constant 96 : index
    %c0_21 = arith.constant 0 : index
    %18 = vector.load %arg11[%c96, %c0_21] : memref<864x64xf32, #tpu.memory_space<vmem>>, vector<32x64xf32>
    %cst_22 = arith.constant dense<0.000000e+00> : vector<16x64xf32>
    %19 = tpu.matmul %17, %18, %cst_22 {dimension_numbers = #tpu.dot_dimension_numbers<[1], [0], [0], [1], [0, 0, 1, 1], [], []>} : vector<16x32xf32>, vector<32x64xf32>, vector<16x64xf32> -> vector<16x64xf32>
    %20 = arith.addf %15, %19 : vector<16x64xf32>
    %c0_23 = arith.constant 0 : index
    %c0_24 = arith.constant 0 : index
    %c4_25 = arith.constant 4 : index
    %c0_26 = arith.constant 0 : index
    %21 = vector.load %arg5[%c0_23, %c0_24, %c4_25, %c0_26] : memref<1x1x24x32xf32, #tpu.memory_space<vmem>>, vector<1x1x16x32xf32>
    %22 = vector.shape_cast %21 : vector<1x1x16x32xf32> to vector<16x32xf32>
    %c128 = arith.constant 128 : index
    %c0_27 = arith.constant 0 : index
    %23 = vector.load %arg11[%c128, %c0_27] : memref<864x64xf32, #tpu.memory_space<vmem>>, vector<32x64xf32>
    %cst_28 = arith.constant dense<0.000000e+00> : vector<16x64xf32>
    %24 = tpu.matmul %22, %23, %cst_28 {dimension_numbers = #tpu.dot_dimension_numbers<[1], [0], [0], [1], [0, 0, 1, 1], [], []>} : vector<16x32xf32>, vector<32x64xf32>, vector<16x64xf32> -> vector<16x64xf32>
    %25 = arith.addf %20, %24 : vector<16x64xf32>
    %c0_29 = arith.constant 0 : index
    %c0_30 = arith.constant 0 : index
    %c4_31 = arith.constant 4 : index
    %c0_32 = arith.constant 0 : index
    %26 = vector.load %arg8[%c0_29, %c0_30, %c4_31, %c0_32] : memref<1x1x24x32xf32, #tpu.memory_space<vmem>>, vector<1x1x16x32xf32>
    %27 = vector.shape_cast %26 : vector<1x1x16x32xf32> to vector<16x32xf32>
    %c160 = arith.constant 160 : index
    %c0_33 = arith.constant 0 : index
    %28 = vector.load %arg11[%c160, %c0_33] : memref<864x64xf32, #tpu.memory_space<vmem>>, vector<32x64xf32>
    %cst_34 = arith.constant dense<0.000000e+00> : vector<16x64xf32>
    %29 = tpu.matmul %27, %28, %cst_34 {dimension_numbers = #tpu.dot_dimension_numbers<[1], [0], [0], [1], [0, 0, 1, 1], [], []>} : vector<16x32xf32>, vector<32x64xf32>, vector<16x64xf32> -> vector<16x64xf32>
    %30 = arith.addf %25, %29 : vector<16x64xf32>
    %c0_35 = arith.constant 0 : index
    %c0_36 = arith.constant 0 : index
    %c8 = arith.constant 8 : index
    %c0_37 = arith.constant 0 : index
    %31 = vector.load %arg2[%c0_35, %c0_36, %c8, %c0_37] : memref<1x1x24x32xf32, #tpu.memory_space<vmem>>, vector<1x1x16x32xf32>
    %32 = vector.shape_cast %31 : vector<1x1x16x32xf32> to vector<16x32xf32>
    %c192 = arith.constant 192 : index
    %c0_38 = arith.constant 0 : index
    %33 = vector.load %arg11[%c192, %c0_38] : memref<864x64xf32, #tpu.memory_space<vmem>>, vector<32x64xf32>
    %cst_39 = arith.constant dense<0.000000e+00> : vector<16x64xf32>
    %34 = tpu.matmul %32, %33, %cst_39 {dimension_numbers = #tpu.dot_dimension_numbers<[1], [0], [0], [1], [0, 0, 1, 1], [], []>} : vector<16x32xf32>, vector<32x64xf32>, vector<16x64xf32> -> vector<16x64xf32>
    %35 = arith.addf %30, %34 : vector<16x64xf32>
    %c0_40 = arith.constant 0 : index
    %c0_41 = arith.constant 0 : index
    %c8_42 = arith.constant 8 : index
    %c0_43 = arith.constant 0 : index
    %36 = vector.load %arg5[%c0_40, %c0_41, %c8_42, %c0_43] : memref<1x1x24x32xf32, #tpu.memory_space<vmem>>, vector<1x1x16x32xf32>
    %37 = vector.shape_cast %36 : vector<1x1x16x32xf32> to vector<16x32xf32>
    %c224 = arith.constant 224 : index
    %c0_44 = arith.constant 0 : index
    %38 = vector.load %arg11[%c224, %c0_44] : memref<864x64xf32, #tpu.memory_space<vmem>>, vector<32x64xf32>
    %cst_45 = arith.constant dense<0.000000e+00> : vector<16x64xf32>
    %39 = tpu.matmul %37, %38, %cst_45 {dimension_numbers = #tpu.dot_dimension_numbers<[1], [0], [0], [1], [0, 0, 1, 1], [], []>} : vector<16x32xf32>, vector<32x64xf32>, vector<16x64xf32> -> vector<16x64xf32>
    %40 = arith.addf %35, %39 : vector<16x64xf32>
    %c0_46 = arith.constant 0 : index
    %c0_47 = arith.constant 0 : index
    %c8_48 = arith.constant 8 : index
    %c0_49 = arith.constant 0 : index
    %41 = vector.load %arg8[%c0_46, %c0_47, %c8_48, %c0_49] : memref<1x1x24x32xf32, #tpu.memory_space<vmem>>, vector<1x1x16x32xf32>
    %42 = vector.shape_cast %41 : vector<1x1x16x32xf32> to vector<16x32xf32>
    %c256 = arith.constant 256 : index
    %c0_50 = arith.constant 0 : index
    %43 = vector.load %arg11[%c256, %c0_50] : memref<864x64xf32, #tpu.memory_space<vmem>>, vector<32x64xf32>
    %cst_51 = arith.constant dense<0.000000e+00> : vector<16x64xf32>
    %44 = tpu.matmul %42, %43, %cst_51 {dimension_numbers = #tpu.dot_dimension_numbers<[1], [0], [0], [1], [0, 0, 1, 1], [], []>} : vector<16x32xf32>, vector<32x64xf32>, vector<16x64xf32> -> vector<16x64xf32>
    %45 = arith.addf %40, %44 : vector<16x64xf32>
    %c0_52 = arith.constant 0 : index
    %c0_53 = arith.constant 0 : index
    %c0_54 = arith.constant 0 : index
    %c0_55 = arith.constant 0 : index
    %46 = vector.load %arg3[%c0_52, %c0_53, %c0_54, %c0_55] : memref<1x1x24x32xf32, #tpu.memory_space<vmem>>, vector<1x1x16x32xf32>
    %47 = vector.shape_cast %46 : vector<1x1x16x32xf32> to vector<16x32xf32>
    %c288 = arith.constant 288 : index
    %c0_56 = arith.constant 0 : index
    %48 = vector.load %arg11[%c288, %c0_56] : memref<864x64xf32, #tpu.memory_space<vmem>>, vector<32x64xf32>
    %cst_57 = arith.constant dense<0.000000e+00> : vector<16x64xf32>
    %49 = tpu.matmul %47, %48, %cst_57 {dimension_numbers = #tpu.dot_dimension_numbers<[1], [0], [0], [1], [0, 0, 1, 1], [], []>} : vector<16x32xf32>, vector<32x64xf32>, vector<16x64xf32> -> vector<16x64xf32>
    %50 = arith.addf %45, %49 : vector<16x64xf32>
    %c0_58 = arith.constant 0 : index
    %c0_59 = arith.constant 0 : index
    %c0_60 = arith.constant 0 : index
    %c0_61 = arith.constant 0 : index
    %51 = vector.load %arg6[%c0_58, %c0_59, %c0_60, %c0_61] : memref<1x1x24x32xf32, #tpu.memory_space<vmem>>, vector<1x1x16x32xf32>
    %52 = vector.shape_cast %51 : vector<1x1x16x32xf32> to vector<16x32xf32>
    %c320 = arith.constant 320 : index
    %c0_62 = arith.constant 0 : index
    %53 = vector.load %arg11[%c320, %c0_62] : memref<864x64xf32, #tpu.memory_space<vmem>>, vector<32x64xf32>
    %cst_63 = arith.constant dense<0.000000e+00> : vector<16x64xf32>
    %54 = tpu.matmul %52, %53, %cst_63 {dimension_numbers = #tpu.dot_dimension_numbers<[1], [0], [0], [1], [0, 0, 1, 1], [], []>} : vector<16x32xf32>, vector<32x64xf32>, vector<16x64xf32> -> vector<16x64xf32>
    %55 = arith.addf %50, %54 : vector<16x64xf32>
    %c0_64 = arith.constant 0 : index
    %c0_65 = arith.constant 0 : index
    %c0_66 = arith.constant 0 : index
    %c0_67 = arith.constant 0 : index
    %56 = vector.load %arg9[%c0_64, %c0_65, %c0_66, %c0_67] : memref<1x1x24x32xf32, #tpu.memory_space<vmem>>, vector<1x1x16x32xf32>
    %57 = vector.shape_cast %56 : vector<1x1x16x32xf32> to vector<16x32xf32>
    %c352 = arith.constant 352 : index
    %c0_68 = arith.constant 0 : index
    %58 = vector.load %arg11[%c352, %c0_68] : memref<864x64xf32, #tpu.memory_space<vmem>>, vector<32x64xf32>
    %cst_69 = arith.constant dense<0.000000e+00> : vector<16x64xf32>
    %59 = tpu.matmul %57, %58, %cst_69 {dimension_numbers = #tpu.dot_dimension_numbers<[1], [0], [0], [1], [0, 0, 1, 1], [], []>} : vector<16x32xf32>, vector<32x64xf32>, vector<16x64xf32> -> vector<16x64xf32>
    %60 = arith.addf %55, %59 : vector<16x64xf32>
    %c0_70 = arith.constant 0 : index
    %c0_71 = arith.constant 0 : index
    %c4_72 = arith.constant 4 : index
    %c0_73 = arith.constant 0 : index
    %61 = vector.load %arg3[%c0_70, %c0_71, %c4_72, %c0_73] : memref<1x1x24x32xf32, #tpu.memory_space<vmem>>, vector<1x1x16x32xf32>
    %62 = vector.shape_cast %61 : vector<1x1x16x32xf32> to vector<16x32xf32>
    %c384 = arith.constant 384 : index
    %c0_74 = arith.constant 0 : index
    %63 = vector.load %arg11[%c384, %c0_74] : memref<864x64xf32, #tpu.memory_space<vmem>>, vector<32x64xf32>
    %cst_75 = arith.constant dense<0.000000e+00> : vector<16x64xf32>
    %64 = tpu.matmul %62, %63, %cst_75 {dimension_numbers = #tpu.dot_dimension_numbers<[1], [0], [0], [1], [0, 0, 1, 1], [], []>} : vector<16x32xf32>, vector<32x64xf32>, vector<16x64xf32> -> vector<16x64xf32>
    %65 = arith.addf %60, %64 : vector<16x64xf32>
    %c0_76 = arith.constant 0 : index
    %c0_77 = arith.constant 0 : index
    %c4_78 = arith.constant 4 : index
    %c0_79 = arith.constant 0 : index
    %66 = vector.load %arg6[%c0_76, %c0_77, %c4_78, %c0_79] : memref<1x1x24x32xf32, #tpu.memory_space<vmem>>, vector<1x1x16x32xf32>
    %67 = vector.shape_cast %66 : vector<1x1x16x32xf32> to vector<16x32xf32>
    %c416 = arith.constant 416 : index
    %c0_80 = arith.constant 0 : index
    %68 = vector.load %arg11[%c416, %c0_80] : memref<864x64xf32, #tpu.memory_space<vmem>>, vector<32x64xf32>
    %cst_81 = arith.constant dense<0.000000e+00> : vector<16x64xf32>
    %69 = tpu.matmul %67, %68, %cst_81 {dimension_numbers = #tpu.dot_dimension_numbers<[1], [0], [0], [1], [0, 0, 1, 1], [], []>} : vector<16x32xf32>, vector<32x64xf32>, vector<16x64xf32> -> vector<16x64xf32>
    %70 = arith.addf %65, %69 : vector<16x64xf32>
    %c0_82 = arith.constant 0 : index
    %c0_83 = arith.constant 0 : index
    %c4_84 = arith.constant 4 : index
    %c0_85 = arith.constant 0 : index
    %71 = vector.load %arg9[%c0_82, %c0_83, %c4_84, %c0_85] : memref<1x1x24x32xf32, #tpu.memory_space<vmem>>, vector<1x1x16x32xf32>
    %72 = vector.shape_cast %71 : vector<1x1x16x32xf32> to vector<16x32xf32>
    %c448 = arith.constant 448 : index
    %c0_86 = arith.constant 0 : index
    %73 = vector.load %arg11[%c448, %c0_86] : memref<864x64xf32, #tpu.memory_space<vmem>>, vector<32x64xf32>
    %cst_87 = arith.constant dense<0.000000e+00> : vector<16x64xf32>
    %74 = tpu.matmul %72, %73, %cst_87 {dimension_numbers = #tpu.dot_dimension_numbers<[1], [0], [0], [1], [0, 0, 1, 1], [], []>} : vector<16x32xf32>, vector<32x64xf32>, vector<16x64xf32> -> vector<16x64xf32>
    %75 = arith.addf %70, %74 : vector<16x64xf32>
    %c0_88 = arith.constant 0 : index
    %c0_89 = arith.constant 0 : index
    %c8_90 = arith.constant 8 : index
    %c0_91 = arith.constant 0 : index
    %76 = vector.load %arg3[%c0_88, %c0_89, %c8_90, %c0_91] : memref<1x1x24x32xf32, #tpu.memory_space<vmem>>, vector<1x1x16x32xf32>
    %77 = vector.shape_cast %76 : vector<1x1x16x32xf32> to vector<16x32xf32>
    %c480 = arith.constant 480 : index
    %c0_92 = arith.constant 0 : index
    %78 = vector.load %arg11[%c480, %c0_92] : memref<864x64xf32, #tpu.memory_space<vmem>>, vector<32x64xf32>
    %cst_93 = arith.constant dense<0.000000e+00> : vector<16x64xf32>
    %79 = tpu.matmul %77, %78, %cst_93 {dimension_numbers = #tpu.dot_dimension_numbers<[1], [0], [0], [1], [0, 0, 1, 1], [], []>} : vector<16x32xf32>, vector<32x64xf32>, vector<16x64xf32> -> vector<16x64xf32>
    %80 = arith.addf %75, %79 : vector<16x64xf32>
    %c0_94 = arith.constant 0 : index
    %c0_95 = arith.constant 0 : index
    %c8_96 = arith.constant 8 : index
    %c0_97 = arith.constant 0 : index
    %81 = vector.load %arg6[%c0_94, %c0_95, %c8_96, %c0_97] : memref<1x1x24x32xf32, #tpu.memory_space<vmem>>, vector<1x1x16x32xf32>
    %82 = vector.shape_cast %81 : vector<1x1x16x32xf32> to vector<16x32xf32>
    %c512 = arith.constant 512 : index
    %c0_98 = arith.constant 0 : index
    %83 = vector.load %arg11[%c512, %c0_98] : memref<864x64xf32, #tpu.memory_space<vmem>>, vector<32x64xf32>
    %cst_99 = arith.constant dense<0.000000e+00> : vector<16x64xf32>
    %84 = tpu.matmul %82, %83, %cst_99 {dimension_numbers = #tpu.dot_dimension_numbers<[1], [0], [0], [1], [0, 0, 1, 1], [], []>} : vector<16x32xf32>, vector<32x64xf32>, vector<16x64xf32> -> vector<16x64xf32>
    %85 = arith.addf %80, %84 : vector<16x64xf32>
    %c0_100 = arith.constant 0 : index
    %c0_101 = arith.constant 0 : index
    %c8_102 = arith.constant 8 : index
    %c0_103 = arith.constant 0 : index
    %86 = vector.load %arg9[%c0_100, %c0_101, %c8_102, %c0_103] : memref<1x1x24x32xf32, #tpu.memory_space<vmem>>, vector<1x1x16x32xf32>
    %87 = vector.shape_cast %86 : vector<1x1x16x32xf32> to vector<16x32xf32>
    %c544 = arith.constant 544 : index
    %c0_104 = arith.constant 0 : index
    %88 = vector.load %arg11[%c544, %c0_104] : memref<864x64xf32, #tpu.memory_space<vmem>>, vector<32x64xf32>
    %cst_105 = arith.constant dense<0.000000e+00> : vector<16x64xf32>
    %89 = tpu.matmul %87, %88, %cst_105 {dimension_numbers = #tpu.dot_dimension_numbers<[1], [0], [0], [1], [0, 0, 1, 1], [], []>} : vector<16x32xf32>, vector<32x64xf32>, vector<16x64xf32> -> vector<16x64xf32>
    %90 = arith.addf %85, %89 : vector<16x64xf32>
    %c0_106 = arith.constant 0 : index
    %c0_107 = arith.constant 0 : index
    %c0_108 = arith.constant 0 : index
    %c0_109 = arith.constant 0 : index
    %91 = vector.load %arg4[%c0_106, %c0_107, %c0_108, %c0_109] : memref<1x1x24x32xf32, #tpu.memory_space<vmem>>, vector<1x1x16x32xf32>
    %92 = vector.shape_cast %91 : vector<1x1x16x32xf32> to vector<16x32xf32>
    %c576 = arith.constant 576 : index
    %c0_110 = arith.constant 0 : index
    %93 = vector.load %arg11[%c576, %c0_110] : memref<864x64xf32, #tpu.memory_space<vmem>>, vector<32x64xf32>
    %cst_111 = arith.constant dense<0.000000e+00> : vector<16x64xf32>
    %94 = tpu.matmul %92, %93, %cst_111 {dimension_numbers = #tpu.dot_dimension_numbers<[1], [0], [0], [1], [0, 0, 1, 1], [], []>} : vector<16x32xf32>, vector<32x64xf32>, vector<16x64xf32> -> vector<16x64xf32>
    %95 = arith.addf %90, %94 : vector<16x64xf32>
    %c0_112 = arith.constant 0 : index
    %c0_113 = arith.constant 0 : index
    %c0_114 = arith.constant 0 : index
    %c0_115 = arith.constant 0 : index
    %96 = vector.load %arg7[%c0_112, %c0_113, %c0_114, %c0_115] : memref<1x1x24x32xf32, #tpu.memory_space<vmem>>, vector<1x1x16x32xf32>
    %97 = vector.shape_cast %96 : vector<1x1x16x32xf32> to vector<16x32xf32>
    %c608 = arith.constant 608 : index
    %c0_116 = arith.constant 0 : index
    %98 = vector.load %arg11[%c608, %c0_116] : memref<864x64xf32, #tpu.memory_space<vmem>>, vector<32x64xf32>
    %cst_117 = arith.constant dense<0.000000e+00> : vector<16x64xf32>
    %99 = tpu.matmul %97, %98, %cst_117 {dimension_numbers = #tpu.dot_dimension_numbers<[1], [0], [0], [1], [0, 0, 1, 1], [], []>} : vector<16x32xf32>, vector<32x64xf32>, vector<16x64xf32> -> vector<16x64xf32>
    %100 = arith.addf %95, %99 : vector<16x64xf32>
    %c0_118 = arith.constant 0 : index
    %c0_119 = arith.constant 0 : index
    %c0_120 = arith.constant 0 : index
    %c0_121 = arith.constant 0 : index
    %101 = vector.load %arg10[%c0_118, %c0_119, %c0_120, %c0_121] : memref<1x1x24x32xf32, #tpu.memory_space<vmem>>, vector<1x1x16x32xf32>
    %102 = vector.shape_cast %101 : vector<1x1x16x32xf32> to vector<16x32xf32>
    %c640 = arith.constant 640 : index
    %c0_122 = arith.constant 0 : index
    %103 = vector.load %arg11[%c640, %c0_122] : memref<864x64xf32, #tpu.memory_space<vmem>>, vector<32x64xf32>
    %cst_123 = arith.constant dense<0.000000e+00> : vector<16x64xf32>
    %104 = tpu.matmul %102, %103, %cst_123 {dimension_numbers = #tpu.dot_dimension_numbers<[1], [0], [0], [1], [0, 0, 1, 1], [], []>} : vector<16x32xf32>, vector<32x64xf32>, vector<16x64xf32> -> vector<16x64xf32>
    %105 = arith.addf %100, %104 : vector<16x64xf32>
    %c0_124 = arith.constant 0 : index
    %c0_125 = arith.constant 0 : index
    %c4_126 = arith.constant 4 : index
    %c0_127 = arith.constant 0 : index
    %106 = vector.load %arg4[%c0_124, %c0_125, %c4_126, %c0_127] : memref<1x1x24x32xf32, #tpu.memory_space<vmem>>, vector<1x1x16x32xf32>
    %107 = vector.shape_cast %106 : vector<1x1x16x32xf32> to vector<16x32xf32>
    %c672 = arith.constant 672 : index
    %c0_128 = arith.constant 0 : index
    %108 = vector.load %arg11[%c672, %c0_128] : memref<864x64xf32, #tpu.memory_space<vmem>>, vector<32x64xf32>
    %cst_129 = arith.constant dense<0.000000e+00> : vector<16x64xf32>
    %109 = tpu.matmul %107, %108, %cst_129 {dimension_numbers = #tpu.dot_dimension_numbers<[1], [0], [0], [1], [0, 0, 1, 1], [], []>} : vector<16x32xf32>, vector<32x64xf32>, vector<16x64xf32> -> vector<16x64xf32>
    %110 = arith.addf %105, %109 : vector<16x64xf32>
    %c0_130 = arith.constant 0 : index
    %c0_131 = arith.constant 0 : index
    %c4_132 = arith.constant 4 : index
    %c0_133 = arith.constant 0 : index
    %111 = vector.load %arg7[%c0_130, %c0_131, %c4_132, %c0_133] : memref<1x1x24x32xf32, #tpu.memory_space<vmem>>, vector<1x1x16x32xf32>
    %112 = vector.shape_cast %111 : vector<1x1x16x32xf32> to vector<16x32xf32>
    %c704 = arith.constant 704 : index
    %c0_134 = arith.constant 0 : index
    %113 = vector.load %arg11[%c704, %c0_134] : memref<864x64xf32, #tpu.memory_space<vmem>>, vector<32x64xf32>
    %cst_135 = arith.constant dense<0.000000e+00> : vector<16x64xf32>
    %114 = tpu.matmul %112, %113, %cst_135 {dimension_numbers = #tpu.dot_dimension_numbers<[1], [0], [0], [1], [0, 0, 1, 1], [], []>} : vector<16x32xf32>, vector<32x64xf32>, vector<16x64xf32> -> vector<16x64xf32>
    %115 = arith.addf %110, %114 : vector<16x64xf32>
    %c0_136 = arith.constant 0 : index
    %c0_137 = arith.constant 0 : index
    %c4_138 = arith.constant 4 : index
    %c0_139 = arith.constant 0 : index
    %116 = vector.load %arg10[%c0_136, %c0_137, %c4_138, %c0_139] : memref<1x1x24x32xf32, #tpu.memory_space<vmem>>, vector<1x1x16x32xf32>
    %117 = vector.shape_cast %116 : vector<1x1x16x32xf32> to vector<16x32xf32>
    %c736 = arith.constant 736 : index
    %c0_140 = arith.constant 0 : index
    %118 = vector.load %arg11[%c736, %c0_140] : memref<864x64xf32, #tpu.memory_space<vmem>>, vector<32x64xf32>
    %cst_141 = arith.constant dense<0.000000e+00> : vector<16x64xf32>
    %119 = tpu.matmul %117, %118, %cst_141 {dimension_numbers = #tpu.dot_dimension_numbers<[1], [0], [0], [1], [0, 0, 1, 1], [], []>} : vector<16x32xf32>, vector<32x64xf32>, vector<16x64xf32> -> vector<16x64xf32>
    %120 = arith.addf %115, %119 : vector<16x64xf32>
    %c0_142 = arith.constant 0 : index
    %c0_143 = arith.constant 0 : index
    %c8_144 = arith.constant 8 : index
    %c0_145 = arith.constant 0 : index
    %121 = vector.load %arg4[%c0_142, %c0_143, %c8_144, %c0_145] : memref<1x1x24x32xf32, #tpu.memory_space<vmem>>, vector<1x1x16x32xf32>
    %122 = vector.shape_cast %121 : vector<1x1x16x32xf32> to vector<16x32xf32>
    %c768 = arith.constant 768 : index
    %c0_146 = arith.constant 0 : index
    %123 = vector.load %arg11[%c768, %c0_146] : memref<864x64xf32, #tpu.memory_space<vmem>>, vector<32x64xf32>
    %cst_147 = arith.constant dense<0.000000e+00> : vector<16x64xf32>
    %124 = tpu.matmul %122, %123, %cst_147 {dimension_numbers = #tpu.dot_dimension_numbers<[1], [0], [0], [1], [0, 0, 1, 1], [], []>} : vector<16x32xf32>, vector<32x64xf32>, vector<16x64xf32> -> vector<16x64xf32>
    %125 = arith.addf %120, %124 : vector<16x64xf32>
    %c0_148 = arith.constant 0 : index
    %c0_149 = arith.constant 0 : index
    %c8_150 = arith.constant 8 : index
    %c0_151 = arith.constant 0 : index
    %126 = vector.load %arg7[%c0_148, %c0_149, %c8_150, %c0_151] : memref<1x1x24x32xf32, #tpu.memory_space<vmem>>, vector<1x1x16x32xf32>
    %127 = vector.shape_cast %126 : vector<1x1x16x32xf32> to vector<16x32xf32>
    %c800 = arith.constant 800 : index
    %c0_152 = arith.constant 0 : index
    %128 = vector.load %arg11[%c800, %c0_152] : memref<864x64xf32, #tpu.memory_space<vmem>>, vector<32x64xf32>
    %cst_153 = arith.constant dense<0.000000e+00> : vector<16x64xf32>
    %129 = tpu.matmul %127, %128, %cst_153 {dimension_numbers = #tpu.dot_dimension_numbers<[1], [0], [0], [1], [0, 0, 1, 1], [], []>} : vector<16x32xf32>, vector<32x64xf32>, vector<16x64xf32> -> vector<16x64xf32>
    %130 = arith.addf %125, %129 : vector<16x64xf32>
    %c0_154 = arith.constant 0 : index
    %c0_155 = arith.constant 0 : index
    %c8_156 = arith.constant 8 : index
    %c0_157 = arith.constant 0 : index
    %131 = vector.load %arg10[%c0_154, %c0_155, %c8_156, %c0_157] : memref<1x1x24x32xf32, #tpu.memory_space<vmem>>, vector<1x1x16x32xf32>
    %132 = vector.shape_cast %131 : vector<1x1x16x32xf32> to vector<16x32xf32>
    %c832 = arith.constant 832 : index
    %c0_158 = arith.constant 0 : index
    %133 = vector.load %arg11[%c832, %c0_158] : memref<864x64xf32, #tpu.memory_space<vmem>>, vector<32x64xf32>
    %cst_159 = arith.constant dense<0.000000e+00> : vector<16x64xf32>
    %134 = tpu.matmul %132, %133, %cst_159 {dimension_numbers = #tpu.dot_dimension_numbers<[1], [0], [0], [1], [0, 0, 1, 1], [], []>} : vector<16x32xf32>, vector<32x64xf32>, vector<16x64xf32> -> vector<16x64xf32>
    %135 = arith.addf %130, %134 : vector<16x64xf32>
    %c0_160 = arith.constant 0 : index
    %c0_161 = arith.constant 0 : index
    %136 = vector.load %arg12[%c0_160, %c0_161] : memref<1x64xf32, #tpu.memory_space<vmem>>, vector<1x64xf32>
    %137 = vector.broadcast %136 : vector<1x64xf32> to vector<16x64xf32>
    %138 = arith.addf %135, %137 : vector<16x64xf32>
    %c0_162 = arith.constant 0 : index
    %c0_163 = arith.constant 0 : index
    %c0_164 = arith.constant 0 : index
    %c0_165 = arith.constant 0 : index
    %139 = vector.load %arg13[%c0_162, %c0_163, %c0_164, %c0_165] : memref<1x1x16x64xf32, #tpu.memory_space<vmem>>, vector<1x1x16x64xf32>
    %140 = vector.shape_cast %139 : vector<1x1x16x64xf32> to vector<16x64xf32>
    %141 = vector.shape_cast %138 : vector<16x64xf32> to vector<1x1x16x64xf32>
    tpu.vector_store %arg13[%c0_162, %c0_163, %c0_164, %c0_165], %141 {strides = array<i32>} : memref<1x1x16x64xf32, #tpu.memory_space<vmem>>, vector<1x1x16x64xf32>,
    return
  }
  func.func @transform_0(%arg0: i32, %arg1: i32) -> (i32, i32, i32, i32) {
    %c0_i32 = arith.constant 0 : i32
    %0 = arith.addi %arg1, %c0_i32 : i32
    %c0_i32_0 = arith.constant 0 : i32
    %c0_i32_1 = arith.constant 0 : i32
    %c0_i32_2 = arith.constant 0 : i32
    return %arg0, %0, %c0_i32_0, %c0_i32_1 : i32, i32, i32, i32
  }
  func.func @transform_1(%arg0: i32, %arg1: i32) -> (i32, i32, i32, i32) {
    %c1_i32 = arith.constant 1 : i32
    %0 = arith.addi %arg1, %c1_i32 : i32
    %c0_i32 = arith.constant 0 : i32
    %c0_i32_0 = arith.constant 0 : i32
    %c0_i32_1 = arith.constant 0 : i32
    return %arg0, %0, %c0_i32, %c0_i32_0 : i32, i32, i32, i32
  }
  func.func @transform_2(%arg0: i32, %arg1: i32) -> (i32, i32, i32, i32) {
    %c2_i32 = arith.constant 2 : i32
    %0 = arith.addi %arg1, %c2_i32 : i32
    %c0_i32 = arith.constant 0 : i32
    %c0_i32_0 = arith.constant 0 : i32
    %c0_i32_1 = arith.constant 0 : i32
    return %arg0, %0, %c0_i32, %c0_i32_0 : i32, i32, i32, i32
  }
  func.func @transform_3(%arg0: i32, %arg1: i32) -> (i32, i32, i32, i32) {
    %c0_i32 = arith.constant 0 : i32
    %0 = arith.addi %arg1, %c0_i32 : i32
    %c0_i32_0 = arith.constant 0 : i32
    %c0_i32_1 = arith.constant 0 : i32
    %c0_i32_2 = arith.constant 0 : i32
    return %arg0, %0, %c0_i32_0, %c0_i32_1 : i32, i32, i32, i32
  }
  func.func @transform_4(%arg0: i32, %arg1: i32) -> (i32, i32, i32, i32) {
    %c1_i32 = arith.constant 1 : i32
    %0 = arith.addi %arg1, %c1_i32 : i32
    %c0_i32 = arith.constant 0 : i32
    %c0_i32_0 = arith.constant 0 : i32
    %c0_i32_1 = arith.constant 0 : i32
    return %arg0, %0, %c0_i32, %c0_i32_0 : i32, i32, i32, i32
  }
  func.func @transform_5(%arg0: i32, %arg1: i32) -> (i32, i32, i32, i32) {
    %c2_i32 = arith.constant 2 : i32
    %0 = arith.addi %arg1, %c2_i32 : i32
    %c0_i32 = arith.constant 0 : i32
    %c0_i32_0 = arith.constant 0 : i32
    %c0_i32_1 = arith.constant 0 : i32
    return %arg0, %0, %c0_i32, %c0_i32_0 : i32, i32, i32, i32
  }
  func.func @transform_6(%arg0: i32, %arg1: i32) -> (i32, i32, i32, i32) {
    %c0_i32 = arith.constant 0 : i32
    %0 = arith.addi %arg1, %c0_i32 : i32
    %c0_i32_0 = arith.constant 0 : i32
    %c0_i32_1 = arith.constant 0 : i32
    %c0_i32_2 = arith.constant 0 : i32
    return %arg0, %0, %c0_i32_0, %c0_i32_1 : i32, i32, i32, i32
  }
  func.func @transform_7(%arg0: i32, %arg1: i32) -> (i32, i32, i32, i32) {
    %c1_i32 = arith.constant 1 : i32
    %0 = arith.addi %arg1, %c1_i32 : i32
    %c0_i32 = arith.constant 0 : i32
    %c0_i32_0 = arith.constant 0 : i32
    %c0_i32_1 = arith.constant 0 : i32
    return %arg0, %0, %c0_i32, %c0_i32_0 : i32, i32, i32, i32
  }
  func.func @transform_8(%arg0: i32, %arg1: i32) -> (i32, i32, i32, i32) {
    %c2_i32 = arith.constant 2 : i32
    %0 = arith.addi %arg1, %c2_i32 : i32
    %c0_i32 = arith.constant 0 : i32
    %c0_i32_0 = arith.constant 0 : i32
    %c0_i32_1 = arith.constant 0 : i32
    return %arg0, %0, %c0_i32, %c0_i32_0 : i32, i32, i32, i32
  }
  func.func @transform_9(%arg0: i32, %arg1: i32) -> (i32, i32) {
    %c0_i32 = arith.constant 0 : i32
    %c0_i32_0 = arith.constant 0 : i32
    %c0_i32_1 = arith.constant 0 : i32
    return %c0_i32, %c0_i32_0 : i32, i32
  }
  func.func @transform_10(%arg0: i32, %arg1: i32) -> (i32, i32) {
    %c0_i32 = arith.constant 0 : i32
    %c0_i32_0 = arith.constant 0 : i32
    %c0_i32_1 = arith.constant 0 : i32
    return %c0_i32, %c0_i32_0 : i32, i32
  }
  func.func @transform_11(%arg0: i32, %arg1: i32) -> (i32, i32, i32, i32) {
    %c0_i32 = arith.constant 0 : i32
    %c0_i32_0 = arith.constant 0 : i32
    %c0_i32_1 = arith.constant 0 : i32
    return %arg0, %arg1, %c0_i32, %c0_i32_0 : i32, i32, i32, i32
  }
}

module attributes {stable_mosaic.version = 11 : i64} {
  func.func @_stats_kernel(%arg0: i32, %arg1: memref<256x16xf32, #tpu.memory_space<vmem>>, %arg2: memref<1x16xf32, #tpu.memory_space<vmem>>, %arg3: memref<1x16xf32, #tpu.memory_space<vmem>>) attributes {dimension_semantics = [#tpu.dimension_semantics<arbitrary>], iteration_bounds = array<i64: 1>, scalar_prefetch = 0 : i64, scratch_operands = 0 : i64, tpu.core_type = #tpu.core_type<tc>, window_params = [{transform_indices = @transform_0, window_bounds = array<i64: 256, 16>}, {pipeline_mode = #tpu.pipeline_mode<synchronous>, transform_indices = @transform_1, window_bounds = array<i64: 1, 16>}, {pipeline_mode = #tpu.pipeline_mode<synchronous>, transform_indices = @transform_2, window_bounds = array<i64: 1, 16>}]} {
    %c0_i32 = arith.constant 0 : i32
    %0 = arith.cmpi eq, %arg0, %c0_i32 : i32
    %1 = arith.extui %0 : i1 to i32
    %c0_i32_0 = arith.constant 0 : i32
    %2 = arith.cmpi ne, %1, %c0_i32_0 : i32
    scf.if %2 {
      %cst_11 = arith.constant 0.000000e+00 : f32
      %15 = vector.broadcast %cst_11 : f32 to vector<1x16xf32>
      %c0_12 = arith.constant 0 : index
      %c0_13 = arith.constant 0 : index
      %16 = vector.load %arg2[%c0_12, %c0_13] : memref<1x16xf32, #tpu.memory_space<vmem>>, vector<1x16xf32>
      tpu.vector_store %arg2[%c0_12, %c0_13], %15 {strides = array<i32>} : memref<1x16xf32, #tpu.memory_space<vmem>>, vector<1x16xf32>,
      %cst_14 = arith.constant 0.000000e+00 : f32
      %17 = vector.broadcast %cst_14 : f32 to vector<1x16xf32>
      %c0_15 = arith.constant 0 : index
      %c0_16 = arith.constant 0 : index
      %18 = vector.load %arg3[%c0_15, %c0_16] : memref<1x16xf32, #tpu.memory_space<vmem>>, vector<1x16xf32>
      tpu.vector_store %arg3[%c0_15, %c0_16], %17 {strides = array<i32>} : memref<1x16xf32, #tpu.memory_space<vmem>>, vector<1x16xf32>,
    } else {
    }
    %c0 = arith.constant 0 : index
    %c0_1 = arith.constant 0 : index
    %3 = vector.load %arg1[%c0, %c0_1] : memref<256x16xf32, #tpu.memory_space<vmem>>, vector<256x16xf32>
    %c0_2 = arith.constant 0 : index
    %c0_3 = arith.constant 0 : index
    %4 = vector.load %arg2[%c0_2, %c0_3] : memref<1x16xf32, #tpu.memory_space<vmem>>, vector<1x16xf32>
    %cst = arith.constant dense<0.000000e+00> : vector<16xf32>
    %5 = vector.multi_reduction <add>, %3, %cst [0] : vector<256x16xf32> to vector<16xf32>
    %6 = vector.shape_cast %5 : vector<16xf32> to vector<1x16xf32>
    %7 = arith.addf %4, %6 : vector<1x16xf32>
    %c0_4 = arith.constant 0 : index
    %c0_5 = arith.constant 0 : index
    %8 = vector.load %arg2[%c0_4, %c0_5] : memref<1x16xf32, #tpu.memory_space<vmem>>, vector<1x16xf32>
    tpu.vector_store %arg2[%c0_4, %c0_5], %7 {strides = array<i32>} : memref<1x16xf32, #tpu.memory_space<vmem>>, vector<1x16xf32>,
    %c0_6 = arith.constant 0 : index
    %c0_7 = arith.constant 0 : index
    %9 = vector.load %arg3[%c0_6, %c0_7] : memref<1x16xf32, #tpu.memory_space<vmem>>, vector<1x16xf32>
    %10 = arith.mulf %3, %3 : vector<256x16xf32>
    %cst_8 = arith.constant dense<0.000000e+00> : vector<16xf32>
    %11 = vector.multi_reduction <add>, %10, %cst_8 [0] : vector<256x16xf32> to vector<16xf32>
    %12 = vector.shape_cast %11 : vector<16xf32> to vector<1x16xf32>
    %13 = arith.addf %9, %12 : vector<1x16xf32>
    %c0_9 = arith.constant 0 : index
    %c0_10 = arith.constant 0 : index
    %14 = vector.load %arg3[%c0_9, %c0_10] : memref<1x16xf32, #tpu.memory_space<vmem>>, vector<1x16xf32>
    tpu.vector_store %arg3[%c0_9, %c0_10], %13 {strides = array<i32>} : memref<1x16xf32, #tpu.memory_space<vmem>>, vector<1x16xf32>,
    return
  }
  func.func @transform_0(%arg0: i32) -> (i32, i32) {
    %c0_i32 = arith.constant 0 : i32
    %c0_i32_0 = arith.constant 0 : i32
    return %arg0, %c0_i32 : i32, i32
  }
  func.func @transform_1(%arg0: i32) -> (i32, i32) {
    %c0_i32 = arith.constant 0 : i32
    %c0_i32_0 = arith.constant 0 : i32
    %c0_i32_1 = arith.constant 0 : i32
    return %c0_i32, %c0_i32_0 : i32, i32
  }
  func.func @transform_2(%arg0: i32) -> (i32, i32) {
    %c0_i32 = arith.constant 0 : i32
    %c0_i32_0 = arith.constant 0 : i32
    %c0_i32_1 = arith.constant 0 : i32
    return %c0_i32, %c0_i32_0 : i32, i32
  }
}

module attributes {stable_mosaic.version = 11 : i64} {
  func.func @_conv2_kernel(%arg0: i32, %arg1: memref<1x80x16xf32, #tpu.memory_space<vmem>>, %arg2: memref<1x80x16xf32, #tpu.memory_space<vmem>>, %arg3: memref<1x80x16xf32, #tpu.memory_space<vmem>>, %arg4: memref<1x80x16xf32, #tpu.memory_space<vmem>>, %arg5: memref<1x80x16xf32, #tpu.memory_space<vmem>>, %arg6: memref<1x80x16xf32, #tpu.memory_space<vmem>>, %arg7: memref<144x16xf32, #tpu.memory_space<vmem>>, %arg8: memref<144x16xf32, #tpu.memory_space<vmem>>, %arg9: memref<1x64x16xf32, #tpu.memory_space<vmem>>, %arg10: memref<1x64x16xf32, #tpu.memory_space<vmem>>) attributes {dimension_semantics = [#tpu.dimension_semantics<parallel>], iteration_bounds = array<i64: 4>, scalar_prefetch = 0 : i64, scratch_operands = 0 : i64, tpu.core_type = #tpu.core_type<tc>, window_params = [{transform_indices = @transform_0, window_bounds = array<i64: 1, 80, 16>}, {transform_indices = @transform_1, window_bounds = array<i64: 1, 80, 16>}, {transform_indices = @transform_2, window_bounds = array<i64: 1, 80, 16>}, {transform_indices = @transform_3, window_bounds = array<i64: 1, 80, 16>}, {transform_indices = @transform_4, window_bounds = array<i64: 1, 80, 16>}, {transform_indices = @transform_5, window_bounds = array<i64: 1, 80, 16>}, {pipeline_mode = #tpu.pipeline_mode<synchronous>, transform_indices = @transform_6, window_bounds = array<i64: 144, 16>}, {pipeline_mode = #tpu.pipeline_mode<synchronous>, transform_indices = @transform_7, window_bounds = array<i64: 144, 16>}, {pipeline_mode = #tpu.pipeline_mode<synchronous>, transform_indices = @transform_8, window_bounds = array<i64: 1, 64, 16>}, {transform_indices = @transform_9, window_bounds = array<i64: 1, 64, 16>}]} {
    %c0 = arith.constant 0 : index
    %c0_0 = arith.constant 0 : index
    %c0_1 = arith.constant 0 : index
    %0 = vector.load %arg9[%c0, %c0_0, %c0_1] : memref<1x64x16xf32, #tpu.memory_space<vmem>>, vector<1x64x16xf32>
    %1 = vector.shape_cast %0 : vector<1x64x16xf32> to vector<64x16xf32>
    %c0_2 = arith.constant 0 : index
    %c0_3 = arith.constant 0 : index
    %c0_4 = arith.constant 0 : index
    %2 = vector.load %arg1[%c0_2, %c0_3, %c0_4] : memref<1x80x16xf32, #tpu.memory_space<vmem>>, vector<1x64x16xf32>
    %3 = vector.shape_cast %2 : vector<1x64x16xf32> to vector<64x16xf32>
    %c0_5 = arith.constant 0 : index
    %c0_6 = arith.constant 0 : index
    %4 = vector.load %arg7[%c0_5, %c0_6] : memref<144x16xf32, #tpu.memory_space<vmem>>, vector<16x16xf32>
    %cst = arith.constant dense<0.000000e+00> : vector<64x16xf32>
    %5 = tpu.matmul %3, %4, %cst {dimension_numbers = #tpu.dot_dimension_numbers<[1], [0], [0], [1], [0, 0, 1, 1], [], []>} : vector<64x16xf32>, vector<16x16xf32>, vector<64x16xf32> -> vector<64x16xf32>
    %6 = arith.addf %1, %5 : vector<64x16xf32>
    %c0_7 = arith.constant 0 : index
    %c0_8 = arith.constant 0 : index
    %c0_9 = arith.constant 0 : index
    %7 = vector.load %arg4[%c0_7, %c0_8, %c0_9] : memref<1x80x16xf32, #tpu.memory_space<vmem>>, vector<1x64x16xf32>
    %8 = vector.shape_cast %7 : vector<1x64x16xf32> to vector<64x16xf32>
    %c0_10 = arith.constant 0 : index
    %c0_11 = arith.constant 0 : index
    %9 = vector.load %arg8[%c0_10, %c0_11] : memref<144x16xf32, #tpu.memory_space<vmem>>, vector<16x16xf32>
    %cst_12 = arith.constant dense<0.000000e+00> : vector<64x16xf32>
    %10 = tpu.matmul %8, %9, %cst_12 {dimension_numbers = #tpu.dot_dimension_numbers<[1], [0], [0], [1], [0, 0, 1, 1], [], []>} : vector<64x16xf32>, vector<16x16xf32>, vector<64x16xf32> -> vector<64x16xf32>
    %11 = arith.addf %6, %10 : vector<64x16xf32>
    %c0_13 = arith.constant 0 : index
    %c0_14 = arith.constant 0 : index
    %c0_15 = arith.constant 0 : index
    %12 = vector.load %arg2[%c0_13, %c0_14, %c0_15] : memref<1x80x16xf32, #tpu.memory_space<vmem>>, vector<1x64x16xf32>
    %13 = vector.shape_cast %12 : vector<1x64x16xf32> to vector<64x16xf32>
    %c16 = arith.constant 16 : index
    %c0_16 = arith.constant 0 : index
    %14 = vector.load %arg7[%c16, %c0_16] : memref<144x16xf32, #tpu.memory_space<vmem>>, vector<16x16xf32>
    %cst_17 = arith.constant dense<0.000000e+00> : vector<64x16xf32>
    %15 = tpu.matmul %13, %14, %cst_17 {dimension_numbers = #tpu.dot_dimension_numbers<[1], [0], [0], [1], [0, 0, 1, 1], [], []>} : vector<64x16xf32>, vector<16x16xf32>, vector<64x16xf32> -> vector<64x16xf32>
    %16 = arith.addf %11, %15 : vector<64x16xf32>
    %c0_18 = arith.constant 0 : index
    %c0_19 = arith.constant 0 : index
    %c0_20 = arith.constant 0 : index
    %17 = vector.load %arg5[%c0_18, %c0_19, %c0_20] : memref<1x80x16xf32, #tpu.memory_space<vmem>>, vector<1x64x16xf32>
    %18 = vector.shape_cast %17 : vector<1x64x16xf32> to vector<64x16xf32>
    %c16_21 = arith.constant 16 : index
    %c0_22 = arith.constant 0 : index
    %19 = vector.load %arg8[%c16_21, %c0_22] : memref<144x16xf32, #tpu.memory_space<vmem>>, vector<16x16xf32>
    %cst_23 = arith.constant dense<0.000000e+00> : vector<64x16xf32>
    %20 = tpu.matmul %18, %19, %cst_23 {dimension_numbers = #tpu.dot_dimension_numbers<[1], [0], [0], [1], [0, 0, 1, 1], [], []>} : vector<64x16xf32>, vector<16x16xf32>, vector<64x16xf32> -> vector<64x16xf32>
    %21 = arith.addf %16, %20 : vector<64x16xf32>
    %c0_24 = arith.constant 0 : index
    %c0_25 = arith.constant 0 : index
    %c0_26 = arith.constant 0 : index
    %22 = vector.load %arg3[%c0_24, %c0_25, %c0_26] : memref<1x80x16xf32, #tpu.memory_space<vmem>>, vector<1x64x16xf32>
    %23 = vector.shape_cast %22 : vector<1x64x16xf32> to vector<64x16xf32>
    %c32 = arith.constant 32 : index
    %c0_27 = arith.constant 0 : index
    %24 = vector.load %arg7[%c32, %c0_27] : memref<144x16xf32, #tpu.memory_space<vmem>>, vector<16x16xf32>
    %cst_28 = arith.constant dense<0.000000e+00> : vector<64x16xf32>
    %25 = tpu.matmul %23, %24, %cst_28 {dimension_numbers = #tpu.dot_dimension_numbers<[1], [0], [0], [1], [0, 0, 1, 1], [], []>} : vector<64x16xf32>, vector<16x16xf32>, vector<64x16xf32> -> vector<64x16xf32>
    %26 = arith.addf %21, %25 : vector<64x16xf32>
    %c0_29 = arith.constant 0 : index
    %c0_30 = arith.constant 0 : index
    %c0_31 = arith.constant 0 : index
    %27 = vector.load %arg6[%c0_29, %c0_30, %c0_31] : memref<1x80x16xf32, #tpu.memory_space<vmem>>, vector<1x64x16xf32>
    %28 = vector.shape_cast %27 : vector<1x64x16xf32> to vector<64x16xf32>
    %c32_32 = arith.constant 32 : index
    %c0_33 = arith.constant 0 : index
    %29 = vector.load %arg8[%c32_32, %c0_33] : memref<144x16xf32, #tpu.memory_space<vmem>>, vector<16x16xf32>
    %cst_34 = arith.constant dense<0.000000e+00> : vector<64x16xf32>
    %30 = tpu.matmul %28, %29, %cst_34 {dimension_numbers = #tpu.dot_dimension_numbers<[1], [0], [0], [1], [0, 0, 1, 1], [], []>} : vector<64x16xf32>, vector<16x16xf32>, vector<64x16xf32> -> vector<64x16xf32>
    %31 = arith.addf %26, %30 : vector<64x16xf32>
    %c0_35 = arith.constant 0 : index
    %c8 = arith.constant 8 : index
    %c0_36 = arith.constant 0 : index
    %32 = vector.load %arg1[%c0_35, %c8, %c0_36] : memref<1x80x16xf32, #tpu.memory_space<vmem>>, vector<1x64x16xf32>
    %33 = vector.shape_cast %32 : vector<1x64x16xf32> to vector<64x16xf32>
    %c48 = arith.constant 48 : index
    %c0_37 = arith.constant 0 : index
    %34 = vector.load %arg7[%c48, %c0_37] : memref<144x16xf32, #tpu.memory_space<vmem>>, vector<16x16xf32>
    %cst_38 = arith.constant dense<0.000000e+00> : vector<64x16xf32>
    %35 = tpu.matmul %33, %34, %cst_38 {dimension_numbers = #tpu.dot_dimension_numbers<[1], [0], [0], [1], [0, 0, 1, 1], [], []>} : vector<64x16xf32>, vector<16x16xf32>, vector<64x16xf32> -> vector<64x16xf32>
    %36 = arith.addf %31, %35 : vector<64x16xf32>
    %c0_39 = arith.constant 0 : index
    %c8_40 = arith.constant 8 : index
    %c0_41 = arith.constant 0 : index
    %37 = vector.load %arg4[%c0_39, %c8_40, %c0_41] : memref<1x80x16xf32, #tpu.memory_space<vmem>>, vector<1x64x16xf32>
    %38 = vector.shape_cast %37 : vector<1x64x16xf32> to vector<64x16xf32>
    %c48_42 = arith.constant 48 : index
    %c0_43 = arith.constant 0 : index
    %39 = vector.load %arg8[%c48_42, %c0_43] : memref<144x16xf32, #tpu.memory_space<vmem>>, vector<16x16xf32>
    %cst_44 = arith.constant dense<0.000000e+00> : vector<64x16xf32>
    %40 = tpu.matmul %38, %39, %cst_44 {dimension_numbers = #tpu.dot_dimension_numbers<[1], [0], [0], [1], [0, 0, 1, 1], [], []>} : vector<64x16xf32>, vector<16x16xf32>, vector<64x16xf32> -> vector<64x16xf32>
    %41 = arith.addf %36, %40 : vector<64x16xf32>
    %c0_45 = arith.constant 0 : index
    %c8_46 = arith.constant 8 : index
    %c0_47 = arith.constant 0 : index
    %42 = vector.load %arg2[%c0_45, %c8_46, %c0_47] : memref<1x80x16xf32, #tpu.memory_space<vmem>>, vector<1x64x16xf32>
    %43 = vector.shape_cast %42 : vector<1x64x16xf32> to vector<64x16xf32>
    %c64 = arith.constant 64 : index
    %c0_48 = arith.constant 0 : index
    %44 = vector.load %arg7[%c64, %c0_48] : memref<144x16xf32, #tpu.memory_space<vmem>>, vector<16x16xf32>
    %cst_49 = arith.constant dense<0.000000e+00> : vector<64x16xf32>
    %45 = tpu.matmul %43, %44, %cst_49 {dimension_numbers = #tpu.dot_dimension_numbers<[1], [0], [0], [1], [0, 0, 1, 1], [], []>} : vector<64x16xf32>, vector<16x16xf32>, vector<64x16xf32> -> vector<64x16xf32>
    %46 = arith.addf %41, %45 : vector<64x16xf32>
    %c0_50 = arith.constant 0 : index
    %c8_51 = arith.constant 8 : index
    %c0_52 = arith.constant 0 : index
    %47 = vector.load %arg5[%c0_50, %c8_51, %c0_52] : memref<1x80x16xf32, #tpu.memory_space<vmem>>, vector<1x64x16xf32>
    %48 = vector.shape_cast %47 : vector<1x64x16xf32> to vector<64x16xf32>
    %c64_53 = arith.constant 64 : index
    %c0_54 = arith.constant 0 : index
    %49 = vector.load %arg8[%c64_53, %c0_54] : memref<144x16xf32, #tpu.memory_space<vmem>>, vector<16x16xf32>
    %cst_55 = arith.constant dense<0.000000e+00> : vector<64x16xf32>
    %50 = tpu.matmul %48, %49, %cst_55 {dimension_numbers = #tpu.dot_dimension_numbers<[1], [0], [0], [1], [0, 0, 1, 1], [], []>} : vector<64x16xf32>, vector<16x16xf32>, vector<64x16xf32> -> vector<64x16xf32>
    %51 = arith.addf %46, %50 : vector<64x16xf32>
    %c0_56 = arith.constant 0 : index
    %c8_57 = arith.constant 8 : index
    %c0_58 = arith.constant 0 : index
    %52 = vector.load %arg3[%c0_56, %c8_57, %c0_58] : memref<1x80x16xf32, #tpu.memory_space<vmem>>, vector<1x64x16xf32>
    %53 = vector.shape_cast %52 : vector<1x64x16xf32> to vector<64x16xf32>
    %c80 = arith.constant 80 : index
    %c0_59 = arith.constant 0 : index
    %54 = vector.load %arg7[%c80, %c0_59] : memref<144x16xf32, #tpu.memory_space<vmem>>, vector<16x16xf32>
    %cst_60 = arith.constant dense<0.000000e+00> : vector<64x16xf32>
    %55 = tpu.matmul %53, %54, %cst_60 {dimension_numbers = #tpu.dot_dimension_numbers<[1], [0], [0], [1], [0, 0, 1, 1], [], []>} : vector<64x16xf32>, vector<16x16xf32>, vector<64x16xf32> -> vector<64x16xf32>
    %56 = arith.addf %51, %55 : vector<64x16xf32>
    %c0_61 = arith.constant 0 : index
    %c8_62 = arith.constant 8 : index
    %c0_63 = arith.constant 0 : index
    %57 = vector.load %arg6[%c0_61, %c8_62, %c0_63] : memref<1x80x16xf32, #tpu.memory_space<vmem>>, vector<1x64x16xf32>
    %58 = vector.shape_cast %57 : vector<1x64x16xf32> to vector<64x16xf32>
    %c80_64 = arith.constant 80 : index
    %c0_65 = arith.constant 0 : index
    %59 = vector.load %arg8[%c80_64, %c0_65] : memref<144x16xf32, #tpu.memory_space<vmem>>, vector<16x16xf32>
    %cst_66 = arith.constant dense<0.000000e+00> : vector<64x16xf32>
    %60 = tpu.matmul %58, %59, %cst_66 {dimension_numbers = #tpu.dot_dimension_numbers<[1], [0], [0], [1], [0, 0, 1, 1], [], []>} : vector<64x16xf32>, vector<16x16xf32>, vector<64x16xf32> -> vector<64x16xf32>
    %61 = arith.addf %56, %60 : vector<64x16xf32>
    %c0_67 = arith.constant 0 : index
    %c16_68 = arith.constant 16 : index
    %c0_69 = arith.constant 0 : index
    %62 = vector.load %arg1[%c0_67, %c16_68, %c0_69] : memref<1x80x16xf32, #tpu.memory_space<vmem>>, vector<1x64x16xf32>
    %63 = vector.shape_cast %62 : vector<1x64x16xf32> to vector<64x16xf32>
    %c96 = arith.constant 96 : index
    %c0_70 = arith.constant 0 : index
    %64 = vector.load %arg7[%c96, %c0_70] : memref<144x16xf32, #tpu.memory_space<vmem>>, vector<16x16xf32>
    %cst_71 = arith.constant dense<0.000000e+00> : vector<64x16xf32>
    %65 = tpu.matmul %63, %64, %cst_71 {dimension_numbers = #tpu.dot_dimension_numbers<[1], [0], [0], [1], [0, 0, 1, 1], [], []>} : vector<64x16xf32>, vector<16x16xf32>, vector<64x16xf32> -> vector<64x16xf32>
    %66 = arith.addf %61, %65 : vector<64x16xf32>
    %c0_72 = arith.constant 0 : index
    %c16_73 = arith.constant 16 : index
    %c0_74 = arith.constant 0 : index
    %67 = vector.load %arg4[%c0_72, %c16_73, %c0_74] : memref<1x80x16xf32, #tpu.memory_space<vmem>>, vector<1x64x16xf32>
    %68 = vector.shape_cast %67 : vector<1x64x16xf32> to vector<64x16xf32>
    %c96_75 = arith.constant 96 : index
    %c0_76 = arith.constant 0 : index
    %69 = vector.load %arg8[%c96_75, %c0_76] : memref<144x16xf32, #tpu.memory_space<vmem>>, vector<16x16xf32>
    %cst_77 = arith.constant dense<0.000000e+00> : vector<64x16xf32>
    %70 = tpu.matmul %68, %69, %cst_77 {dimension_numbers = #tpu.dot_dimension_numbers<[1], [0], [0], [1], [0, 0, 1, 1], [], []>} : vector<64x16xf32>, vector<16x16xf32>, vector<64x16xf32> -> vector<64x16xf32>
    %71 = arith.addf %66, %70 : vector<64x16xf32>
    %c0_78 = arith.constant 0 : index
    %c16_79 = arith.constant 16 : index
    %c0_80 = arith.constant 0 : index
    %72 = vector.load %arg2[%c0_78, %c16_79, %c0_80] : memref<1x80x16xf32, #tpu.memory_space<vmem>>, vector<1x64x16xf32>
    %73 = vector.shape_cast %72 : vector<1x64x16xf32> to vector<64x16xf32>
    %c112 = arith.constant 112 : index
    %c0_81 = arith.constant 0 : index
    %74 = vector.load %arg7[%c112, %c0_81] : memref<144x16xf32, #tpu.memory_space<vmem>>, vector<16x16xf32>
    %cst_82 = arith.constant dense<0.000000e+00> : vector<64x16xf32>
    %75 = tpu.matmul %73, %74, %cst_82 {dimension_numbers = #tpu.dot_dimension_numbers<[1], [0], [0], [1], [0, 0, 1, 1], [], []>} : vector<64x16xf32>, vector<16x16xf32>, vector<64x16xf32> -> vector<64x16xf32>
    %76 = arith.addf %71, %75 : vector<64x16xf32>
    %c0_83 = arith.constant 0 : index
    %c16_84 = arith.constant 16 : index
    %c0_85 = arith.constant 0 : index
    %77 = vector.load %arg5[%c0_83, %c16_84, %c0_85] : memref<1x80x16xf32, #tpu.memory_space<vmem>>, vector<1x64x16xf32>
    %78 = vector.shape_cast %77 : vector<1x64x16xf32> to vector<64x16xf32>
    %c112_86 = arith.constant 112 : index
    %c0_87 = arith.constant 0 : index
    %79 = vector.load %arg8[%c112_86, %c0_87] : memref<144x16xf32, #tpu.memory_space<vmem>>, vector<16x16xf32>
    %cst_88 = arith.constant dense<0.000000e+00> : vector<64x16xf32>
    %80 = tpu.matmul %78, %79, %cst_88 {dimension_numbers = #tpu.dot_dimension_numbers<[1], [0], [0], [1], [0, 0, 1, 1], [], []>} : vector<64x16xf32>, vector<16x16xf32>, vector<64x16xf32> -> vector<64x16xf32>
    %81 = arith.addf %76, %80 : vector<64x16xf32>
    %c0_89 = arith.constant 0 : index
    %c16_90 = arith.constant 16 : index
    %c0_91 = arith.constant 0 : index
    %82 = vector.load %arg3[%c0_89, %c16_90, %c0_91] : memref<1x80x16xf32, #tpu.memory_space<vmem>>, vector<1x64x16xf32>
    %83 = vector.shape_cast %82 : vector<1x64x16xf32> to vector<64x16xf32>
    %c128 = arith.constant 128 : index
    %c0_92 = arith.constant 0 : index
    %84 = vector.load %arg7[%c128, %c0_92] : memref<144x16xf32, #tpu.memory_space<vmem>>, vector<16x16xf32>
    %cst_93 = arith.constant dense<0.000000e+00> : vector<64x16xf32>
    %85 = tpu.matmul %83, %84, %cst_93 {dimension_numbers = #tpu.dot_dimension_numbers<[1], [0], [0], [1], [0, 0, 1, 1], [], []>} : vector<64x16xf32>, vector<16x16xf32>, vector<64x16xf32> -> vector<64x16xf32>
    %86 = arith.addf %81, %85 : vector<64x16xf32>
    %c0_94 = arith.constant 0 : index
    %c16_95 = arith.constant 16 : index
    %c0_96 = arith.constant 0 : index
    %87 = vector.load %arg6[%c0_94, %c16_95, %c0_96] : memref<1x80x16xf32, #tpu.memory_space<vmem>>, vector<1x64x16xf32>
    %88 = vector.shape_cast %87 : vector<1x64x16xf32> to vector<64x16xf32>
    %c128_97 = arith.constant 128 : index
    %c0_98 = arith.constant 0 : index
    %89 = vector.load %arg8[%c128_97, %c0_98] : memref<144x16xf32, #tpu.memory_space<vmem>>, vector<16x16xf32>
    %cst_99 = arith.constant dense<0.000000e+00> : vector<64x16xf32>
    %90 = tpu.matmul %88, %89, %cst_99 {dimension_numbers = #tpu.dot_dimension_numbers<[1], [0], [0], [1], [0, 0, 1, 1], [], []>} : vector<64x16xf32>, vector<16x16xf32>, vector<64x16xf32> -> vector<64x16xf32>
    %91 = arith.addf %86, %90 : vector<64x16xf32>
    %cst_100 = arith.constant 0.000000e+00 : f32
    %92 = vector.broadcast %cst_100 : f32 to vector<64x16xf32>
    %93 = arith.maximumf %91, %92 : vector<64x16xf32>
    %c0_101 = arith.constant 0 : index
    %c0_102 = arith.constant 0 : index
    %c0_103 = arith.constant 0 : index
    %94 = vector.load %arg10[%c0_101, %c0_102, %c0_103] : memref<1x64x16xf32, #tpu.memory_space<vmem>>, vector<1x64x16xf32>
    %95 = vector.shape_cast %94 : vector<1x64x16xf32> to vector<64x16xf32>
    %96 = vector.shape_cast %93 : vector<64x16xf32> to vector<1x64x16xf32>
    tpu.vector_store %arg10[%c0_101, %c0_102, %c0_103], %96 {strides = array<i32>} : memref<1x64x16xf32, #tpu.memory_space<vmem>>, vector<1x64x16xf32>,
    return
  }
  func.func @transform_0(%arg0: i32) -> (i32, i32, i32) {
    %c0_i32 = arith.constant 0 : i32
    %c0_i32_0 = arith.constant 0 : i32
    %c0_i32_1 = arith.constant 0 : i32
    return %arg0, %c0_i32, %c0_i32_0 : i32, i32, i32
  }
  func.func @transform_1(%arg0: i32) -> (i32, i32, i32) {
    %c0_i32 = arith.constant 0 : i32
    %c0_i32_0 = arith.constant 0 : i32
    %c0_i32_1 = arith.constant 0 : i32
    return %arg0, %c0_i32, %c0_i32_0 : i32, i32, i32
  }
  func.func @transform_2(%arg0: i32) -> (i32, i32, i32) {
    %c0_i32 = arith.constant 0 : i32
    %c0_i32_0 = arith.constant 0 : i32
    %c0_i32_1 = arith.constant 0 : i32
    return %arg0, %c0_i32, %c0_i32_0 : i32, i32, i32
  }
  func.func @transform_3(%arg0: i32) -> (i32, i32, i32) {
    %c0_i32 = arith.constant 0 : i32
    %c0_i32_0 = arith.constant 0 : i32
    %c0_i32_1 = arith.constant 0 : i32
    return %arg0, %c0_i32, %c0_i32_0 : i32, i32, i32
  }
  func.func @transform_4(%arg0: i32) -> (i32, i32, i32) {
    %c0_i32 = arith.constant 0 : i32
    %c0_i32_0 = arith.constant 0 : i32
    %c0_i32_1 = arith.constant 0 : i32
    return %arg0, %c0_i32, %c0_i32_0 : i32, i32, i32
  }
  func.func @transform_5(%arg0: i32) -> (i32, i32, i32) {
    %c0_i32 = arith.constant 0 : i32
    %c0_i32_0 = arith.constant 0 : i32
    %c0_i32_1 = arith.constant 0 : i32
    return %arg0, %c0_i32, %c0_i32_0 : i32, i32, i32
  }
  func.func @transform_6(%arg0: i32) -> (i32, i32) {
    %c0_i32 = arith.constant 0 : i32
    %c0_i32_0 = arith.constant 0 : i32
    %c0_i32_1 = arith.constant 0 : i32
    return %c0_i32, %c0_i32_0 : i32, i32
  }
  func.func @transform_7(%arg0: i32) -> (i32, i32) {
    %c0_i32 = arith.constant 0 : i32
    %c0_i32_0 = arith.constant 0 : i32
    %c0_i32_1 = arith.constant 0 : i32
    return %c0_i32, %c0_i32_0 : i32, i32
  }
  func.func @transform_8(%arg0: i32) -> (i32, i32, i32) {
    %c0_i32 = arith.constant 0 : i32
    %c0_i32_0 = arith.constant 0 : i32
    %c0_i32_1 = arith.constant 0 : i32
    %c0_i32_2 = arith.constant 0 : i32
    return %c0_i32, %c0_i32_0, %c0_i32_1 : i32, i32, i32
  }
  func.func @transform_9(%arg0: i32) -> (i32, i32, i32) {
    %c0_i32 = arith.constant 0 : i32
    %c0_i32_0 = arith.constant 0 : i32
    %c0_i32_1 = arith.constant 0 : i32
    return %arg0, %c0_i32, %c0_i32_0 : i32, i32, i32
  }
}

</mosaic_0001>

<bundles_post_ra>
// kernel: endec_block_forward.5
= control target key start
LH: loop header
LB: loop body
LE: loop exit
PB: predicated region body
PF: predicated region fallthrough
CT: control target
= control target key end

     0   :  { %s1511_s27 = smov 0   ;;  %s1648_s0 = inlined_call_operand.vmem [shape: f32[4,20,16], index: 0, kind: input, shape index: {}]   ;;  %s1649_s1 = inlined_call_operand.vmem [shape: f32[4,20,16], index: 1, kind: input, shape index: {}]   ;;  %s1650_s2 = inlined_call_operand.vmem [shape: f32[4,20,16], index: 2, kind: input, shape index: {}]   ;;  %s1651_s3 = inlined_call_operand.vmem [shape: f32[4,20,16], index: 3, kind: input, shape index: {}]   ;;  %s1652_s4 = inlined_call_operand.vmem [shape: f32[4,20,16], index: 4, kind: input, shape index: {}]   ;;  %s1653_s5 = inlined_call_operand.vmem [shape: f32[4,20,16], index: 5, kind: input, shape index: {}]   ;;  %s1654_s6 = inlined_call_operand.vmem [shape: f32[144,32], index: 6, kind: input, shape index: {}]   ;;  %s1655_s7 = inlined_call_operand.vmem [shape: f32[1,32], index: 7, kind: input, shape index: {}]   ;;  %s1656_s8 = inlined_call_operand.vmem [shape: f32[4,16,32], index: 8, kind: output, shape index: {}]  }
   0x1 LB: > { %s1315_s28 = sadd.s32 4294967295, %s1464_s27   ;;  %p1319_p0 = scmp.ge.s32.totalorder %s1464_s27, 1  ;;  %s1464_s27 = sphi %s1511_s27, %s18_s27  }
   0x2   : > { %p312_p1 = scmp.lt.s32.totalorder %s1464_s27, 5 }
   0x4   : > { %p313_p2 = pnand %p1319_p0, %p312_p1 }
   0x5   : > { %p371_p3 = scmp.lt.s32.totalorder (!%p313_p2), %s1315_s28, 3 }
   0x6   : > { %316 = sbr.rel (%p313_p2) target bundleno = 241 (0xf1), region = 52 }
   0xb   : > { %v413_v0 = vld [vmem:[%s1654_s6 + $0x18] sm:$0xff]  ;;  %v409_v1 = vld [vmem:[%s1654_s6 + $0x8] sm:$0xff]  ;;  %v412_v2 = vld [vmem:[%s1654_s6 + $0x10] sm:$0xff]  ;;  %s1658_s28 = smov (!%p371_p3, %s1315_s28), 3  ;;  %vm414_vm0 = vcmask 130048   ;;  %vm1197_vm1 = vcmask 261120  }
   0xc   : > { %1386 = vmatprep.subr.mxu0 %v413_v0  ;;  %1393 = vmatprep.subr.mxu1 %v409_v1  ;;  %v408_v3 = vld [vmem:[%s1654_s6] sm:$0xff]  ;;  %v580_v4 = vld [vmem:[%s1654_s6 + $0x28] sm:$0xff]  ;;  %v667_v5 = vld [vmem:[%s1654_s6 + $0x38] sm:$0xff]  ;;  %s1540_s19 = smul.u32 24, %s1658_s28 }
   0xd   : > { %1387 = vmatpush3.msra.mxu0 %v413_v0  ;;  %1394 = vmatpush3.msra.mxu1 %v409_v1  ;;  %v579_v10 = vld [vmem:[%s1654_s6 + $0x20] sm:$0xff]  ;;  %v666_v11 = vld [vmem:[%s1654_s6 + $0x30] sm:$0xff]  ;;  %v754_v14 = vld [vmem:[%s1654_s6 + $0x48] sm:$0xff] }
   0xe   : > { %1388 = vmatprep.subr.mxu0 %v412_v2  ;;  %1395 = vmatprep.subr.mxu1 %v408_v3  ;;  %s1546_s22 = scalar_lea.vmem %s1649_s1, %s1540_s19  ;;  %s1552_s25 = scalar_lea.vmem %s1648_s0, %s1540_s19  ;;  %v841_v17 = vld [vmem:[%s1654_s6 + $0x58] sm:$0xff]  ;;  %v753_v18 = vld [vmem:[%s1654_s6 + $0x40] sm:$0xff]  ;;  %v840_v19 = vld [vmem:[%s1654_s6 + $0x50] sm:$0xff] }
   0xf   : > { %1389 = vmatpush3.msra.mxu0 %v412_v2  ;;  %1396 = vmatpush3.msra.mxu1 %v408_v3  ;;  %v410_v6 = vld [vmem:[%s1546_s22] sm:$0xff]  ;;  %v411_v8 = vld [vmem:[%s1546_s22 + $0x8] sm:$0xff]  ;;  %s1561_s30 = scalar_lea.vmem %s1650_s2, %s1540_s19  ;;  %s390_s11 = scalar_lea.vmem %s1651_s3, %s1540_s19  ;;  %v1015_v25 = vld [vmem:[%s1654_s6 + $0x78] sm:$0xff] }
  0x10   : > { %1400 = vmatprep.subr.mxu0 %v580_v4  ;;  %1407 = vmatprep.subr.mxu1 %v667_v5  ;;  %v406_v7 = vld [vmem:[%s1552_s25] sm:$0xff]  ;;  %v407_v9 = vld [vmem:[%s1552_s25 + $0x8] sm:$0xff]  ;;  %s395_s21 = scalar_lea.vmem %s1652_s4, %s1540_s19  ;;  %s400_s12 = scalar_lea.vmem %s1653_s5, %s1540_s19  ;;  %v1014_v27 = vld [vmem:[%s1654_s6 + $0x70] sm:$0xff] }
  0x11   : > { %1390 = vmatprep.mubr.msk.f32.mxu0 %vm414_vm0, %v410_v6  ;;  %1397 = vmatprep.mubr.msk.f32.mxu1 %vm414_vm0, %v406_v7  ;;  %v577_v12 = vld [vmem:[%s1561_s30] sm:$0xff]  ;;  %v578_v15 = vld [vmem:[%s1561_s30 + $0x8] sm:$0xff] }
  0x12   : > { %1391 = vmatmul.mubr.msk.f32.vlgmr.msra.gmra.mxu0 %vm414_vm0, %v411_v8  ;;  %1398 = vmatmul.mubr.msk.f32.vlgmr.msra.gmra.mxu1 %vm414_vm0, %v407_v9  ;;  %v664_v13 = vld [vmem:[%s390_s11] sm:$0xff]  ;;  %v665_v16 = vld [vmem:[%s390_s11 + $0x8] sm:$0xff] }
  0x13   : > { %1401 = vmatpush3.msra.mxu0 %v580_v4  ;;  %1408 = vmatpush3.msra.mxu1 %v667_v5  ;;  %v751_v20 = vld [vmem:[%s395_s21] sm:$0xff]  ;;  %v752_v22 = vld [vmem:[%s395_s21 + $0x8] sm:$0xff] }
  0x14   : > { %1402 = vmatprep.subr.mxu0 %v579_v10  ;;  %1409 = vmatprep.subr.mxu1 %v666_v11  ;;  %v838_v21 = vld [vmem:[%s400_s12] sm:$0xff]  ;;  %v928_v23 = vld [vmem:[%s1654_s6 + $0x68] sm:$0xff] }
  0x15   : > { %1403 = vmatpush3.msra.mxu0 %v579_v10  ;;  %1404 = vmatprep.mubr.msk.f32.mxu0 %vm414_vm0, %v577_v12  ;;  %v839_v24 = vld [vmem:[%s400_s12 + $0x8] sm:$0xff]  ;;  %v927_v26 = vld [vmem:[%s1654_s6 + $0x60] sm:$0xff] }
  0x16   : > { %1410 = vmatpush3.msra.mxu1 %v666_v11  ;;  %1411 = vmatprep.mubr.msk.f32.mxu1 %vm414_vm0, %v664_v13  ;;  %v925_v28 = vld [vmem:[%s1552_s25 + $0x4] sm:$0xff]  ;;  %v926_v31 = vld [vmem:[%s1552_s25 + $0xc] sm:$0xff]  ;;  %v1346_v2 = vld [vmem:[%s1655_s7] ss:$0 sm:$0xff] }
  0x17   : > { %1414 = vmatprep.subr.mxu0 %v754_v14  ;;  %1405 = vmatmul.mubr.msk.f32.vlgmr.msra.gmra.mxu0 %vm414_vm0, %v578_v15  ;;  %v1012_v29 = vld [vmem:[%s1546_s22 + $0x4] sm:$0xff]  ;;  %v1013_v32 = vld [vmem:[%s1546_s22 + $0xc] sm:$0xff] }
  0x18   : > { %1412 = vmatmul.mubr.msk.f32.vlgmr.msra.gmra.mxu1 %vm414_vm0, %v665_v16  ;;  %1415 = vmatpush3.msra.mxu0 %v754_v14  ;;  %v1102_v30 = vld [vmem:[%s1654_s6 + $0x88] sm:$0xff]  ;;  %v1101_v33 = vld [vmem:[%s1654_s6 + $0x80] sm:$0xff] }
  0x19   : > { %1421 = vmatprep.subr.mxu1 %v841_v17  ;;  %1416 = vmatprep.subr.mxu0 %v753_v18  ;;  %v1099_v34 = vld [vmem:[%s1561_s30 + $0x4] sm:$0xff]  ;;  %v1100_v35 = vld [vmem:[%s1561_s30 + $0xc] sm:$0xff]  ;;  %s1349_s30 = sshll.u32 %s1658_s28, 4 }
  0x1a   : > { %1422 = vmatpush3.msra.mxu1 %v841_v17  ;;  %1417 = vmatpush3.msra.mxu0 %v753_v18  ;;  %s405_s12 = scalar_lea.vmem %s1656_s8, %s1349_s30 }
  0x1b   : > { %1423 = vmatprep.subr.mxu1 %v840_v19  ;;  %1418 = vmatprep.mubr.msk.f32.mxu0 %vm414_vm0, %v751_v20 }
  0x1c   : > { %1424 = vmatpush3.msra.mxu1 %v840_v19  ;;  %1425 = vmatprep.mubr.msk.f32.mxu1 %vm414_vm0, %v838_v21 }
  0x1d   : > { %1428 = vmatprep.subr.mxu0 %v928_v23  ;;  %1419 = vmatmul.mubr.msk.f32.vlgmr.msra.gmra.mxu0 %vm414_vm0, %v752_v22 }
  0x1e   : > { %1426 = vmatmul.mubr.msk.f32.vlgmr.msra.gmra.mxu1 %vm414_vm0, %v839_v24  ;;  %1429 = vmatpush3.msra.mxu0 %v928_v23 }
  0x1f   : > { %1435 = vmatprep.subr.mxu1 %v1015_v25  ;;  %1430 = vmatprep.subr.mxu0 %v927_v26 }
  0x20   : > { %1436 = vmatpush3.msra.mxu1 %v1015_v25  ;;  %1431 = vmatpush3.msra.mxu0 %v927_v26 }
  0x21   : > { %1437 = vmatprep.subr.mxu1 %v1014_v27  ;;  %1432 = vmatprep.mubr.msk.f32.mxu0 %vm414_vm0, %v925_v28 }
  0x22   : > { %1438 = vmatpush3.msra.mxu1 %v1014_v27  ;;  %1439 = vmatprep.mubr.msk.f32.mxu1 %vm414_vm0, %v1012_v29 }
  0x23   : > { %1442 = vmatprep.subr.mxu0 %v1102_v30  ;;  %1433 = vmatmul.mubr.msk.f32.vlgmr.msra.gmra.mxu0 %vm414_vm0, %v926_v31 }
  0x24   : > { %1440 = vmatmul.mubr.msk.f32.vlgmr.msra.gmra.mxu1 %vm414_vm0, %v1013_v32  ;;  %1443 = vmatpush3.msra.mxu0 %v1102_v30 }
  0x25   : > { %1444 = vmatprep.subr.mxu0 %v1101_v33  ;;  %1446 = vmatprep.mubr.msk.f32.mxu0 %vm414_vm0, %v1099_v34 }
  0x26   : > { %1445 = vmatpush3.msra.mxu0 %v1101_v33 }
  0x27   : > { %1447 = vmatmul.mubr.msk.f32.vlgmr.msra.gmra.mxu0 %vm414_vm0, %v1100_v35 }
  0xd2   : > { %v1392_v36 = vpop.f32.mrf.mxu0  ;;  %v1399_v37 = vpop.f32.mrf.mxu1 }
  0xd3   : > { %v574_v40 = vadd.f32 %v1399_v37, %v1392_v36 }
  0xd4   : > { %v487_v38 = vpop.f32.mrf.mxu0  ;;  %v568_v39 = vpop.f32.mrf.mxu1 }
  0xd5   : > { %v569_v42 = vadd.f32 %v568_v39, %v487_v38 }
  0xd7   : > { %v1406_v41 = vpop.f32.mrf.mxu0 }
  0xd8   : > { %v663_v43 = vadd.f32 %v1406_v41, %v574_v40  ;;  %v1413_v44 = vpop.f32.mrf.mxu1 }
  0xd9   : > { %v653_v45 = vpop.f32.mrf.mxu0 }
  0xda   : > { %v750_v46 = vadd.f32 %v1413_v44, %v663_v43  ;;  %v662_v47 = vadd.f32 %v653_v45, %v569_v42  ;;  %v740_v48 = vpop.f32.mrf.mxu1 }
  0xdc   : > { %v749_v49 = vadd.f32 %v740_v48, %v662_v47 }
  0xdd   : > { %v1420_v50 = vpop.f32.mrf.mxu0 }
  0xde   : > { %v837_v51 = vadd.f32 %v1420_v50, %v750_v46  ;;  %v1427_v52 = vpop.f32.mrf.mxu1 }
  0xdf   : > { %v827_v53 = vpop.f32.mrf.mxu0 }
  0xe0   : > { %v924_v54 = vadd.f32 %v1427_v52, %v837_v51  ;;  %v836_v55 = vadd.f32 %v827_v53, %v749_v49  ;;  %v914_v56 = vpop.f32.mrf.mxu1 }
  0xe2   : > { %v923_v57 = vadd.f32 %v914_v56, %v836_v55 }
  0xe3   : > { %v1434_v58 = vpop.f32.mrf.mxu0 }
  0xe4   : > { %v1011_v59 = vadd.f32 %v1434_v58, %v924_v54  ;;  %v1441_v60 = vpop.f32.mrf.mxu1 }
  0xe5   : > { %v1001_v61 = vpop.f32.mrf.mxu0 }
  0xe6   : > { %v1098_v62 = vadd.f32 %v1441_v60, %v1011_v59  ;;  %v1010_v63 = vadd.f32 %v1001_v61, %v923_v57  ;;  %v1088_v0 = vpop.f32.mrf.mxu1 }
  0xe7   : > { %v1448_v1 = vpop.f32.mrf.mxu0 }
  0xe8   : > { %v1097_v3 = vadd.f32 %v1088_v0, %v1010_v63  ;;  %v1185_v4 = vadd.f32 %v1448_v1, %v1098_v62 }
  0xe9   : > { %v1175_v5 = vpop.f32.mrf.mxu0 }
  0xea   : > { %v1194_v6 = vadd.f32 %v1346_v2, %v1185_v4  ;;  %v1184_v7 = vadd.f32 %v1175_v5, %v1097_v3 }
  0xec   : > { %v1196_v8 = vmax.f32 %v1194_v6, 0.0  ;;  %v1193_v9 = vadd.f32 %v1346_v2, %v1184_v7 }
  0xee   : > { %1199 = vst.msk [vmem:[%s405_s12 + $0x8] sm:$0xff] %vm1197_vm1, %v1196_v8  ;;  %v1195_v10 = vmax.f32 %v1193_v9, 0.0 }
  0xf0   : > { %1198 = vst.msk [vmem:[%s405_s12] sm:$0xff] %vm1197_vm1, %v1195_v10 }
  0xf1 PF: > { %s18_s27 = sadd.s32 1, %s1464_s27  }
  0xf2   : > { %p15_p4 = scmp.ge.s32.totalorder %s18_s27, 6  }
  0xf4   :  { %17 = sbr.rel (!%p15_p4) target bundleno = 1 (0x1), region = 97 }

// kernel: tile.13
= control target key start
LH: loop header
LB: loop body
LE: loop exit
PB: predicated region body
PF: predicated region fallthrough
CT: control target
= control target key end

     0   :  { %s28_s0 = inlined_call_operand.vmem [shape: f32[16], index: 0, kind: input, shape index: {}]   ;;  %s29_s1 = inlined_call_operand.vmem [shape: f32[9,16], index: 1, kind: output, shape index: {}]  }
   0x1   :  { %v4_v0 = vld [vmem:[%s28_s0] ss:$0 sm:$0xff] }
   0x2   :  { %5 = vst [vmem:[%s29_s1] sm:$0xff] %v4_v0  ;;  %8 = vst [vmem:[%s29_s1 + $0x8] sm:$0xff] %v4_v0 }

// kernel: mul.17
= control target key start
LH: loop header
LB: loop body
LE: loop exit
PB: predicated region body
PF: predicated region fallthrough
CT: control target
= control target key end

     0   :  { %s70_s10 = smov 112   ;;  %s71_s11 = smov 80   ;;  %vm4_vm0 = vcmask 130048   ;;  %vm10_vm1 = vcmask 1048448   ;;  %vm16_vm2 = vcmask 917248   ;;  %vm22_vm3 = vcmask 786048   ;;  %s114_s0 = inlined_call_operand.vmem [shape: f32[9,16], index: 0, kind: input, shape index: {}]   ;;  %s115_s1 = inlined_call_operand.vmem [shape: f32[144], index: 1, kind: output, shape index: {}]  }
   0x1   :  { %v56_v0 = vld [vmem:[%s114_s0 + $0x7] sm:$0x1]   ;;  %v58_v1 = vld [vmem:[%s114_s0 + $0x5] sm:$0x1]   ;;  %v57_v2 = vld [vmem:[%s114_s0 + $0x6] sm:$0x1]  }
   0x2   :  { %8 = vrot.lane.b32.xlu0 %v56_v0, %s70_s10  ;;  %20 = vrot.lane.b32.xlu1 %v58_v1, %s71_s11  ;;  %v59_v3 = vld [vmem:[%s114_s0 + $0x4] sm:$0x1]   ;;  %s2_s16 = smov 3  ;;  %s72_s19 = smov 96   ;;  %v60_v5 = vld [vmem:[%s114_s0 + $0x3] sm:$0x1]  }
   0x3   :  { %v3_v4 = vld [vmem:[%s114_s0] ss:$8 sm:%s2_s16]   ;;  %s73_s20 = smov 64   ;;  %v61_v6 = vld [vmem:[%s114_s0 + $0x2] sm:$0x1]   ;;  %s74_s25 = smov 48  }
   0x4   :  { %5 = vst.msk [vmem:[#allocation0] sm:$0x3] %vm4_vm0, %v3_v4   ;;  %s75_s26 = smov 32   ;;  %v62_v7 = vld [vmem:[%s114_s0 + $0x1] sm:$0x1]   ;;  %s76_s0 = smov 16  }
   0x5   :  { %vm28_vm4 = vcmask 654848   ;;  %vm34_vm5 = vcmask 523648   ;;  %vm40_vm6 = vcmask 392448   ;;  %vm46_vm7 = vcmask 261248  }
   0x6   :  { %14 = vrot.lane.b32.xlu0 %v57_v2, %s72_s19  ;;  %26 = vrot.lane.b32.xlu1 %v59_v3, %s73_s20 }
   0xa   :  { %32 = vrot.lane.b32.xlu0 %v60_v5, %s74_s25  ;;  %38 = vrot.lane.b32.xlu1 %v61_v6, %s75_s26 }
   0xe   :  { %44 = vrot.lane.b32.xlu0 %v62_v7, %s76_s0 }
  0x74   :  { %v9_v8 = vpop.permute.xlu0 %8   ;;  %v21_v9 = vpop.permute.xlu1 %20  }
  0x75   :  { %11 = vst.msk [vmem:[#allocation0] sm:$0x1] %vm10_vm1, %v9_v8  }
  0x78   :  { %v15_v10 = vpop.permute.xlu0 %14   ;;  %v27_v11 = vpop.permute.xlu1 %26  }
  0x79   :  { %17 = vst.msk [vmem:[#allocation0] sm:$0x1] %vm16_vm2, %v15_v10  }
  0x7a   :  { %23 = vst.msk [vmem:[#allocation0] sm:$0x1] %vm22_vm3, %v21_v9  }
  0x7b   :  { %29 = vst.msk [vmem:[#allocation0] sm:$0x1] %vm28_vm4, %v27_v11  }
  0x7c   :  { %v33_v12 = vpop.permute.xlu0 %32   ;;  %v39_v13 = vpop.permute.xlu1 %38  }
  0x7d   :  { %35 = vst.msk [vmem:[#allocation0] sm:$0x1] %vm34_vm5, %v33_v12  }
  0x7e   :  { %41 = vst.msk [vmem:[#allocation0] sm:$0x1] %vm40_vm6, %v39_v13  }
  0x80   :  { %v45_v14 = vpop.permute.xlu0 %44  }
  0x81   :  { %47 = vst.msk [vmem:[#allocation0] sm:$0x1] %vm46_vm7, %v45_v14  }
  0x88   :  { %v52_v15 = vld [vmem:[#allocation0] sm:$0x3] }
  0x89   :  { %55 = vst [vmem:[%s115_s1] sm:$0x3] %v52_v15 }

// kernel: endec_block_forward.6
= control target key start
LH: loop header
LB: loop body
LE: loop exit
PB: predicated region body
PF: predicated region fallthrough
CT: control target
= control target key end

     0   :  { %s4089_s17 = smov 0   ;;  %s4091_s18 = smov 0   ;;  %s4671_s0 = inlined_call_operand.vmem [shape: f32[2,4,24,32], index: 0, kind: input, shape index: {}, may-alias: {0,1,2}]   ;;  %s4672_s1 = inlined_call_operand.vmem [shape: f32[2,4,24,32], index: 1, kind: input, shape index: {}, may-alias: {0,1,2}]   ;;  %s4673_s2 = inlined_call_operand.vmem [shape: f32[2,4,24,32], index: 2, kind: input, shape index: {}, may-alias: {0,1,2}]   ;;  %s4674_s3 = inlined_call_operand.vmem [shape: f32[2,4,24,32], index: 3, kind: input, shape index: {}, may-alias: {3,4,5}]   ;;  %s4675_s4 = inlined_call_operand.vmem [shape: f32[2,4,24,32], index: 4, kind: input, shape index: {}, may-alias: {3,4,5}]   ;;  %s4676_s5 = inlined_call_operand.vmem [shape: f32[2,4,24,32], index: 5, kind: input, shape index: {}, may-alias: {3,4,5}]   ;;  %s4677_s6 = inlined_call_operand.vmem [shape: f32[2,4,24,32], index: 6, kind: input, shape index: {}, may-alias: {6,7,8}]   ;;  %s4678_s7 = inlined_call_operand.vmem [shape: f32[2,4,24,32], index: 7, kind: input, shape index: {}, may-alias: {6,7,8}]   ;;  %s4679_s8 = inlined_call_operand.vmem [shape: f32[2,4,24,32], index: 8, kind: input, shape index: {}, may-alias: {6,7,8}]   ;;  %s4680_s9 = inlined_call_operand.vmem [shape: f32[864,64], index: 9, kind: input, shape index: {}]   ;;  %s4681_s10 = inlined_call_operand.vmem [shape: f32[1,64], index: 10, kind: input, shape index: {}]   ;;  %s4682_s11 = inlined_call_operand.vmem [shape: f32[2,2,16,64], index: 11, kind: output, shape index: {}]  }
   0x1   :  { %s4093_s19 = smov 0   ;;  %s4095_s20 = smov 0  }
   0x2   :  { %s4097_s21 = smov 0  }
   0x3 LB: > { %s30_s22 = sadd.s32 1, %s4019_s19  ;;  %s33_s23 = sadd.s32 1, %s4023_s20  ;;  %s4027_s21 = sphi %s4097_s21, %s21_s21   ;;  %s4023_s20 = sphi %s4095_s20, %s4688_s20   ;;  %s4019_s19 = sphi %s4093_s19, %s4687_s19   ;;  %s4015_s18 = sphi %s4091_s18, %s4686_s18   ;;  %s4011_s17 = sphi %s4089_s17, %s4685_s17  }
   0x4   : > { %p31_p0 = scmp.ge.s32.totalorder %s30_s22, 2  ;;  %p3416_p1 = scmp.ge.s32.totalorder %s4027_s21, 1 }
   0x5   : > { %p509_p2 = scmp.lt.s32.totalorder %s4027_s21, 5 }
   0x6   : > { %s4690_s22 = smov (%p31_p0, %s30_s22), 0  ;;  %s4692_s23 = smov (!%p31_p0, %s33_s23), %s4023_s20 }
   0x7   : > { %p510_p3 = pnand %p3416_p1, %p509_p2  ;;  %p35_p4 = scmp.ge.s32.totalorder %s4692_s23, 2 }
   0x8   : > { %p635_p5 = scmp.lt.s32.totalorder (!%p510_p3), %s4015_s18, 1  ;;  %p637_p6 = scmp.lt.s32.totalorder (!%p510_p3), %s4011_s17, 3 }
   0x9   : > { %s4694_s23 = smov (%p35_p4, %s4692_s23), 0  ;;  %513 = sbr.rel (%p510_p3) target bundleno = 352 (0x160), region = 64 }
   0xa   : > { %4683 = sst [smem:[#allocation2_spill]] %s4694_s23  ;;  %s655_s23 = sadd.s32 (!%p510_p3), 2, %s4011_s17 }
   0xb   : > { %p658_p8 = scmp.lt.s32.totalorder (!%p510_p3), %s655_s23, 3  ;;  %p730_p9 = scmp.lt.s32.totalorder (!%p510_p3), %s4011_s17, 1 }
   0xe   : > { %v748_v0 = vld [vmem:[%s4680_s9 + $0x38] sm:$0xff]  ;;  %v747_v2 = vld [vmem:[%s4680_s9 + $0x30] sm:$0xff]  ;;  %v746_v4 = vld [vmem:[%s4680_s9 + $0x28] sm:$0xff]  ;;  %s4696_s18 = smov (!%p635_p5, %s4015_s18), 1  ;;  %vm749_vm0 = vcmask 261120   ;;  %s4700_s23 = smov (!%p658_p8, %s655_s23), 3 }
   0xf   : > { %v742_v1 = vld [vmem:[%s4680_s9 + $0x18] sm:$0xff]  ;;  %3648 = vmatprep.subr.mxu0 %v748_v0  ;;  %v741_v3 = vld [vmem:[%s4680_s9 + $0x10] sm:$0xff]  ;;  %v740_v5 = vld [vmem:[%s4680_s9 + $0x8] sm:$0xff]  ;;  %s638_s24 = scalar_select %p637_p6, %s4011_s17, 3  ;;  %vm3146_vm1 = vcmask 523264  }
  0x10   : > { %3659 = vmatprep.subr.mxu1 %v742_v1  ;;  %3649 = vmatpush3.msra.mxu0 %v748_v0  ;;  %v745_v6 = vld [vmem:[%s4680_s9 + $0x20] sm:$0xff]  ;;  %s4150_s29 = smul.u32 12, %s4696_s18  ;;  %v917_v8 = vld [vmem:[%s4680_s9 + $0x58] sm:$0xff]  ;;  %v916_v14 = vld [vmem:[%s4680_s9 + $0x50] sm:$0xff] }
  0x11   : > { %3660 = vmatpush3.msra.mxu1 %v742_v1  ;;  %3650 = vmatprep.subr.mxu0 %v747_v2  ;;  %v739_v7 = vld [vmem:[%s4680_s9] sm:$0xff]  ;;  %s3945_s30 = smul.u32 3, %s638_s24  ;;  %v1006_v9 = vld [vmem:[%s4680_s9 + $0x78] sm:$0xff]  ;;  %v1005_v15 = vld [vmem:[%s4680_s9 + $0x70] sm:$0xff] }
  0x12   : > { %3661 = vmatprep.subr.mxu1 %v741_v3  ;;  %3651 = vmatpush3.msra.mxu0 %v747_v2  ;;  %v915_v16 = vld [vmem:[%s4680_s9 + $0x48] sm:$0xff]  ;;  %v914_v19 = vld [vmem:[%s4680_s9 + $0x40] sm:$0xff]  ;;  %v1095_v22 = vld [vmem:[%s4680_s9 + $0x98] sm:$0xff]  ;;  %s3948_s27 = smul.u32 3, %s4700_s23 }
  0x13   : > { %3662 = vmatpush3.msra.mxu1 %v741_v3  ;;  %3652 = vmatprep.subr.mxu0 %v746_v4  ;;  %s641_s16 = sadd.s32 %s4150_s29, %s3945_s30  ;;  %v1004_v17 = vld [vmem:[%s4680_s9 + $0x68] sm:$0xff]  ;;  %v1003_v20 = vld [vmem:[%s4680_s9 + $0x60] sm:$0xff]  ;;  %v1094_v25 = vld [vmem:[%s4680_s9 + $0x90] sm:$0xff] }
  0x14   : > { %3663 = vmatprep.subr.mxu1 %v740_v5  ;;  %3653 = vmatpush3.msra.mxu0 %v746_v4  ;;  %s3417_s25 = sshll.u32 %s641_s16, 3  ;;  %v1184_v26 = vld [vmem:[%s4680_s9 + $0xb8] sm:$0xff]  ;;  %v1093_v27 = vld [vmem:[%s4680_s9 + $0x88] sm:$0xff]  ;;  %v1183_v28 = vld [vmem:[%s4680_s9 + $0xb0] sm:$0xff] }
  0x15   : > { %3664 = vmatpush3.msra.mxu1 %v740_v5  ;;  %3654 = vmatprep.subr.mxu0 %v745_v6  ;;  %s4162_s24 = scalar_lea.vmem %s4674_s3, %s3417_s25  ;;  %s4167_s12 = scalar_lea.vmem %s4671_s0, %s3417_s25  ;;  %v1092_v29 = vld [vmem:[%s4680_s9 + $0x80] sm:$0xff]  ;;  %v1182_v30 = vld [vmem:[%s4680_s9 + $0xa8] sm:$0xff]  ;;  %v1273_v34 = vld [vmem:[%s4680_s9 + $0xd8] sm:$0xff] }
  0x16   : > { %3665 = vmatprep.subr.mxu1 %v739_v7  ;;  %3655 = vmatpush3.msra.mxu0 %v745_v6  ;;  %v743_v10 = vld [vmem:[%s4162_s24] sm:$0xff]  ;;  %v4172_v12 = vld [vmem:[%s4162_s24 + $0x8] sm:$0xff]  ;;  %s4188_s26 = scalar_lea.vmem %s4677_s6, %s3417_s25  ;;  %s644_s25 = sadd.s32 1, %s4011_s17  ;;  %v1272_v37 = vld [vmem:[%s4680_s9 + $0xd0] sm:$0xff] }
  0x17   : > { %3666 = vmatpush3.msra.mxu1 %v739_v7  ;;  %3670 = vmatprep.subr.mxu0 %v917_v8  ;;  %v737_v11 = vld [vmem:[%s4167_s12] sm:$0xff]  ;;  %v4177_v13 = vld [vmem:[%s4167_s12 + $0x8] sm:$0xff]  ;;  %p647_p7 = scmp.lt.s32.totalorder %s644_s25, 3  ;;  %v1362_v38 = vld [vmem:[%s4680_s9 + $0xf8] sm:$0xff]  ;;  %s4702_s17 = smov (!%p730_p9, %s4011_s17), 1 }
  0x18   : > { %3681 = vmatprep.subr.mxu1 %v1006_v9  ;;  %3656 = vmatprep.mubr.msk.f32.mxu0 %vm749_vm0, %v743_v10  ;;  %v912_v18 = vld [vmem:[%s4188_s26] sm:$0xff]  ;;  %v4209_v21 = vld [vmem:[%s4188_s26 + $0x8] sm:$0xff]  ;;  %v1361_v40 = vld [vmem:[%s4680_s9 + $0xf0] sm:$0xff] }
  0x19   : > { %3667 = vmatprep.mubr.msk.f32.mxu1 %vm749_vm0, %v737_v11  ;;  %3657 = vmatmul.mubr.msk.f32.vlgmr.msra.gmra.mxu0 %vm749_vm0, %v4172_v12  ;;  %v1001_v23 = vld [vmem:[%s4167_s12 + $0x4] sm:$0xff]  ;;  %v1002_v24 = vld [vmem:[%s4167_s12 + $0xc] sm:$0xff]  ;;  %s4698_s25 = smov (!%p647_p7, %s644_s25), 3  ;;  %v1451_v45 = vld [vmem:[%s4680_s9 + $0x118] sm:$0xff] }
  0x1a   : > { %3668 = vmatmul.mubr.msk.f32.vlgmr.msra.gmra.mxu1 %vm749_vm0, %v4177_v13  ;;  %3671 = vmatpush3.msra.mxu0 %v917_v8  ;;  %v1090_v31 = vld [vmem:[%s4162_s24 + $0x4] sm:$0xff]  ;;  %v1091_v32 = vld [vmem:[%s4162_s24 + $0xc] sm:$0xff]  ;;  %s3947_s13 = smul.u32 3, %s4698_s25  ;;  %v1540_v48 = vld [vmem:[%s4680_s9 + $0x138] sm:$0xff] }
  0x1b   : > { %3682 = vmatpush3.msra.mxu1 %v1006_v9  ;;  %3672 = vmatprep.subr.mxu0 %v916_v14  ;;  %v1181_v33 = vld [vmem:[%s4680_s9 + $0xa0] sm:$0xff]  ;;  %v1180_v36 = vld [vmem:[%s4188_s26 + $0xc] sm:$0xff]  ;;  %v1629_v55 = vld [vmem:[%s4680_s9 + $0x158] sm:$0xff] }
  0x1c   : > { %3683 = vmatprep.subr.mxu1 %v1005_v15  ;;  %3673 = vmatpush3.msra.mxu0 %v916_v14  ;;  %v1179_v35 = vld [vmem:[%s4188_s26 + $0x4] sm:$0xff]  ;;  %v1269_v43 = vld [vmem:[%s4167_s12 + $0x10] sm:$0xff]  ;;  %s651_s25 = sadd.s32 %s3947_s13, %s4150_s29  ;;  %v1718_v59 = vld [vmem:[%s4680_s9 + $0x178] sm:$0xff] }
  0x1d   : > { %3684 = vmatpush3.msra.mxu1 %v1005_v15  ;;  %3674 = vmatprep.subr.mxu0 %v915_v16  ;;  %v1271_v39 = vld [vmem:[%s4680_s9 + $0xc8] sm:$0xff]  ;;  %v1270_v41 = vld [vmem:[%s4680_s9 + $0xc0] sm:$0xff]  ;;  %v1358_v46 = vld [vmem:[%s4162_s24 + $0x10] sm:$0xff]  ;;  %s4298_s16 = sshll.u32 %s651_s25, 3 }
  0x1e   : > { %3685 = vmatprep.subr.mxu1 %v1004_v17  ;;  %3675 = vmatpush3.msra.mxu0 %v915_v16  ;;  %v1360_v42 = vld [vmem:[%s4680_s9 + $0xe8] sm:$0xff]  ;;  %v1359_v44 = vld [vmem:[%s4680_s9 + $0xe0] sm:$0xff]  ;;  %v1450_v47 = vld [vmem:[%s4680_s9 + $0x110] sm:$0xff]  ;;  %s4310_s25 = scalar_lea.vmem %s4672_s1, %s4298_s16  ;;  %s4358_s14 = scalar_lea.vmem %s4678_s7, %s4298_s16 }
  0x1f   : > { %3678 = vmatprep.mubr.msk.f32.mxu0 %vm749_vm0, %v912_v18  ;;  %3676 = vmatprep.subr.mxu0 %v914_v19  ;;  %v1449_v49 = vld [vmem:[%s4680_s9 + $0x108] sm:$0xff]  ;;  %v1539_v50 = vld [vmem:[%s4680_s9 + $0x130] sm:$0xff]  ;;  %v1448_v51 = vld [vmem:[%s4680_s9 + $0x100] sm:$0xff] }
  0x20   : > { %3686 = vmatpush3.msra.mxu1 %v1004_v17  ;;  %3677 = vmatpush3.msra.mxu0 %v914_v19  ;;  %v1538_v52 = vld [vmem:[%s4680_s9 + $0x128] sm:$0xff]  ;;  %v1447_v53 = vld [vmem:[%s4188_s26 + $0x10] sm:$0xff]  ;;  %v1537_v54 = vld [vmem:[%s4680_s9 + $0x120] sm:$0xff]  ;;  %s4345_s26 = scalar_lea.vmem %s4675_s4, %s4298_s16 }
  0x21   : > { %3687 = vmatprep.subr.mxu1 %v1003_v20  ;;  %3679 = vmatmul.mubr.msk.f32.vlgmr.msra.gmra.mxu0 %vm749_vm0, %v4209_v21  ;;  %v1535_v56 = vld [vmem:[%s4310_s25] sm:$0xff]  ;;  %v4324_v57 = vld [vmem:[%s4310_s25 + $0x8] sm:$0xff]  ;;  %v1628_v58 = vld [vmem:[%s4680_s9 + $0x150] sm:$0xff] }
  0x22   : > { %3692 = vmatprep.subr.mxu0 %v1095_v22  ;;  %3688 = vmatpush3.msra.mxu1 %v1003_v20  ;;  %v1627_v60 = vld [vmem:[%s4680_s9 + $0x148] sm:$0xff]  ;;  %v1717_v61 = vld [vmem:[%s4680_s9 + $0x170] sm:$0xff]  ;;  %v1626_v62 = vld [vmem:[%s4680_s9 + $0x140] sm:$0xff] }
  0x23   : > { %3689 = vmatprep.mubr.msk.f32.mxu1 %vm749_vm0, %v1001_v23  ;;  %3693 = vmatpush3.msra.mxu0 %v1095_v22  ;;  %v1716_v63 = vld [vmem:[%s4680_s9 + $0x168] sm:$0xff]  ;;  %v1624_v0 = vld [vmem:[%s4345_s26] sm:$0xff]  ;;  %v1807_v3 = vld [vmem:[%s4680_s9 + $0x198] sm:$0xff] }
  0x24   : > { %3690 = vmatmul.mubr.msk.f32.vlgmr.msra.gmra.mxu1 %vm749_vm0, %v1002_v24  ;;  %3694 = vmatprep.subr.mxu0 %v1094_v25  ;;  %v4361_v1 = vld [vmem:[%s4345_s26 + $0x8] sm:$0xff]  ;;  %v1715_v2 = vld [vmem:[%s4680_s9 + $0x160] sm:$0xff]  ;;  %v1806_v6 = vld [vmem:[%s4680_s9 + $0x190] sm:$0xff] }
  0x25   : > { %3703 = vmatprep.subr.mxu1 %v1184_v26  ;;  %3695 = vmatpush3.msra.mxu0 %v1094_v25  ;;  %v1713_v4 = vld [vmem:[%s4358_s14] sm:$0xff]  ;;  %v4374_v5 = vld [vmem:[%s4358_s14 + $0x8] sm:$0xff]  ;;  %v1896_v7 = vld [vmem:[%s4680_s9 + $0x1b8] sm:$0xff] }
  0x26   : > { %3704 = vmatpush3.msra.mxu1 %v1184_v26  ;;  %3696 = vmatprep.subr.mxu0 %v1093_v27  ;;  %v1805_v8 = vld [vmem:[%s4680_s9 + $0x188] sm:$0xff]  ;;  %v1895_v9 = vld [vmem:[%s4680_s9 + $0x1b0] sm:$0xff]  ;;  %v1804_v10 = vld [vmem:[%s4680_s9 + $0x180] sm:$0xff] }
  0x27   : > { %3705 = vmatprep.subr.mxu1 %v1183_v28  ;;  %3697 = vmatpush3.msra.mxu0 %v1093_v27  ;;  %v1894_v11 = vld [vmem:[%s4680_s9 + $0x1a8] sm:$0xff]  ;;  %v1893_v14 = vld [vmem:[%s4680_s9 + $0x1a0] sm:$0xff]  ;;  %v1985_v15 = vld [vmem:[%s4680_s9 + $0x1d8] sm:$0xff] }
  0x28   : > { %3706 = vmatpush3.msra.mxu1 %v1183_v28  ;;  %3698 = vmatprep.subr.mxu0 %v1092_v29  ;;  %v1891_v16 = vld [vmem:[%s4345_s26 + $0x4] sm:$0xff]  ;;  %v1892_v17 = vld [vmem:[%s4345_s26 + $0xc] sm:$0xff]  ;;  %v2074_v19 = vld [vmem:[%s4680_s9 + $0x1f8] sm:$0xff] }
  0x29   : > { %3707 = vmatprep.subr.mxu1 %v1182_v30  ;;  %3699 = vmatpush3.msra.mxu0 %v1092_v29  ;;  %v1984_v18 = vld [vmem:[%s4680_s9 + $0x1d0] sm:$0xff]  ;;  %v1983_v20 = vld [vmem:[%s4680_s9 + $0x1c8] sm:$0xff]  ;;  %v1982_v22 = vld [vmem:[%s4680_s9 + $0x1c0] sm:$0xff] }
  0x2a   : > { %3700 = vmatprep.mubr.msk.f32.mxu0 %vm749_vm0, %v1090_v31  ;;  %3708 = vmatpush3.msra.mxu1 %v1182_v30  ;;  %v2072_v23 = vld [vmem:[%s4680_s9 + $0x1e8] sm:$0xff]  ;;  %v2071_v26 = vld [vmem:[%s4680_s9 + $0x1e0] sm:$0xff]  ;;  %v2163_v27 = vld [vmem:[%s4680_s9 + $0x218] sm:$0xff] }
  0x2b   : > { %3701 = vmatmul.mubr.msk.f32.vlgmr.msra.gmra.mxu0 %vm749_vm0, %v1091_v32  ;;  %3709 = vmatprep.subr.mxu1 %v1181_v33  ;;  %v1980_v24 = vld [vmem:[%s4358_s14 + $0x4] sm:$0xff]  ;;  %v1981_v25 = vld [vmem:[%s4358_s14 + $0xc] sm:$0xff]  ;;  %v2252_v30 = vld [vmem:[%s4680_s9 + $0x238] sm:$0xff] }
  0x2c   : > { %3714 = vmatprep.subr.mxu0 %v1273_v34  ;;  %3710 = vmatpush3.msra.mxu1 %v1181_v33  ;;  %v2070_v28 = vld [vmem:[%s4310_s25 + $0x10] sm:$0xff]  ;;  %v2161_v31 = vld [vmem:[%s4680_s9 + $0x208] sm:$0xff]  ;;  %v2160_v33 = vld [vmem:[%s4680_s9 + $0x200] sm:$0xff] }
  0x2d   : > { %3711 = vmatprep.mubr.msk.f32.mxu1 %vm749_vm0, %v1179_v35  ;;  %3715 = vmatpush3.msra.mxu0 %v1273_v34  ;;  %v2162_v29 = vld [vmem:[%s4680_s9 + $0x210] sm:$0xff]  ;;  %v2250_v34 = vld [vmem:[%s4680_s9 + $0x228] sm:$0xff] }
  0x2e   : > { %3712 = vmatmul.mubr.msk.f32.vlgmr.msra.gmra.mxu1 %vm749_vm0, %v1180_v36  ;;  %3716 = vmatprep.subr.mxu0 %v1272_v37  ;;  %v2251_v32 = vld [vmem:[%s4680_s9 + $0x230] sm:$0xff]  ;;  %v2249_v36 = vld [vmem:[%s4680_s9 + $0x220] sm:$0xff] }
  0x2f   : > { %3725 = vmatprep.subr.mxu1 %v1362_v38  ;;  %3717 = vmatpush3.msra.mxu0 %v1272_v37  ;;  %v2159_v35 = vld [vmem:[%s4345_s26 + $0x10] sm:$0xff]  ;;  %v2341_v37 = vld [vmem:[%s4680_s9 + $0x258] sm:$0xff] }
  0x30   : > { %3726 = vmatpush3.msra.mxu1 %v1362_v38  ;;  %3718 = vmatprep.subr.mxu0 %v1271_v39  ;;  %v2248_v38 = vld [vmem:[%s4358_s14 + $0x10] sm:$0xff] }
  0x31   : > { %3727 = vmatprep.subr.mxu1 %v1361_v40  ;;  %3719 = vmatpush3.msra.mxu0 %v1271_v39  ;;  %v2340_v39 = vld [vmem:[%s4680_s9 + $0x250] sm:$0xff] }
  0x32   : > { %3728 = vmatpush3.msra.mxu1 %v1361_v40  ;;  %3720 = vmatprep.subr.mxu0 %v1270_v41  ;;  %v2430_v40 = vld [vmem:[%s4680_s9 + $0x278] sm:$0xff] }
  0x33   : > { %3729 = vmatprep.subr.mxu1 %v1360_v42  ;;  %3721 = vmatpush3.msra.mxu0 %v1270_v41  ;;  %v2339_v41 = vld [vmem:[%s4680_s9 + $0x248] sm:$0xff] }
  0x34   : > { %3722 = vmatprep.mubr.msk.f32.mxu0 %vm749_vm0, %v4177_v13  ;;  %3730 = vmatpush3.msra.mxu1 %v1360_v42  ;;  %v1803_v13 = vld [vmem:[%s4310_s25 + $0xc] sm:$0xff] }
  0x35   : > { %3723 = vmatmul.mubr.msk.f32.vlgmr.msra.gmra.mxu0 %vm749_vm0, %v1269_v43  ;;  %3731 = vmatprep.subr.mxu1 %v1359_v44  ;;  %v2429_v42 = vld [vmem:[%s4680_s9 + $0x270] sm:$0xff]  ;;  %v2338_v43 = vld [vmem:[%s4680_s9 + $0x240] sm:$0xff] }
  0x36   : > { %3736 = vmatprep.subr.mxu0 %v1451_v45  ;;  %3732 = vmatpush3.msra.mxu1 %v1359_v44  ;;  %v2428_v44 = vld [vmem:[%s4680_s9 + $0x268] sm:$0xff] }
  0x37   : > { %3733 = vmatprep.mubr.msk.f32.mxu1 %vm749_vm0, %v4172_v12  ;;  %3737 = vmatpush3.msra.mxu0 %v1451_v45  ;;  %v1802_v12 = vld [vmem:[%s4310_s25 + $0x4] sm:$0xff]  ;;  %s662_s25 = sadd.s32 %s3948_s27, %s4150_s29 }
  0x38   : > { %3734 = vmatmul.mubr.msk.f32.vlgmr.msra.gmra.mxu1 %vm749_vm0, %v1358_v46  ;;  %3738 = vmatprep.subr.mxu0 %v1450_v47  ;;  %s4474_s26 = sshll.u32 %s662_s25, 3 }
  0x39   : > { %3747 = vmatprep.subr.mxu1 %v1540_v48  ;;  %3739 = vmatpush3.msra.mxu0 %v1450_v47  ;;  %s4495_s13 = scalar_lea.vmem %s4673_s2, %s4474_s26  ;;  %s4508_s16 = scalar_lea.vmem %s4676_s5, %s4474_s26  ;;  %v2427_v47 = vld [vmem:[%s4680_s9 + $0x260] sm:$0xff] }
  0x3a   : > { %3748 = vmatpush3.msra.mxu1 %v1540_v48  ;;  %3740 = vmatprep.subr.mxu0 %v1449_v49  ;;  %v2336_v45 = vld [vmem:[%s4495_s13] sm:$0xff]  ;;  %v4511_v46 = vld [vmem:[%s4495_s13 + $0x8] sm:$0xff]  ;;  %v2519_v48 = vld [vmem:[%s4680_s9 + $0x298] sm:$0xff]  ;;  %s4545_s15 = scalar_lea.vmem %s4679_s8, %s4474_s26  ;;  %s3427_s26 = sshll.u32 %s4696_s18, 2 }
  0x3b   : > { %3749 = vmatprep.subr.mxu1 %v1539_v50  ;;  %3741 = vmatpush3.msra.mxu0 %v1449_v49  ;;  %v2425_v49 = vld [vmem:[%s4508_s16] sm:$0xff] }
  0x3c   : > { %3750 = vmatpush3.msra.mxu1 %v1539_v50  ;;  %3742 = vmatprep.subr.mxu0 %v1448_v51  ;;  %v4524_v50 = vld [vmem:[%s4508_s16 + $0x8] sm:$0xff] }
  0x3d   : > { %3751 = vmatprep.subr.mxu1 %v1538_v52  ;;  %3743 = vmatpush3.msra.mxu0 %v1448_v51  ;;  %v2518_v51 = vld [vmem:[%s4680_s9 + $0x290] sm:$0xff] }
  0x3e   : > { %3744 = vmatprep.mubr.msk.f32.mxu0 %vm749_vm0, %v4209_v21  ;;  %3752 = vmatpush3.msra.mxu1 %v1538_v52  ;;  %v2073_v21 = vld [vmem:[%s4680_s9 + $0x1f0] sm:$0xff]  ;;  %v2608_v52 = vld [vmem:[%s4680_s9 + $0x2b8] sm:$0xff] }
  0x3f   : > { %3745 = vmatmul.mubr.msk.f32.vlgmr.msra.gmra.mxu0 %vm749_vm0, %v1447_v53  ;;  %3753 = vmatprep.subr.mxu1 %v1537_v54  ;;  %v2517_v53 = vld [vmem:[%s4680_s9 + $0x288] sm:$0xff] }
  0x40   : > { %3758 = vmatprep.subr.mxu0 %v1629_v55  ;;  %3754 = vmatpush3.msra.mxu1 %v1537_v54  ;;  %v2607_v54 = vld [vmem:[%s4680_s9 + $0x2b0] sm:$0xff] }
  0x41   : > { %3755 = vmatprep.mubr.msk.f32.mxu1 %vm749_vm0, %v1535_v56  ;;  %3759 = vmatpush3.msra.mxu0 %v1629_v55  ;;  %v2516_v55 = vld [vmem:[%s4680_s9 + $0x280] sm:$0xff]  ;;  %v2606_v56 = vld [vmem:[%s4680_s9 + $0x2a8] sm:$0xff] }
  0x42   : > { %3756 = vmatmul.mubr.msk.f32.vlgmr.msra.gmra.mxu1 %vm749_vm0, %v4324_v57  ;;  %3760 = vmatprep.subr.mxu0 %v1628_v58 }
  0x43   : > { %3769 = vmatprep.subr.mxu1 %v1718_v59  ;;  %3761 = vmatpush3.msra.mxu0 %v1628_v58  ;;  %v4555_v58 = vld [vmem:[%s4545_s15 + $0x8] sm:$0xff] }
  0x44   : > { %3770 = vmatpush3.msra.mxu1 %v1718_v59  ;;  %3762 = vmatprep.subr.mxu0 %v1627_v60  ;;  %v2605_v59 = vld [vmem:[%s4680_s9 + $0x2a0] sm:$0xff] }
  0x45   : > { %3771 = vmatprep.subr.mxu1 %v1717_v61  ;;  %3763 = vmatpush3.msra.mxu0 %v1627_v60  ;;  %v2697_v60 = vld [vmem:[%s4680_s9 + $0x2d8] sm:$0xff] }
  0x46   : > { %3772 = vmatpush3.msra.mxu1 %v1717_v61  ;;  %3764 = vmatprep.subr.mxu0 %v1626_v62  ;;  %v2603_v61 = vld [vmem:[%s4495_s13 + $0x4] sm:$0xff] }
  0x47   : > { %3773 = vmatprep.subr.mxu1 %v1716_v63  ;;  %3765 = vmatpush3.msra.mxu0 %v1626_v62  ;;  %v2604_v62 = vld [vmem:[%s4495_s13 + $0xc] sm:$0xff] }
  0x48   : > { %3766 = vmatprep.mubr.msk.f32.mxu0 %vm749_vm0, %v1624_v0  ;;  %3774 = vmatpush3.msra.mxu1 %v1716_v63  ;;  %v2696_v63 = vld [vmem:[%s4680_s9 + $0x2d0] sm:$0xff]  ;;  %v2786_v0 = vld [vmem:[%s4680_s9 + $0x2f8] sm:$0xff] }
  0x49   : > { %3767 = vmatmul.mubr.msk.f32.vlgmr.msra.gmra.mxu0 %vm749_vm0, %v4361_v1  ;;  %3775 = vmatprep.subr.mxu1 %v1715_v2 }
  0x4a   : > { %3780 = vmatprep.subr.mxu0 %v1807_v3  ;;  %3776 = vmatpush3.msra.mxu1 %v1715_v2  ;;  %v2785_v2 = vld [vmem:[%s4680_s9 + $0x2f0] sm:$0xff] }
  0x4b   : > { %3777 = vmatprep.mubr.msk.f32.mxu1 %vm749_vm0, %v1713_v4  ;;  %3781 = vmatpush3.msra.mxu0 %v1807_v3  ;;  %v2694_v3 = vld [vmem:[%s4680_s9 + $0x2c0] sm:$0xff]  ;;  %v2784_v4 = vld [vmem:[%s4680_s9 + $0x2e8] sm:$0xff] }
  0x4c   : > { %3778 = vmatmul.mubr.msk.f32.vlgmr.msra.gmra.mxu1 %vm749_vm0, %v4374_v5  ;;  %3782 = vmatprep.subr.mxu0 %v1806_v6 }
  0x4d   : > { %3791 = vmatprep.subr.mxu1 %v1896_v7  ;;  %3783 = vmatpush3.msra.mxu0 %v1806_v6  ;;  %v2693_v6 = vld [vmem:[%s4508_s16 + $0xc] sm:$0xff] }
  0x4e   : > { %3792 = vmatpush3.msra.mxu1 %v1896_v7  ;;  %3784 = vmatprep.subr.mxu0 %v1805_v8  ;;  %v2783_v7 = vld [vmem:[%s4680_s9 + $0x2e0] sm:$0xff] }
  0x4f   : > { %3793 = vmatprep.subr.mxu1 %v1895_v9  ;;  %3785 = vmatpush3.msra.mxu0 %v1805_v8  ;;  %v2875_v8 = vld [vmem:[%s4680_s9 + $0x318] sm:$0xff] }
  0x50   : > { %3794 = vmatpush3.msra.mxu1 %v1895_v9  ;;  %3786 = vmatprep.subr.mxu0 %v1804_v10  ;;  %v2781_v9 = vld [vmem:[%s4545_s15 + $0x4] sm:$0xff] }
  0x51   : > { %3795 = vmatprep.subr.mxu1 %v1894_v11  ;;  %3787 = vmatpush3.msra.mxu0 %v1804_v10  ;;  %v2782_v10 = vld [vmem:[%s4545_s15 + $0xc] sm:$0xff] }
  0x52   : > { %3788 = vmatprep.mubr.msk.f32.mxu0 %vm749_vm0, %v1802_v12  ;;  %3796 = vmatpush3.msra.mxu1 %v1894_v11  ;;  %v2874_v11 = vld [vmem:[%s4680_s9 + $0x310] sm:$0xff]  ;;  %v2964_v12 = vld [vmem:[%s4680_s9 + $0x338] sm:$0xff] }
  0x53   : > { %3789 = vmatmul.mubr.msk.f32.vlgmr.msra.gmra.mxu0 %vm749_vm0, %v1803_v13  ;;  %3797 = vmatprep.subr.mxu1 %v1893_v14  ;;  %v2873_v13 = vld [vmem:[%s4680_s9 + $0x308] sm:$0xff] }
  0x54   : > { %3802 = vmatprep.subr.mxu0 %v1985_v15  ;;  %3798 = vmatpush3.msra.mxu1 %v1893_v14  ;;  %v2963_v14 = vld [vmem:[%s4680_s9 + $0x330] sm:$0xff] }
  0x55   : > { %3799 = vmatprep.mubr.msk.f32.mxu1 %vm749_vm0, %v1891_v16  ;;  %3803 = vmatpush3.msra.mxu0 %v1985_v15  ;;  %v2872_v15 = vld [vmem:[%s4680_s9 + $0x300] sm:$0xff]  ;;  %v2962_v16 = vld [vmem:[%s4680_s9 + $0x328] sm:$0xff] }
  0x56   : > { %3800 = vmatmul.mubr.msk.f32.vlgmr.msra.gmra.mxu1 %vm749_vm0, %v1892_v17  ;;  %3804 = vmatprep.subr.mxu0 %v1984_v18  ;;  %v2871_v17 = vld [vmem:[%s4495_s13 + $0x10] sm:$0xff] }
  0x57   : > { %3813 = vmatprep.subr.mxu1 %v2074_v19  ;;  %3805 = vmatpush3.msra.mxu0 %v1984_v18  ;;  %v2961_v18 = vld [vmem:[%s4680_s9 + $0x320] sm:$0xff] }
  0x58   : > { %3814 = vmatpush3.msra.mxu1 %v2074_v19  ;;  %3806 = vmatprep.subr.mxu0 %v1983_v20  ;;  %v3053_v19 = vld [vmem:[%s4680_s9 + $0x358] sm:$0xff] }
  0x59   : > { %3815 = vmatprep.subr.mxu1 %v2073_v21  ;;  %3807 = vmatpush3.msra.mxu0 %v1983_v20  ;;  %v2960_v20 = vld [vmem:[%s4508_s16 + $0x10] sm:$0xff] }
  0x5a   : > { %3816 = vmatpush3.msra.mxu1 %v2073_v21  ;;  %3808 = vmatprep.subr.mxu0 %v1982_v22  ;;  %v3052_v21 = vld [vmem:[%s4680_s9 + $0x350] sm:$0xff] }
  0x5b   : > { %3817 = vmatprep.subr.mxu1 %v2072_v23  ;;  %3809 = vmatpush3.msra.mxu0 %v1982_v22  ;;  %v3051_v22 = vld [vmem:[%s4680_s9 + $0x348] sm:$0xff] }
  0x5c   : > { %3810 = vmatprep.mubr.msk.f32.mxu0 %vm749_vm0, %v1980_v24  ;;  %3818 = vmatpush3.msra.mxu1 %v2072_v23  ;;  %v3050_v23 = vld [vmem:[%s4680_s9 + $0x340] sm:$0xff]  ;;  %v3049_v24 = vld [vmem:[%s4545_s15 + $0x10] sm:$0xff] }
  0x5d   : > { %3811 = vmatmul.mubr.msk.f32.vlgmr.msra.gmra.mxu0 %vm749_vm0, %v1981_v25  ;;  %3819 = vmatprep.subr.mxu1 %v2071_v26 }
  0x5e   : > { %3824 = vmatprep.subr.mxu0 %v2163_v27  ;;  %3820 = vmatpush3.msra.mxu1 %v2071_v26 }
  0x5f   : > { %3821 = vmatprep.mubr.msk.f32.mxu1 %vm749_vm0, %v4324_v57  ;;  %3825 = vmatpush3.msra.mxu0 %v2163_v27  ;;  %v2514_v57 = vld [vmem:[%s4545_s15] sm:$0xff]  ;;  %s3426_s15 = sshll.u32 %s4702_s17, 1 }
  0x60   : > { %3822 = vmatmul.mubr.msk.f32.vlgmr.msra.gmra.mxu1 %vm749_vm0, %v2070_v28  ;;  %3826 = vmatprep.subr.mxu0 %v2162_v29  ;;  %s734_s14 = sadd.s32 %s3427_s26, %s3426_s15 }
  0x61   : > { %3835 = vmatprep.subr.mxu1 %v2252_v30  ;;  %3827 = vmatpush3.msra.mxu0 %v2162_v29  ;;  %s3428_s30 = sshll.u32 %s734_s14, 3 }
  0x62   : > { %3836 = vmatpush3.msra.mxu1 %v2252_v30  ;;  %3828 = vmatprep.subr.mxu0 %v2161_v31  ;;  %s736_s17 = scalar_lea.vmem %s4682_s11, %s3428_s30 }
  0x63   : > { %3837 = vmatprep.subr.mxu1 %v2251_v32  ;;  %3829 = vmatpush3.msra.mxu0 %v2161_v31 }
  0x64   : > { %3838 = vmatpush3.msra.mxu1 %v2251_v32  ;;  %3830 = vmatprep.subr.mxu0 %v2160_v33 }
  0x65   : > { %3839 = vmatprep.subr.mxu1 %v2250_v34  ;;  %3831 = vmatpush3.msra.mxu0 %v2160_v33 }
  0x66   : > { %3832 = vmatprep.mubr.msk.f32.mxu0 %vm749_vm0, %v4361_v1  ;;  %3840 = vmatpush3.msra.mxu1 %v2250_v34  ;;  %v2695_v1 = vld [vmem:[%s4680_s9 + $0x2c8] sm:$0xff] }
  0x67   : > { %3833 = vmatmul.mubr.msk.f32.vlgmr.msra.gmra.mxu0 %vm749_vm0, %v2159_v35  ;;  %3841 = vmatprep.subr.mxu1 %v2249_v36 }
  0x68   : > { %3846 = vmatprep.subr.mxu0 %v2341_v37  ;;  %3842 = vmatpush3.msra.mxu1 %v2249_v36 }
  0x69   : > { %3843 = vmatprep.mubr.msk.f32.mxu1 %vm749_vm0, %v4374_v5  ;;  %3847 = vmatpush3.msra.mxu0 %v2341_v37  ;;  %v2692_v5 = vld [vmem:[%s4508_s16 + $0x4] sm:$0xff] }
  0x6a   : > { %3844 = vmatmul.mubr.msk.f32.vlgmr.msra.gmra.mxu1 %vm749_vm0, %v2248_v38  ;;  %3848 = vmatprep.subr.mxu0 %v2340_v39 }
  0x6b   : > { %3857 = vmatprep.subr.mxu1 %v2430_v40  ;;  %3849 = vmatpush3.msra.mxu0 %v2340_v39 }
  0x6c   : > { %3858 = vmatpush3.msra.mxu1 %v2430_v40  ;;  %3850 = vmatprep.subr.mxu0 %v2339_v41 }
  0x6d   : > { %3859 = vmatprep.subr.mxu1 %v2429_v42  ;;  %3851 = vmatpush3.msra.mxu0 %v2339_v41 }
  0x6e   : > { %3860 = vmatpush3.msra.mxu1 %v2429_v42  ;;  %3852 = vmatprep.subr.mxu0 %v2338_v43 }
  0x6f   : > { %3861 = vmatprep.subr.mxu1 %v2428_v44  ;;  %3853 = vmatpush3.msra.mxu0 %v2338_v43 }
  0x70   : > { %3854 = vmatprep.mubr.msk.f32.mxu0 %vm749_vm0, %v2336_v45  ;;  %3862 = vmatpush3.msra.mxu1 %v2428_v44 }
  0x71   : > { %3855 = vmatmul.mubr.msk.f32.vlgmr.msra.gmra.mxu0 %vm749_vm0, %v4511_v46  ;;  %3863 = vmatprep.subr.mxu1 %v2427_v47 }
  0x72   : > { %3868 = vmatprep.subr.mxu0 %v2519_v48  ;;  %3864 = vmatpush3.msra.mxu1 %v2427_v47 }
  0x73   : > { %3865 = vmatprep.mubr.msk.f32.mxu1 %vm749_vm0, %v2425_v49  ;;  %3869 = vmatpush3.msra.mxu0 %v2519_v48 }
  0x74   : > { %3866 = vmatmul.mubr.msk.f32.vlgmr.msra.gmra.mxu1 %vm749_vm0, %v4524_v50  ;;  %3870 = vmatprep.subr.mxu0 %v2518_v51 }
  0x75   : > { %3879 = vmatprep.subr.mxu1 %v2608_v52  ;;  %3871 = vmatpush3.msra.mxu0 %v2518_v51 }
  0x76   : > { %3880 = vmatpush3.msra.mxu1 %v2608_v52  ;;  %3872 = vmatprep.subr.mxu0 %v2517_v53 }
  0x77   : > { %3881 = vmatprep.subr.mxu1 %v2607_v54  ;;  %3873 = vmatpush3.msra.mxu0 %v2517_v53 }
  0x78   : > { %3882 = vmatpush3.msra.mxu1 %v2607_v54  ;;  %3874 = vmatprep.subr.mxu0 %v2516_v55 }
  0x79   : > { %3883 = vmatprep.subr.mxu1 %v2606_v56  ;;  %3875 = vmatpush3.msra.mxu0 %v2516_v55 }
  0x7a   : > { %3876 = vmatprep.mubr.msk.f32.mxu0 %vm749_vm0, %v2514_v57  ;;  %3884 = vmatpush3.msra.mxu1 %v2606_v56 }
  0x7b   : > { %3877 = vmatmul.mubr.msk.f32.vlgmr.msra.gmra.mxu0 %vm749_vm0, %v4555_v58  ;;  %3885 = vmatprep.subr.mxu1 %v2605_v59 }
  0x7c   : > { %3890 = vmatprep.subr.mxu0 %v2697_v60  ;;  %3886 = vmatpush3.msra.mxu1 %v2605_v59 }
  0x7d   : > { %3887 = vmatprep.mubr.msk.f32.mxu1 %vm749_vm0, %v2603_v61  ;;  %3891 = vmatpush3.msra.mxu0 %v2697_v60 }
  0x7e   : > { %3888 = vmatmul.mubr.msk.f32.vlgmr.msra.gmra.mxu1 %vm749_vm0, %v2604_v62  ;;  %3892 = vmatprep.subr.mxu0 %v2696_v63 }
  0x7f   : > { %3901 = vmatprep.subr.mxu1 %v2786_v0  ;;  %3893 = vmatpush3.msra.mxu0 %v2696_v63 }
  0x80   : > { %3902 = vmatpush3.msra.mxu1 %v2786_v0  ;;  %3894 = vmatprep.subr.mxu0 %v2695_v1 }
  0x81   : > { %3903 = vmatprep.subr.mxu1 %v2785_v2  ;;  %3895 = vmatpush3.msra.mxu0 %v2695_v1 }
  0x82   : > { %3904 = vmatpush3.msra.mxu1 %v2785_v2  ;;  %3896 = vmatprep.subr.mxu0 %v2694_v3 }
  0x83   : > { %3905 = vmatprep.subr.mxu1 %v2784_v4  ;;  %3897 = vmatpush3.msra.mxu0 %v2694_v3 }
  0x84   : > { %3898 = vmatprep.mubr.msk.f32.mxu0 %vm749_vm0, %v2692_v5  ;;  %3906 = vmatpush3.msra.mxu1 %v2784_v4 }
  0x85   : > { %3899 = vmatmul.mubr.msk.f32.vlgmr.msra.gmra.mxu0 %vm749_vm0, %v2693_v6  ;;  %3907 = vmatprep.subr.mxu1 %v2783_v7 }
  0x86   : > { %3912 = vmatprep.subr.mxu0 %v2875_v8  ;;  %3908 = vmatpush3.msra.mxu1 %v2783_v7 }
  0x87   : > { %3909 = vmatprep.mubr.msk.f32.mxu1 %vm749_vm0, %v2781_v9  ;;  %3913 = vmatpush3.msra.mxu0 %v2875_v8 }
  0x88   : > { %3910 = vmatmul.mubr.msk.f32.vlgmr.msra.gmra.mxu1 %vm749_vm0, %v2782_v10  ;;  %3914 = vmatprep.subr.mxu0 %v2874_v11 }
  0x89   : > { %3923 = vmatprep.subr.mxu1 %v2964_v12  ;;  %3915 = vmatpush3.msra.mxu0 %v2874_v11 }
  0x8a   : > { %3924 = vmatpush3.msra.mxu1 %v2964_v12  ;;  %3916 = vmatprep.subr.mxu0 %v2873_v13 }
  0x8b   : > { %3925 = vmatprep.subr.mxu1 %v2963_v14  ;;  %3917 = vmatpush3.msra.mxu0 %v2873_v13 }
  0x8c   : > { %3926 = vmatpush3.msra.mxu1 %v2963_v14  ;;  %3918 = vmatprep.subr.mxu0 %v2872_v15 }
  0x8d   : > { %3927 = vmatprep.subr.mxu1 %v2962_v16  ;;  %3919 = vmatpush3.msra.mxu0 %v2872_v15 }
  0x8e   : > { %3920 = vmatprep.mubr.msk.f32.mxu0 %vm749_vm0, %v4511_v46  ;;  %3928 = vmatpush3.msra.mxu1 %v2962_v16 }
  0x8f   : > { %3921 = vmatmul.mubr.msk.f32.vlgmr.msra.gmra.mxu0 %vm749_vm0, %v2871_v17  ;;  %3929 = vmatprep.subr.mxu1 %v2961_v18 }
  0x90   : > { %3934 = vmatprep.subr.mxu0 %v3053_v19  ;;  %3930 = vmatpush3.msra.mxu1 %v2961_v18 }
  0x91   : > { %3931 = vmatprep.mubr.msk.f32.mxu1 %vm749_vm0, %v4524_v50  ;;  %3935 = vmatpush3.msra.mxu0 %v3053_v19 }
  0x92   : > { %3932 = vmatmul.mubr.msk.f32.vlgmr.msra.gmra.mxu1 %vm749_vm0, %v2960_v20  ;;  %3936 = vmatprep.subr.mxu0 %v3052_v21 }
  0x93   : > { %3942 = vmatprep.mubr.msk.f32.mxu0 %vm749_vm0, %v4555_v58  ;;  %3937 = vmatpush3.msra.mxu0 %v3052_v21 }
  0x94   : > { %3938 = vmatprep.subr.mxu0 %v3051_v22 }
  0x95   : > { %3939 = vmatpush3.msra.mxu0 %v3051_v22 }
  0x96   : > { %3940 = vmatprep.subr.mxu0 %v3050_v23 }
  0x97   : > { %3941 = vmatpush3.msra.mxu0 %v3050_v23 }
  0x98   : > { %3943 = vmatmul.mubr.msk.f32.vlgmr.msra.gmra.mxu0 %vm749_vm0, %v3049_v24 }
  0xd9   : > { %v3658_v25 = vpop.f32.mrf.mxu0 }
  0xda   : > { %v3669_v26 = vpop.f32.mrf.mxu1 }
  0xdb   : > { %v822_v27 = vpop.f32.mrf.mxu0  ;;  %v909_v30 = vadd.f32 %v3669_v26, %v3658_v25 }
  0xdc   : > { %v903_v29 = vpop.f32.mrf.mxu1 }
  0xdd   : > { %v904_v33 = vadd.f32 %v903_v29, %v822_v27 }
  0xe1   : > { %v3680_v28 = vpop.f32.mrf.mxu0 }
  0xe2   : > { %v1000_v34 = vadd.f32 %v3680_v28, %v909_v30 }
  0xe3   : > { %v990_v31 = vpop.f32.mrf.mxu0 }
  0xe4   : > { %v3691_v32 = vpop.f32.mrf.mxu1  ;;  %v999_v36 = vadd.f32 %v990_v31, %v904_v33 }
  0xe5   : > { %v1089_v38 = vadd.f32 %v3691_v32, %v1000_v34 }
  0xe6   : > { %v1079_v37 = vpop.f32.mrf.mxu1 }
  0xe7   : > { %v1088_v41 = vadd.f32 %v1079_v37, %v999_v36 }
  0xeb   : > { %v3702_v35 = vpop.f32.mrf.mxu0 }
  0xec   : > { %v1178_v42 = vadd.f32 %v3702_v35, %v1089_v38 }
  0xed   : > { %v1168_v39 = vpop.f32.mrf.mxu0 }
  0xee   : > { %v3713_v40 = vpop.f32.mrf.mxu1  ;;  %v1177_v44 = vadd.f32 %v1168_v39, %v1088_v41 }
  0xef   : > { %v1267_v46 = vadd.f32 %v3713_v40, %v1178_v42 }
  0xf0   : > { %v1257_v45 = vpop.f32.mrf.mxu1 }
  0xf1   : > { %v1266_v49 = vadd.f32 %v1257_v45, %v1177_v44 }
  0xf5   : > { %v3724_v43 = vpop.f32.mrf.mxu0 }
  0xf6   : > { %v1356_v50 = vadd.f32 %v3724_v43, %v1267_v46 }
  0xf7   : > { %v1346_v47 = vpop.f32.mrf.mxu0 }
  0xf8   : > { %v3735_v48 = vpop.f32.mrf.mxu1  ;;  %v1355_v52 = vadd.f32 %v1346_v47, %v1266_v49 }
  0xf9   : > { %v1445_v54 = vadd.f32 %v3735_v48, %v1356_v50 }
  0xfa   : > { %v1435_v53 = vpop.f32.mrf.mxu1 }
  0xfb   : > { %v1444_v57 = vadd.f32 %v1435_v53, %v1355_v52 }
  0xff   : > { %v3746_v51 = vpop.f32.mrf.mxu0 }
 0x100   : > { %v1534_v58 = vadd.f32 %v3746_v51, %v1445_v54 }
 0x101   : > { %v1524_v55 = vpop.f32.mrf.mxu0 }
 0x102   : > { %v3757_v56 = vpop.f32.mrf.mxu1  ;;  %v1533_v60 = vadd.f32 %v1524_v55, %v1444_v57 }
 0x103   : > { %v1623_v62 = vadd.f32 %v3757_v56, %v1534_v58 }
 0x104   : > { %v1613_v61 = vpop.f32.mrf.mxu1 }
 0x105   : > { %v1622_v1 = vadd.f32 %v1613_v61, %v1533_v60 }
 0x109   : > { %v3768_v59 = vpop.f32.mrf.mxu0 }
 0x10a   : > { %v1712_v2 = vadd.f32 %v3768_v59, %v1623_v62 }
 0x10b   : > { %v1702_v63 = vpop.f32.mrf.mxu0 }
 0x10c   : > { %v3779_v0 = vpop.f32.mrf.mxu1  ;;  %v1711_v4 = vadd.f32 %v1702_v63, %v1622_v1  ;;  %v3483_v63 = vld [vmem:[%s4681_s10] ss:$0 sm:$0xff] }
 0x10d   : > { %v1801_v6 = vadd.f32 %v3779_v0, %v1712_v2 }
 0x10e   : > { %v1791_v5 = vpop.f32.mrf.mxu1 }
 0x10f   : > { %v1800_v9 = vadd.f32 %v1791_v5, %v1711_v4 }
 0x113   : > { %v3790_v3 = vpop.f32.mrf.mxu0 }
 0x114   : > { %v1890_v10 = vadd.f32 %v3790_v3, %v1801_v6 }
 0x115   : > { %v1880_v7 = vpop.f32.mrf.mxu0 }
 0x116   : > { %v3801_v8 = vpop.f32.mrf.mxu1  ;;  %v1889_v12 = vadd.f32 %v1880_v7, %v1800_v9 }
 0x117   : > { %v1979_v14 = vadd.f32 %v3801_v8, %v1890_v10 }
 0x118   : > { %v1969_v13 = vpop.f32.mrf.mxu1 }
 0x119   : > { %v1978_v17 = vadd.f32 %v1969_v13, %v1889_v12 }
 0x11d   : > { %v3812_v11 = vpop.f32.mrf.mxu0 }
 0x11e   : > { %v2068_v18 = vadd.f32 %v3812_v11, %v1979_v14 }
 0x11f   : > { %v2058_v15 = vpop.f32.mrf.mxu0 }
 0x120   : > { %v3823_v16 = vpop.f32.mrf.mxu1  ;;  %v2067_v20 = vadd.f32 %v2058_v15, %v1978_v17 }
 0x121   : > { %v2157_v22 = vadd.f32 %v3823_v16, %v2068_v18 }
 0x122   : > { %v2147_v21 = vpop.f32.mrf.mxu1 }
 0x123   : > { %v2156_v25 = vadd.f32 %v2147_v21, %v2067_v20 }
 0x127   : > { %v3834_v19 = vpop.f32.mrf.mxu0 }
 0x128   : > { %v2246_v26 = vadd.f32 %v3834_v19, %v2157_v22 }
 0x129   : > { %v2236_v23 = vpop.f32.mrf.mxu0 }
 0x12a   : > { %v3845_v24 = vpop.f32.mrf.mxu1  ;;  %v2245_v28 = vadd.f32 %v2236_v23, %v2156_v25 }
 0x12b   : > { %v2335_v30 = vadd.f32 %v3845_v24, %v2246_v26 }
 0x12c   : > { %v2325_v29 = vpop.f32.mrf.mxu1 }
 0x12d   : > { %v2334_v33 = vadd.f32 %v2325_v29, %v2245_v28 }
 0x131   : > { %v3856_v27 = vpop.f32.mrf.mxu0 }
 0x132   : > { %v2424_v34 = vadd.f32 %v3856_v27, %v2335_v30 }
 0x133   : > { %v2414_v31 = vpop.f32.mrf.mxu0 }
 0x134   : > { %v3867_v32 = vpop.f32.mrf.mxu1  ;;  %v2423_v36 = vadd.f32 %v2414_v31, %v2334_v33 }
 0x135   : > { %v2513_v38 = vadd.f32 %v3867_v32, %v2424_v34 }
 0x136   : > { %v2503_v37 = vpop.f32.mrf.mxu1 }
 0x137   : > { %v2512_v41 = vadd.f32 %v2503_v37, %v2423_v36 }
 0x13b   : > { %v3878_v35 = vpop.f32.mrf.mxu0 }
 0x13c   : > { %v2602_v42 = vadd.f32 %v3878_v35, %v2513_v38 }
 0x13d   : > { %v2592_v39 = vpop.f32.mrf.mxu0 }
 0x13e   : > { %v3889_v40 = vpop.f32.mrf.mxu1  ;;  %v2601_v44 = vadd.f32 %v2592_v39, %v2512_v41 }
 0x13f   : > { %v2691_v46 = vadd.f32 %v3889_v40, %v2602_v42 }
 0x140   : > { %v2681_v45 = vpop.f32.mrf.mxu1 }
 0x141   : > { %v2690_v49 = vadd.f32 %v2681_v45, %v2601_v44 }
 0x145   : > { %v3900_v43 = vpop.f32.mrf.mxu0 }
 0x146   : > { %v2780_v50 = vadd.f32 %v3900_v43, %v2691_v46 }
 0x147   : > { %v2770_v47 = vpop.f32.mrf.mxu0 }
 0x148   : > { %v3911_v48 = vpop.f32.mrf.mxu1  ;;  %v2779_v52 = vadd.f32 %v2770_v47, %v2690_v49 }
 0x149   : > { %v2869_v54 = vadd.f32 %v3911_v48, %v2780_v50 }
 0x14a   : > { %v2859_v53 = vpop.f32.mrf.mxu1 }
 0x14b   : > { %v2868_v57 = vadd.f32 %v2859_v53, %v2779_v52 }
 0x14f   : > { %v3922_v51 = vpop.f32.mrf.mxu0 }
 0x150   : > { %v2958_v58 = vadd.f32 %v3922_v51, %v2869_v54 }
 0x151   : > { %v2948_v55 = vpop.f32.mrf.mxu0 }
 0x152   : > { %v3933_v56 = vpop.f32.mrf.mxu1  ;;  %v2957_v59 = vadd.f32 %v2948_v55, %v2868_v57 }
 0x153   : > { %v3047_v61 = vadd.f32 %v3933_v56, %v2958_v58 }
 0x154   : > { %v3037_v60 = vpop.f32.mrf.mxu1 }
 0x155   : > { %v3046_v0 = vadd.f32 %v3037_v60, %v2957_v59 }
 0x158   : > { %v3944_v62 = vpop.f32.mrf.mxu0 }
 0x159   : > { %v3136_v1 = vadd.f32 %v3944_v62, %v3047_v61 }
 0x15a   : > { %v3126_v2 = vpop.f32.mrf.mxu0 }
 0x15b   : > { %v3145_v3 = vadd.f32 %v3483_v63, %v3136_v1  ;;  %v3135_v4 = vadd.f32 %v3126_v2, %v3046_v0 }
 0x15d   : > { %3148 = vst.msk [vmem:[%s736_s17 + $0x8] sm:$0xff] %vm3146_vm1, %v3145_v3  ;;  %v3144_v5 = vadd.f32 %v3483_v63, %v3135_v4 }
 0x15f   : > { %3147 = vst.msk [vmem:[%s736_s17] sm:$0xff] %vm3146_vm1, %v3144_v5 }
 0x160 PF: > { %s21_s21 = sadd.s32 1, %s4027_s21   ;;  %s4684_s29 = sld [smem:[#allocation2_spill]] }
 0x161   : > { %p18_p10 = scmp.ge.s32.totalorder %s21_s21, 6   ;;  %s4685_s17 = smov %s4019_s19 }
 0x162   : > { %s4686_s18 = smov %s4023_s20  ;;  %s4687_s19 = smov %s4690_s22 }
 0x163   :  { %20 = sbr.rel (!%p18_p10) target bundleno = 3 (0x3), region = 118 }
 0x166   : > { %s4688_s20 = smov %s4684_s29 }

// kernel: endec_block_forward.8
= control target key start
LH: loop header
LB: loop body
LE: loop exit
PB: predicated region body
PF: predicated region fallthrough
CT: control target
= control target key end

     0   :  { %vm14_vm0 = vcmask 122880   ;;  %vm50_vm1 = vcmask 130048   ;;  %v236_v0 = vmov 0.0   ;;  %s434_s0 = inlined_call_operand.vmem [shape: f32[256,16], index: 0, kind: input, shape index: {}]   ;;  %s435_s1 = inlined_call_operand.vmem [shape: f32[1,16], index: 1, kind: output, shape index: {0}]   ;;  %s436_s2 = inlined_call_operand.vmem [shape: f32[1,16], index: 2, kind: output, shape index: {1}]  }
   0x1   :  { %15 = vst.msk [vmem:[%s435_s1] sm:$0x1] %vm14_vm0, %v236_v0  ;;  %v17_v1 = vld [vmem:[%s434_s0] sm:$0xff]  ;;  %v18_v2 = vld [vmem:[%s434_s0 + $0x8] sm:$0xff]  ;;  %v19_v3 = vld [vmem:[%s434_s0 + $0x10] sm:$0xff] }
   0x2   :  { %16 = vst.msk [vmem:[%s436_s2] sm:$0x1] %vm14_vm0, %v236_v0  ;;  %v51_v4 = vsel %vm50_vm1, %v17_v1, 0.0  ;;  %v52_v5 = vsel %vm50_vm1, %v18_v2, 0.0  ;;  %v54_v6 = vsel %vm50_vm1, %v19_v3, 0.0  ;;  %v20_v7 = vld [vmem:[%s434_s0 + $0x18] sm:$0xff]  ;;  %v124_v28 = vmul.f32 %v17_v1, %v17_v1 }
   0x3   :  { %v53_v8 = vadd.f32 %v52_v5, %v51_v4  ;;  %v56_v9 = vsel %vm50_vm1, %v20_v7, 0.0  ;;  %v21_v10 = vld [vmem:[%s434_s0 + $0x20] sm:$0xff]  ;;  %v22_v13 = vld [vmem:[%s434_s0 + $0x28] sm:$0xff]  ;;  %v23_v16 = vld [vmem:[%s434_s0 + $0x30] sm:$0xff]  ;;  %v125_v29 = vmul.f32 %v18_v2, %v18_v2  ;;  %v126_v30 = vmul.f32 %v19_v3, %v19_v3 }
   0x4   :  { %v58_v12 = vsel %vm50_vm1, %v21_v10, 0.0  ;;  %v60_v15 = vsel %vm50_vm1, %v22_v13, 0.0  ;;  %v62_v18 = vsel %vm50_vm1, %v23_v16, 0.0  ;;  %v24_v19 = vld [vmem:[%s434_s0 + $0x38] sm:$0xff]  ;;  %v25_v22 = vld [vmem:[%s434_s0 + $0x40] sm:$0xff]  ;;  %v26_v25 = vld [vmem:[%s434_s0 + $0x48] sm:$0xff]  ;;  %v127_v35 = vmul.f32 %v20_v7, %v20_v7 }
   0x5   :  { %v55_v11 = vadd.f32 %v54_v6, %v53_v8  ;;  %v64_v21 = vsel %vm50_vm1, %v24_v19, 0.0  ;;  %v66_v24 = vsel %vm50_vm1, %v25_v22, 0.0  ;;  %v68_v27 = vsel %vm50_vm1, %v26_v25, 0.0  ;;  %v27_v31 = vld [vmem:[%s434_s0 + $0x50] sm:$0xff]  ;;  %v28_v33 = vld [vmem:[%s434_s0 + $0x58] sm:$0xff]  ;;  %v29_v42 = vld [vmem:[%s434_s0 + $0x60] sm:$0xff] }
   0x6   :  { %v70_v34 = vsel %vm50_vm1, %v27_v31, 0.0  ;;  %v72_v37 = vsel %vm50_vm1, %v28_v33, 0.0  ;;  %v128_v38 = vmul.f32 %v21_v10, %v21_v10  ;;  %v156_v39 = vsel %vm50_vm1, %v124_v28, 0.0  ;;  %v30_v48 = vld [vmem:[%s434_s0 + $0x68] sm:$0xff]  ;;  %v31_v54 = vld [vmem:[%s434_s0 + $0x70] sm:$0xff]  ;;  %v32_v60 = vld [vmem:[%s434_s0 + $0x78] sm:$0xff] }
   0x7   :  { %v57_v14 = vadd.f32 %v56_v9, %v55_v11  ;;  %v157_v40 = vsel %vm50_vm1, %v125_v29, 0.0  ;;  %v159_v41 = vsel %vm50_vm1, %v126_v30, 0.0  ;;  %v74_v45 = vsel %vm50_vm1, %v29_v42, 0.0  ;;  %v33_v2 = vld [vmem:[%s434_s0 + $0x80] sm:$0xff]  ;;  %v34_v8 = vld [vmem:[%s434_s0 + $0x88] sm:$0xff] }
   0x8   :  { %v158_v44 = vadd.f32 %v157_v40, %v156_v39  ;;  %v129_v46 = vmul.f32 %v22_v13, %v22_v13  ;;  %v161_v47 = vsel %vm50_vm1, %v127_v35, 0.0  ;;  %v76_v51 = vsel %vm50_vm1, %v30_v48, 0.0 }
   0x9   :  { %v59_v17 = vadd.f32 %v58_v12, %v57_v14  ;;  %v130_v52 = vmul.f32 %v23_v16, %v23_v16  ;;  %v163_v53 = vsel %vm50_vm1, %v128_v38, 0.0  ;;  %v78_v57 = vsel %vm50_vm1, %v31_v54, 0.0  ;;  %v35_v14 = vld [vmem:[%s434_s0 + $0x90] sm:$0xff] }
   0xa   :  { %v160_v50 = vadd.f32 %v159_v41, %v158_v44  ;;  %v131_v58 = vmul.f32 %v24_v19, %v24_v19  ;;  %v165_v59 = vsel %vm50_vm1, %v129_v46, 0.0  ;;  %v80_v63 = vsel %vm50_vm1, %v32_v60, 0.0  ;;  %v39_v38 = vld [vmem:[%s434_s0 + $0xb0] sm:$0xff]  ;;  %v40_v44 = vld [vmem:[%s434_s0 + $0xb8] sm:$0xff] }
   0xb   :  { %v61_v20 = vadd.f32 %v60_v15, %v59_v17  ;;  %v132_v0 = vmul.f32 %v25_v22, %v25_v22  ;;  %v167_v1 = vsel %vm50_vm1, %v130_v52, 0.0  ;;  %v82_v5 = vsel %vm50_vm1, %v33_v2, 0.0 }
   0xc   :  { %v162_v56 = vadd.f32 %v161_v47, %v160_v50  ;;  %v133_v6 = vmul.f32 %v26_v25, %v26_v25  ;;  %v169_v7 = vsel %vm50_vm1, %v131_v58, 0.0  ;;  %v84_v11 = vsel %vm50_vm1, %v34_v8, 0.0  ;;  %v41_v50 = vld [vmem:[%s434_s0 + $0xc0] sm:$0xff] }
   0xd   :  { %v63_v23 = vadd.f32 %v62_v18, %v61_v20  ;;  %v134_v12 = vmul.f32 %v27_v31, %v27_v31  ;;  %v171_v13 = vsel %vm50_vm1, %v132_v0, 0.0  ;;  %v86_v17 = vsel %vm50_vm1, %v35_v14, 0.0  ;;  %v36_v20 = vld [vmem:[%s434_s0 + $0x98] sm:$0xff] }
   0xe   :  { %v164_v62 = vadd.f32 %v163_v53, %v162_v56  ;;  %v135_v18 = vmul.f32 %v28_v33, %v28_v33  ;;  %v173_v19 = vsel %vm50_vm1, %v133_v6, 0.0  ;;  %v137_v30 = vmul.f32 %v30_v48, %v30_v48  ;;  %v42_v56 = vld [vmem:[%s434_s0 + $0xc8] sm:$0xff] }
   0xf   :  { %v65_v26 = vadd.f32 %v64_v21, %v63_v23  ;;  %v88_v23 = vsel %vm50_vm1, %v36_v20, 0.0  ;;  %v175_v25 = vsel %vm50_vm1, %v134_v12, 0.0  ;;  %v94_v41 = vsel %vm50_vm1, %v39_v38, 0.0 }
  0x10   :  { %v166_v4 = vadd.f32 %v165_v59, %v164_v62  ;;  %v177_v31 = vsel %vm50_vm1, %v135_v18, 0.0  ;;  %v96_v47 = vsel %vm50_vm1, %v40_v44, 0.0  ;;  %v140_v48 = vmul.f32 %v33_v2, %v33_v2  ;;  %v43_v62 = vld [vmem:[%s434_s0 + $0xd0] sm:$0xff] }
  0x11   :  { %v67_v32 = vadd.f32 %v66_v24, %v65_v26  ;;  %v136_v24 = vmul.f32 %v29_v42, %v29_v42  ;;  %v37_v26 = vld [vmem:[%s434_s0 + $0xa0] sm:$0xff]  ;;  %v139_v42 = vmul.f32 %v32_v60, %v32_v60  ;;  %v98_v53 = vsel %vm50_vm1, %v41_v50, 0.0 }
  0x12   :  { %v168_v10 = vadd.f32 %v167_v1, %v166_v4  ;;  %v90_v29 = vsel %vm50_vm1, %v37_v26, 0.0  ;;  %v100_v59 = vsel %vm50_vm1, %v42_v56, 0.0  ;;  %v142_v60 = vmul.f32 %v35_v14, %v35_v14  ;;  %v44_v4 = vld [vmem:[%s434_s0 + $0xd8] sm:$0xff] }
  0x13   :  { %v69_v36 = vadd.f32 %v68_v27, %v67_v32  ;;  %v38_v32 = vld [vmem:[%s434_s0 + $0xa8] sm:$0xff]  ;;  %v102_v1 = vsel %vm50_vm1, %v43_v62, 0.0  ;;  %v143_v2 = vmul.f32 %v36_v20, %v36_v20  ;;  %v146_v20 = vmul.f32 %v39_v38, %v39_v38 }
  0x14   :  { %v170_v16 = vadd.f32 %v169_v7, %v168_v10  ;;  %v92_v35 = vsel %vm50_vm1, %v38_v32, 0.0  ;;  %v104_v7 = vsel %vm50_vm1, %v44_v4, 0.0  ;;  %v45_v10 = vld [vmem:[%s434_s0 + $0xe0] sm:$0xff]  ;;  %v145_v14 = vmul.f32 %v38_v32, %v38_v32 }
  0x15   :  { %v71_v43 = vadd.f32 %v70_v34, %v69_v36  ;;  %v138_v36 = vmul.f32 %v31_v54, %v31_v54  ;;  %v141_v54 = vmul.f32 %v34_v8, %v34_v8  ;;  %v144_v8 = vmul.f32 %v37_v26, %v37_v26 }
  0x16   :  { %v172_v22 = vadd.f32 %v171_v13, %v170_v16  ;;  %v106_v13 = vsel %vm50_vm1, %v45_v10, 0.0  ;;  %v46_v16 = vld [vmem:[%s434_s0 + $0xe8] sm:$0xff]  ;;  %v147_v26 = vmul.f32 %v40_v44, %v40_v44  ;;  %v148_v32 = vmul.f32 %v41_v50, %v41_v50 }
  0x17   :  { %v73_v49 = vadd.f32 %v72_v37, %v71_v43  ;;  %v179_v37 = vsel %vm50_vm1, %v136_v24, 0.0  ;;  %v181_v43 = vsel %vm50_vm1, %v137_v30, 0.0  ;;  %v151_v44 = vmul.f32 %v44_v4, %v44_v4 }
  0x18   :  { %v174_v28 = vadd.f32 %v173_v19, %v172_v22  ;;  %v108_v19 = vsel %vm50_vm1, %v46_v16, 0.0  ;;  %v47_v22 = vld [vmem:[%s434_s0 + $0xf0] sm:$0xff] }
  0x19   :  { %v75_v55 = vadd.f32 %v74_v45, %v73_v49  ;;  %v183_v49 = vsel %vm50_vm1, %v138_v36, 0.0  ;;  %v149_v36 = vmul.f32 %v42_v56, %v42_v56  ;;  %v154_v56 = vmul.f32 %v47_v22, %v47_v22 }
  0x1a   :  { %v176_v34 = vadd.f32 %v175_v25, %v174_v28  ;;  %v110_v25 = vsel %vm50_vm1, %v47_v22, 0.0  ;;  %v48_v28 = vld [vmem:[%s434_s0 + $0xf8] sm:$0xff] }
  0x1b   :  { %v77_v61 = vadd.f32 %v76_v51, %v75_v55  ;;  %v185_v55 = vsel %vm50_vm1, %v139_v42, 0.0 }
  0x1c   :  { %v178_v40 = vadd.f32 %v177_v31, %v176_v34  ;;  %v112_v31 = vsel %vm50_vm1, %v48_v28, 0.0 }
  0x1d   :  { %v79_v3 = vadd.f32 %v78_v57, %v77_v61  ;;  %v187_v61 = vsel %vm50_vm1, %v140_v48, 0.0  ;;  %v152_v48 = vmul.f32 %v45_v10, %v45_v10 }
  0x1e   :  { %v180_v46 = vadd.f32 %v179_v37, %v178_v40  ;;  %v201_v37 = vsel %vm50_vm1, %v147_v26, 0.0  ;;  %v150_v40 = vmul.f32 %v43_v62, %v43_v62 }
  0x1f   :  { %v81_v9 = vadd.f32 %v80_v63, %v79_v3  ;;  %v189_v3 = vsel %vm50_vm1, %v141_v54, 0.0 }
  0x20   :  { %v182_v52 = vadd.f32 %v181_v43, %v180_v46 }
  0x21   :  { %v83_v15 = vadd.f32 %v82_v5, %v81_v9  ;;  %v191_v9 = vsel %vm50_vm1, %v142_v60, 0.0  ;;  %v49_v60 = vld [vmem:[%s435_s1] sm:$0x1] }
  0x22   :  { %v184_v58 = vadd.f32 %v183_v49, %v182_v52  ;;  %v207_v49 = vsel %vm50_vm1, %v150_v40, 0.0  ;;  %v153_v52 = vmul.f32 %v46_v16, %v46_v16 }
  0x23   :  { %v85_v21 = vadd.f32 %v84_v11, %v83_v15  ;;  %v193_v15 = vsel %vm50_vm1, %v143_v2, 0.0 }
  0x24   :  { %v186_v0 = vadd.f32 %v185_v55, %v184_v58  ;;  %v213_v62 = vsel %vm50_vm1, %v153_v52, 0.0 }
  0x25   :  { %v87_v27 = vadd.f32 %v86_v17, %v85_v21  ;;  %v195_v21 = vsel %vm50_vm1, %v144_v8, 0.0 }
  0x26   :  { %v188_v6 = vadd.f32 %v187_v61, %v186_v0  ;;  %v155_v61 = vmul.f32 %v48_v28, %v48_v28 }
  0x27   :  { %v89_v33 = vadd.f32 %v88_v23, %v87_v27  ;;  %v197_v27 = vsel %vm50_vm1, %v145_v14, 0.0 }
  0x28   :  { %v190_v12 = vadd.f32 %v189_v3, %v188_v6  ;;  %v217_v4 = vsel %vm50_vm1, %v155_v61, 0.0 }
  0x29   :  { %v91_v39 = vadd.f32 %v90_v29, %v89_v33  ;;  %v199_v33 = vsel %vm50_vm1, %v146_v20, 0.0 }
  0x2a   :  { %v192_v18 = vadd.f32 %v191_v9, %v190_v12  ;;  %v123_v12 = vld [vmem:[%s436_s2] sm:$0x1] }
  0x2b   :  { %v93_v45 = vadd.f32 %v92_v35, %v91_v39 }
  0x2c   :  { %v194_v24 = vadd.f32 %v193_v15, %v192_v18 }
  0x2d   :  { %v95_v51 = vadd.f32 %v94_v41, %v93_v45  ;;  %v203_v41 = vsel %vm50_vm1, %v148_v32, 0.0  ;;  %v205_v45 = vsel %vm50_vm1, %v149_v36, 0.0 }
  0x2e   :  { %v196_v30 = vadd.f32 %v195_v21, %v194_v24 }
  0x2f   :  { %v97_v57 = vadd.f32 %v96_v47, %v95_v51 }
  0x30   :  { %v198_v35 = vadd.f32 %v197_v27, %v196_v30 }
  0x31   :  { %v99_v63 = vadd.f32 %v98_v53, %v97_v57  ;;  %v209_v53 = vsel %vm50_vm1, %v151_v44, 0.0  ;;  %v211_v57 = vsel %vm50_vm1, %v152_v48, 0.0 }
  0x32   :  { %v200_v39 = vadd.f32 %v199_v33, %v198_v35 }
  0x33   :  { %v101_v5 = vadd.f32 %v100_v59, %v99_v63 }
  0x34   :  { %v202_v43 = vadd.f32 %v201_v37, %v200_v39 }
  0x35   :  { %v103_v11 = vadd.f32 %v102_v1, %v101_v5  ;;  %v215_v1 = vsel %vm50_vm1, %v154_v56, 0.0 }
  0x36   :  { %v204_v47 = vadd.f32 %v203_v41, %v202_v43 }
  0x37   :  { %v105_v17 = vadd.f32 %v104_v7, %v103_v11 }
  0x38   :  { %v206_v51 = vadd.f32 %v205_v45, %v204_v47 }
  0x39   :  { %v107_v23 = vadd.f32 %v106_v13, %v105_v17 }
  0x3a   :  { %v208_v55 = vadd.f32 %v207_v49, %v206_v51 }
  0x3b   :  { %v109_v29 = vadd.f32 %v108_v19, %v107_v23 }
  0x3c   :  { %v210_v59 = vadd.f32 %v209_v53, %v208_v55 }
  0x3d   :  { %v111_v34 = vadd.f32 %v110_v25, %v109_v29 }
  0x3e   :  { %v212_v0 = vadd.f32 %v211_v57, %v210_v59 }
  0x3f   :  { %v113_v38 = vadd.f32 %v112_v31, %v111_v34 }
  0x40   :  { %v214_v3 = vadd.f32 %v213_v62, %v212_v0 }
  0x41   :  { %v114_v42 = vrot.slane %v113_v38, 4 }
  0x42   :  { %v216_v5 = vadd.f32 %v215_v1, %v214_v3 }
  0x43   :  { %v115_v46 = vadd.f32 %v114_v42, %v113_v38 }
  0x44   :  { %v218_v6 = vadd.f32 %v217_v4, %v216_v5 }
  0x45   :  { %v116_v50 = vrot.slane %v115_v46, 2 }
  0x46   :  { %v219_v7 = vrot.slane %v218_v6, 4 }
  0x47   :  { %v117_v54 = vadd.f32 %v116_v50, %v115_v46 }
  0x48   :  { %v220_v8 = vadd.f32 %v219_v7, %v218_v6 }
  0x49   :  { %v118_v58 = vrot.slane %v117_v54, 1 }
  0x4a   :  { %v221_v9 = vrot.slane %v220_v8, 2 }
  0x4b   :  { %v119_v63 = vadd.f32 %v118_v58, %v117_v54 }
  0x4c   :  { %v222_v10 = vadd.f32 %v221_v9, %v220_v8 }
  0x4d   :  { %v120_v2 = vadd.f32 %v119_v63, %v49_v60 }
  0x4e   :  { %v223_v11 = vrot.slane %v222_v10, 1 }
  0x4f   :  { %122 = vst.msk [vmem:[%s435_s1] sm:$0x1] %vm14_vm0, %v120_v2 }
  0x50   :  { %v224_v13 = vadd.f32 %v223_v11, %v222_v10 }
  0x52   :  { %v225_v14 = vadd.f32 %v224_v13, %v123_v12 }
  0x54   :  { %226 = vst.msk [vmem:[%s436_s2] sm:$0x1] %vm14_vm0, %v225_v14 }

// kernel: endec_block_forward.9
= control target key start
LH: loop header
LB: loop body
LE: loop exit
PB: predicated region body
PF: predicated region fallthrough
CT: control target
= control target key end

     0   :  { %14 = vsyncpa [#allocation3], 0  ;;  %s4901_s0 = inlined_call_operand.vmem [shape: f32[4,80,16], index: 0, kind: input, shape index: {}]   ;;  %s4902_s1 = inlined_call_operand.vmem [shape: f32[4,80,16], index: 1, kind: input, shape index: {}]   ;;  %s4903_s2 = inlined_call_operand.vmem [shape: f32[4,80,16], index: 2, kind: input, shape index: {}]   ;;  %s4904_s3 = inlined_call_operand.vmem [shape: f32[4,80,16], index: 3, kind: input, shape index: {}]   ;;  %s4905_s4 = inlined_call_operand.vmem [shape: f32[4,80,16], index: 4, kind: input, shape index: {}]   ;;  %s4906_s5 = inlined_call_operand.vmem [shape: f32[4,80,16], index: 5, kind: input, shape index: {}]   ;;  %s4907_s6 = inlined_call_operand.vmem [shape: f32[144,16], index: 6, kind: input, shape index: {}]   ;;  %s4908_s7 = inlined_call_operand.vmem [shape: f32[144,16], index: 7, kind: input, shape index: {}]   ;;  %s4909_s8 = inlined_call_operand.vmem [shape: f32[1,64,16], index: 8, kind: input, shape index: {}]   ;;  %s4910_s9 = inlined_call_operand.hbm [shape: f32[4,64,16], index: 9, kind: output, shape index: {}]  }
   0x1   :  { %16 = vsyncpa [#allocation3 + $0x1], 0  ;;  %s4024_s30 = smov 0   ;;  %s4026_s10 = smov 0  }
   0x2   :  { %s4028_s11 = smov 0   ;;  %s4030_s12 = smov 0  }
   0x3 LB: > { %s4045_s13 = sadd.s32 4294967295, %s3969_s12   ;;  %s3238_s14 = sadd.s32 4294967294, %s3969_s12   ;;  %s3969_s12 = sphi %s4030_s12, %s4936_s12   ;;  %s3965_s11 = sphi %s4028_s11, %s4935_s11   ;;  %s3961_s10 = sphi %s4026_s10, %s4934_s10   ;;  %s3957_s30 = sphi %s4024_s30, %s4933_s30  }
   0x4   : > { %s4049_s15 = sadd.s32 1, %s3969_s12   ;;  %s248_s16 = sadd.s32 1, %s3965_s11 }
   0x5   : > { %s245_s17 = ssub.s32 %s3969_s12, %s4049_s15  ;;  %p258_p0 = scmp.ne.s32.totalorder %s3965_s11, %s3961_s10 }
   0x6   : > { %p246_p1 = scmp.eq.s32.totalorder %s245_s17, 0  ;;  %p259_p2 = scmp.eq.s32.totalorder %s4045_s13, 3 }
   0x7   : > { %p264_p3 = scmp.ne.s32.totalorder %s3961_s10, %s3957_s30  ;;  %p265_p4 = scmp.eq.s32.totalorder %s3238_s14, 3 }
   0x8   : > { %s4060_s18 = scalar_select %p246_p1, %s3965_s11, %s248_s16  }
   0x9   : > { %p4062_p5 = por %p259_p2, %p258_p0  ;;  %p4066_p6 = por %p265_p4, %p264_p3 }
   0xa   : > { %p3241_p7 = scmp.ge.s32.totalorder %s3969_s12, 1  ;;  %p340_p8 = scmp.lt.s32.totalorder %s3969_s12, 5 }
   0xc   : > { %p341_p9 = pnand %p3241_p7, %p340_p8 }
   0xe   : > { %344 = sbr.rel (%p341_p9) target bundleno = 383 (0x17f), region = 56 }
  0x13   : > { %v448_v0 = vld [vmem:[%s4907_s6 + $0x8] sm:$0xff]  ;;  %v447_v2 = vld [vmem:[%s4907_s6] sm:$0xff]  ;;  %p401_p10 = scmp.lt.s32.totalorder %s4045_s13, 3  ;;  %v743_v4 = vld [vmem:[%s4907_s6 + $0x18] sm:$0xff]  ;;  %vm449_vm0 = vcmask 130048   ;;  %s398_s24 = sand.u32 1, %s3961_s10  }
  0x14   : > { %v596_v1 = vld [vmem:[%s4908_s7 + $0x8] sm:$0xff]  ;;  %3579 = vmatprep.subr.mxu0 %v448_v0  ;;  %v595_v3 = vld [vmem:[%s4908_s7] sm:$0xff]  ;;  %v890_v5 = vld [vmem:[%s4908_s7 + $0x18] sm:$0xff]  ;;  %s3398_s26 = sshll.u32 %s4045_s13, 10 }
  0x15   : > { %3595 = vmatprep.subr.mxu1 %v596_v1  ;;  %3580 = vmatpush3.msra.mxu0 %v448_v0  ;;  %s402_s29 = scalar_select %p401_p10, %s4045_s13, 3  ;;  %v742_v12 = vld [vmem:[%s4907_s6 + $0x10] sm:$0xff]  ;;  %v1037_v18 = vld [vmem:[%s4907_s6 + $0x28] sm:$0xff]  ;;  %v1036_v32 = vld [vmem:[%s4907_s6 + $0x20] sm:$0xff] }
  0x16   : > { %3596 = vmatpush3.msra.mxu1 %v596_v1  ;;  %3581 = vmatprep.subr.mxu0 %v447_v2  ;;  %v889_v13 = vld [vmem:[%s4908_s7 + $0x10] sm:$0xff]  ;;  %v1184_v19 = vld [vmem:[%s4908_s7 + $0x28] sm:$0xff]  ;;  %v1183_v33 = vld [vmem:[%s4908_s7 + $0x20] sm:$0xff]  ;;  %s4861_s13 = scalar_lea.sflag [#allocation3], %s398_s24 }
  0x17   : > { %3597 = vmatprep.subr.mxu1 %v595_v3  ;;  %3582 = vmatpush3.msra.mxu0 %v447_v2  ;;  %s4092_s22 = smul.u32 80, %s402_s29  ;;  %v1331_v38 = vld [vmem:[%s4907_s6 + $0x38] sm:$0xff]  ;;  %v1330_v52 = vld [vmem:[%s4907_s6 + $0x30] sm:$0xff]  ;;  %v1625_v58 = vld [vmem:[%s4907_s6 + $0x48] sm:$0xff] }
  0x18   : > { %3598 = vmatpush3.msra.mxu1 %v595_v3  ;;  %3611 = vmatprep.subr.mxu0 %v743_v4  ;;  %v1478_v39 = vld [vmem:[%s4908_s7 + $0x38] sm:$0xff]  ;;  %v1477_v53 = vld [vmem:[%s4908_s7 + $0x30] sm:$0xff]  ;;  %v1772_v59 = vld [vmem:[%s4908_s7 + $0x48] sm:$0xff] }
  0x19   : > { %3627 = vmatprep.subr.mxu1 %v890_v5  ;;  %s4098_s25 = scalar_lea.vmem %s4901_s0, %s4092_s22  ;;  %s4104_s28 = scalar_lea.vmem %s4904_s3, %s4092_s22  ;;  %v1624_v2 = vld [vmem:[%s4907_s6 + $0x40] sm:$0xff] }
  0x1a   : > { %v439_v6 = vld [vmem:[%s4098_s25] sm:$0xff]  ;;  %v4109_v8 = vld [vmem:[%s4098_s25 + $0x8] sm:$0xff]  ;;  %v4117_v10 = vld [vmem:[%s4098_s25 + $0x10] sm:$0xff]  ;;  %s4178_s14 = scalar_lea.vmem %s4902_s1, %s4092_s22  ;;  %s4184_s21 = scalar_lea.vmem %s4905_s4, %s4092_s22 }
  0x1b   : > { %v587_v7 = vld [vmem:[%s4104_s28] sm:$0xff]  ;;  %3583 = vmatprep.mubr.msk.f32.mxu0 %vm449_vm0, %v439_v6  ;;  %v4114_v9 = vld [vmem:[%s4104_s28 + $0x8] sm:$0xff]  ;;  %v4120_v11 = vld [vmem:[%s4104_s28 + $0x10] sm:$0xff]  ;;  %s4276_s27 = scalar_lea.vmem %s4903_s2, %s4092_s22  ;;  %s4282_s17 = scalar_lea.vmem %s4906_s5, %s4092_s22 }
  0x1c   : > { %3599 = vmatprep.mubr.msk.f32.mxu1 %vm449_vm0, %v587_v7  ;;  %3584 = vmatmul.mubr.msk.f32.vlgmr.msra.gmra.mxu0 %vm449_vm0, %v4109_v8  ;;  %v4133_v14 = vld [vmem:[%s4098_s25 + $0x18] sm:$0xff]  ;;  %v4143_v16 = vld [vmem:[%s4098_s25 + $0x20] sm:$0xff]  ;;  %v4163_v20 = vld [vmem:[%s4098_s25 + $0x28] sm:$0xff] }
  0x1d   : > { %3600 = vmatmul.mubr.msk.f32.vlgmr.msra.gmra.mxu1 %vm449_vm0, %v4114_v9  ;;  %3612 = vmatpush3.msra.mxu0 %v743_v4  ;;  %v4136_v15 = vld [vmem:[%s4104_s28 + $0x18] sm:$0xff]  ;;  %v4146_v17 = vld [vmem:[%s4104_s28 + $0x20] sm:$0xff]  ;;  %v4166_v21 = vld [vmem:[%s4104_s28 + $0x28] sm:$0xff] }
  0x1e   : > { %3628 = vmatpush3.msra.mxu1 %v890_v5  ;;  %3586 = vmatprep.mubr.msk.f32.mxu0 %vm449_vm0, %v4117_v10  ;;  %v4169_v22 = vld [vmem:[%s4098_s25 + $0x30] sm:$0xff]  ;;  %v4195_v24 = vld [vmem:[%s4098_s25 + $0x38] sm:$0xff]  ;;  %v734_v26 = vld [vmem:[%s4178_s14] sm:$0xff] }
  0x1f   : > { %3602 = vmatprep.mubr.msk.f32.mxu1 %vm449_vm0, %v4120_v11  ;;  %3613 = vmatprep.subr.mxu0 %v742_v12  ;;  %v4172_v23 = vld [vmem:[%s4104_s28 + $0x30] sm:$0xff]  ;;  %v4198_v25 = vld [vmem:[%s4104_s28 + $0x38] sm:$0xff]  ;;  %v881_v27 = vld [vmem:[%s4184_s21] sm:$0xff] }
  0x20   : > { %3629 = vmatprep.subr.mxu1 %v889_v13  ;;  %3587 = vmatmul.mubr.msk.f32.gmra.mxu0 %vm449_vm0, %v4133_v14  ;;  %v4209_v28 = vld [vmem:[%s4178_s14 + $0x8] sm:$0xff]  ;;  %v4215_v30 = vld [vmem:[%s4178_s14 + $0x10] sm:$0xff]  ;;  %v4231_v34 = vld [vmem:[%s4178_s14 + $0x18] sm:$0xff] }
  0x21   : > { %3603 = vmatmul.mubr.msk.f32.gmra.mxu1 %vm449_vm0, %v4136_v15  ;;  %3589 = vmatprep.mubr.msk.f32.mxu0 %vm449_vm0, %v4143_v16  ;;  %v4212_v29 = vld [vmem:[%s4184_s21 + $0x8] sm:$0xff]  ;;  %v4218_v31 = vld [vmem:[%s4184_s21 + $0x10] sm:$0xff]  ;;  %v4234_v35 = vld [vmem:[%s4184_s21 + $0x18] sm:$0xff] }
  0x22   : > { %3605 = vmatprep.mubr.msk.f32.mxu1 %vm449_vm0, %v4146_v17  ;;  %3614 = vmatpush3.msra.mxu0 %v742_v12  ;;  %v4241_v36 = vld [vmem:[%s4178_s14 + $0x20] sm:$0xff]  ;;  %v4261_v40 = vld [vmem:[%s4178_s14 + $0x28] sm:$0xff]  ;;  %v4267_v42 = vld [vmem:[%s4178_s14 + $0x30] sm:$0xff] }
  0x23   : > { %3630 = vmatpush3.msra.mxu1 %v889_v13  ;;  %3643 = vmatprep.subr.mxu0 %v1037_v18  ;;  %v4244_v37 = vld [vmem:[%s4184_s21 + $0x20] sm:$0xff]  ;;  %v4264_v41 = vld [vmem:[%s4184_s21 + $0x28] sm:$0xff]  ;;  %v4270_v43 = vld [vmem:[%s4184_s21 + $0x30] sm:$0xff] }
  0x24   : > { %3659 = vmatprep.subr.mxu1 %v1184_v19  ;;  %3590 = vmatmul.mubr.msk.f32.gmra.mxu0 %vm449_vm0, %v4163_v20  ;;  %v4293_v44 = vld [vmem:[%s4178_s14 + $0x38] sm:$0xff]  ;;  %v1028_v46 = vld [vmem:[%s4276_s27] sm:$0xff]  ;;  %v4307_v48 = vld [vmem:[%s4276_s27 + $0x8] sm:$0xff] }
  0x25   : > { %3606 = vmatmul.mubr.msk.f32.gmra.mxu1 %vm449_vm0, %v4166_v21  ;;  %3592 = vmatprep.mubr.msk.f32.mxu0 %vm449_vm0, %v4169_v22  ;;  %v4296_v45 = vld [vmem:[%s4184_s21 + $0x38] sm:$0xff]  ;;  %v1175_v47 = vld [vmem:[%s4282_s17] sm:$0xff]  ;;  %v4310_v49 = vld [vmem:[%s4282_s17 + $0x8] sm:$0xff] }
  0x26   : > { %3608 = vmatprep.mubr.msk.f32.mxu1 %vm449_vm0, %v4172_v23  ;;  %v4313_v50 = vld [vmem:[%s4276_s27 + $0x10] sm:$0xff]  ;;  %v4329_v54 = vld [vmem:[%s4276_s27 + $0x18] sm:$0xff]  ;;  %v4339_v56 = vld [vmem:[%s4276_s27 + $0x20] sm:$0xff] }
  0x27   : > { %v4316_v51 = vld [vmem:[%s4282_s17 + $0x10] sm:$0xff]  ;;  %v4332_v55 = vld [vmem:[%s4282_s17 + $0x18] sm:$0xff]  ;;  %v4342_v57 = vld [vmem:[%s4282_s17 + $0x20] sm:$0xff] }
  0x28   : > { %3593 = vmatmul.mubr.msk.f32.gmra.mxu0 %vm449_vm0, %v4195_v24  ;;  %v4359_v60 = vld [vmem:[%s4276_s27 + $0x28] sm:$0xff]  ;;  %v4365_v62 = vld [vmem:[%s4276_s27 + $0x30] sm:$0xff]  ;;  %v4379_v0 = vld [vmem:[%s4276_s27 + $0x38] sm:$0xff] }
  0x29   : > { %3609 = vmatmul.mubr.msk.f32.gmra.mxu1 %vm449_vm0, %v4198_v25  ;;  %3615 = vmatprep.mubr.msk.f32.mxu0 %vm449_vm0, %v734_v26  ;;  %v4362_v61 = vld [vmem:[%s4282_s17 + $0x28] sm:$0xff]  ;;  %v4368_v63 = vld [vmem:[%s4282_s17 + $0x30] sm:$0xff]  ;;  %v4382_v1 = vld [vmem:[%s4282_s17 + $0x38] sm:$0xff] }
  0x2a   : > { %3631 = vmatprep.mubr.msk.f32.mxu1 %vm449_vm0, %v881_v27  ;;  %v1771_v3 = vld [vmem:[%s4908_s7 + $0x40] sm:$0xff]  ;;  %v1919_v4 = vld [vmem:[%s4907_s6 + $0x58] sm:$0xff]  ;;  %v2213_v12 = vld [vmem:[%s4907_s6 + $0x68] sm:$0xff] }
  0x2b   : > { %v2066_v5 = vld [vmem:[%s4908_s7 + $0x58] sm:$0xff]  ;;  %v4429_v6 = vld [vmem:[%s4098_s25 + $0x40] sm:$0xff]  ;;  %v2360_v13 = vld [vmem:[%s4908_s7 + $0x68] sm:$0xff] }
  0x2c   : > { %3616 = vmatmul.mubr.msk.f32.vlgmr.msra.gmra.mxu0 %vm449_vm0, %v4209_v28  ;;  %v4432_v7 = vld [vmem:[%s4104_s28 + $0x40] sm:$0xff] }
  0x2d   : > { %3632 = vmatmul.mubr.msk.f32.vlgmr.msra.gmra.mxu1 %vm449_vm0, %v4212_v29  ;;  %3644 = vmatpush3.msra.mxu0 %v1037_v18  ;;  %v4479_v18 = vld [vmem:[%s4178_s14 + $0x40] sm:$0xff] }
  0x2e   : > { %3660 = vmatpush3.msra.mxu1 %v1184_v19  ;;  %3618 = vmatprep.mubr.msk.f32.mxu0 %vm449_vm0, %v4215_v30  ;;  %v4482_v19 = vld [vmem:[%s4184_s21 + $0x40] sm:$0xff] }
  0x2f   : > { %3634 = vmatprep.mubr.msk.f32.mxu1 %vm449_vm0, %v4218_v31  ;;  %3645 = vmatprep.subr.mxu0 %v1036_v32  ;;  %v2212_v26 = vld [vmem:[%s4907_s6 + $0x60] sm:$0xff] }
  0x30   : > { %3661 = vmatprep.subr.mxu1 %v1183_v33  ;;  %3619 = vmatmul.mubr.msk.f32.gmra.mxu0 %vm449_vm0, %v4231_v34  ;;  %v2359_v27 = vld [vmem:[%s4908_s7 + $0x60] sm:$0xff] }
  0x31   : > { %3635 = vmatmul.mubr.msk.f32.gmra.mxu1 %vm449_vm0, %v4234_v35  ;;  %3621 = vmatprep.mubr.msk.f32.mxu0 %vm449_vm0, %v4241_v36 }
  0x32   : > { %3637 = vmatprep.mubr.msk.f32.mxu1 %vm449_vm0, %v4244_v37  ;;  %3646 = vmatpush3.msra.mxu0 %v1036_v32  ;;  %v4529_v32 = vld [vmem:[%s4276_s27 + $0x40] sm:$0xff] }
  0x33   : > { %3662 = vmatpush3.msra.mxu1 %v1183_v33  ;;  %3675 = vmatprep.subr.mxu0 %v1331_v38  ;;  %v4532_v33 = vld [vmem:[%s4282_s17 + $0x40] sm:$0xff] }
  0x34   : > { %3691 = vmatprep.subr.mxu1 %v1478_v39  ;;  %3622 = vmatmul.mubr.msk.f32.gmra.mxu0 %vm449_vm0, %v4261_v40 }
  0x35   : > { %3638 = vmatmul.mubr.msk.f32.gmra.mxu1 %vm449_vm0, %v4264_v41  ;;  %3624 = vmatprep.mubr.msk.f32.mxu0 %vm449_vm0, %v4267_v42 }
  0x36   : > { %3640 = vmatprep.mubr.msk.f32.mxu1 %vm449_vm0, %v4270_v43 }
  0x38   : > { %3625 = vmatmul.mubr.msk.f32.gmra.mxu0 %vm449_vm0, %v4293_v44 }
  0x39   : > { %3641 = vmatmul.mubr.msk.f32.gmra.mxu1 %vm449_vm0, %v4296_v45  ;;  %3647 = vmatprep.mubr.msk.f32.mxu0 %vm449_vm0, %v1028_v46 }
  0x3a   : > { %3663 = vmatprep.mubr.msk.f32.mxu1 %vm449_vm0, %v1175_v47 }
  0x3c   : > { %3648 = vmatmul.mubr.msk.f32.vlgmr.msra.gmra.mxu0 %vm449_vm0, %v4307_v48 }
  0x3d   : > { %3664 = vmatmul.mubr.msk.f32.vlgmr.msra.gmra.mxu1 %vm449_vm0, %v4310_v49  ;;  %3676 = vmatpush3.msra.mxu0 %v1331_v38  ;;  %v2506_v38 = vld [vmem:[%s4907_s6 + $0x70] sm:$0xff] }
  0x3e   : > { %3692 = vmatpush3.msra.mxu1 %v1478_v39  ;;  %3650 = vmatprep.mubr.msk.f32.mxu0 %vm449_vm0, %v4313_v50  ;;  %v2653_v39 = vld [vmem:[%s4908_s7 + $0x70] sm:$0xff] }
  0x3f   : > { %3666 = vmatprep.mubr.msk.f32.mxu1 %vm449_vm0, %v4316_v51  ;;  %3677 = vmatprep.subr.mxu0 %v1330_v52 }
  0x40   : > { %3693 = vmatprep.subr.mxu1 %v1477_v53  ;;  %3651 = vmatmul.mubr.msk.f32.gmra.mxu0 %vm449_vm0, %v4329_v54 }
  0x41   : > { %3667 = vmatmul.mubr.msk.f32.gmra.mxu1 %vm449_vm0, %v4332_v55  ;;  %3653 = vmatprep.mubr.msk.f32.mxu0 %vm449_vm0, %v4339_v56 }
  0x42   : > { %3669 = vmatprep.mubr.msk.f32.mxu1 %vm449_vm0, %v4342_v57  ;;  %3678 = vmatpush3.msra.mxu0 %v1330_v52 }
  0x43   : > { %3694 = vmatpush3.msra.mxu1 %v1477_v53  ;;  %3707 = vmatprep.subr.mxu0 %v1625_v58 }
  0x44   : > { %3723 = vmatprep.subr.mxu1 %v1772_v59  ;;  %3654 = vmatmul.mubr.msk.f32.gmra.mxu0 %vm449_vm0, %v4359_v60 }
  0x45   : > { %3670 = vmatmul.mubr.msk.f32.gmra.mxu1 %vm449_vm0, %v4362_v61  ;;  %3656 = vmatprep.mubr.msk.f32.mxu0 %vm449_vm0, %v4365_v62 }
  0x46   : > { %3672 = vmatprep.mubr.msk.f32.mxu1 %vm449_vm0, %v4368_v63 }
  0x48   : > { %3657 = vmatmul.mubr.msk.f32.gmra.mxu0 %vm449_vm0, %v4379_v0 }
  0x49   : > { %3673 = vmatmul.mubr.msk.f32.gmra.mxu1 %vm449_vm0, %v4382_v1  ;;  %3679 = vmatprep.mubr.msk.f32.mxu0 %vm449_vm0, %v4109_v8  ;;  %v1918_v8 = vld [vmem:[%s4907_s6 + $0x50] sm:$0xff] }
  0x4a   : > { %3695 = vmatprep.mubr.msk.f32.mxu1 %vm449_vm0, %v4114_v9  ;;  %v2065_v9 = vld [vmem:[%s4908_s7 + $0x50] sm:$0xff] }
  0x4c   : > { %3680 = vmatmul.mubr.msk.f32.vlgmr.msra.gmra.mxu0 %vm449_vm0, %v4117_v10 }
  0x4d   : > { %3696 = vmatmul.mubr.msk.f32.vlgmr.msra.gmra.mxu1 %vm449_vm0, %v4120_v11  ;;  %3708 = vmatpush3.msra.mxu0 %v1625_v58 }
  0x4e   : > { %3724 = vmatpush3.msra.mxu1 %v1772_v59  ;;  %3682 = vmatprep.mubr.msk.f32.mxu0 %vm449_vm0, %v4133_v14  ;;  %v438_v59 = vld [vmem:[%s4909_s8 + $0x38] sm:$0xff] }
  0x4f   : > { %3698 = vmatprep.mubr.msk.f32.mxu1 %vm449_vm0, %v4136_v15  ;;  %3709 = vmatprep.subr.mxu0 %v1624_v2 }
  0x50   : > { %3725 = vmatprep.subr.mxu1 %v1771_v3  ;;  %3683 = vmatmul.mubr.msk.f32.gmra.mxu0 %vm449_vm0, %v4143_v16 }
  0x51   : > { %3699 = vmatmul.mubr.msk.f32.gmra.mxu1 %vm449_vm0, %v4146_v17  ;;  %3685 = vmatprep.mubr.msk.f32.mxu0 %vm449_vm0, %v4163_v20 }
  0x52   : > { %3701 = vmatprep.mubr.msk.f32.mxu1 %vm449_vm0, %v4166_v21  ;;  %3710 = vmatpush3.msra.mxu0 %v1624_v2 }
  0x53   : > { %3726 = vmatpush3.msra.mxu1 %v1771_v3  ;;  %3739 = vmatprep.subr.mxu0 %v1919_v4 }
  0x54   : > { %3755 = vmatprep.subr.mxu1 %v2066_v5  ;;  %3686 = vmatmul.mubr.msk.f32.gmra.mxu0 %vm449_vm0, %v4169_v22 }
  0x55   : > { %3702 = vmatmul.mubr.msk.f32.gmra.mxu1 %vm449_vm0, %v4172_v23  ;;  %3688 = vmatprep.mubr.msk.f32.mxu0 %vm449_vm0, %v4195_v24 }
  0x56   : > { %3704 = vmatprep.mubr.msk.f32.mxu1 %vm449_vm0, %v4198_v25 }
  0x58   : > { %3689 = vmatmul.mubr.msk.f32.gmra.mxu0 %vm449_vm0, %v4429_v6 }
  0x59   : > { %3705 = vmatmul.mubr.msk.f32.gmra.mxu1 %vm449_vm0, %v4432_v7  ;;  %3711 = vmatprep.mubr.msk.f32.mxu0 %vm449_vm0, %v4209_v28  ;;  %v2507_v28 = vld [vmem:[%s4907_s6 + $0x78] sm:$0xff] }
  0x5a   : > { %3727 = vmatprep.mubr.msk.f32.mxu1 %vm449_vm0, %v4212_v29  ;;  %v2654_v29 = vld [vmem:[%s4908_s7 + $0x78] sm:$0xff] }
  0x5c   : > { %3712 = vmatmul.mubr.msk.f32.vlgmr.msra.gmra.mxu0 %vm449_vm0, %v4215_v30 }
  0x5d   : > { %3728 = vmatmul.mubr.msk.f32.vlgmr.msra.gmra.mxu1 %vm449_vm0, %v4218_v31  ;;  %3740 = vmatpush3.msra.mxu0 %v1919_v4 }
  0x5e   : > { %3756 = vmatpush3.msra.mxu1 %v2066_v5  ;;  %3714 = vmatprep.mubr.msk.f32.mxu0 %vm449_vm0, %v4231_v34 }
  0x5f   : > { %3730 = vmatprep.mubr.msk.f32.mxu1 %vm449_vm0, %v4234_v35  ;;  %3741 = vmatprep.subr.mxu0 %v1918_v8 }
  0x60   : > { %3757 = vmatprep.subr.mxu1 %v2065_v9  ;;  %3715 = vmatmul.mubr.msk.f32.gmra.mxu0 %vm449_vm0, %v4241_v36 }
  0x61   : > { %3731 = vmatmul.mubr.msk.f32.gmra.mxu1 %vm449_vm0, %v4244_v37  ;;  %3717 = vmatprep.mubr.msk.f32.mxu0 %vm449_vm0, %v4261_v40 }
  0x62   : > { %3733 = vmatprep.mubr.msk.f32.mxu1 %vm449_vm0, %v4264_v41  ;;  %3742 = vmatpush3.msra.mxu0 %v1918_v8 }
  0x63   : > { %3758 = vmatpush3.msra.mxu1 %v2065_v9  ;;  %3771 = vmatprep.subr.mxu0 %v2213_v12 }
  0x64   : > { %3787 = vmatprep.subr.mxu1 %v2360_v13  ;;  %3718 = vmatmul.mubr.msk.f32.gmra.mxu0 %vm449_vm0, %v4267_v42 }
  0x65   : > { %3734 = vmatmul.mubr.msk.f32.gmra.mxu1 %vm449_vm0, %v4270_v43  ;;  %3720 = vmatprep.mubr.msk.f32.mxu0 %vm449_vm0, %v4293_v44 }
  0x66   : > { %3736 = vmatprep.mubr.msk.f32.mxu1 %vm449_vm0, %v4296_v45 }
  0x68   : > { %3721 = vmatmul.mubr.msk.f32.gmra.mxu0 %vm449_vm0, %v4479_v18 }
  0x69   : > { %3737 = vmatmul.mubr.msk.f32.gmra.mxu1 %vm449_vm0, %v4482_v19  ;;  %3743 = vmatprep.mubr.msk.f32.mxu0 %vm449_vm0, %v4307_v48 }
  0x6a   : > { %3759 = vmatprep.mubr.msk.f32.mxu1 %vm449_vm0, %v4310_v49  ;;  %v436_v49 = vld [vmem:[%s4909_s8 + $0x28] sm:$0xff] }
  0x6c   : > { %3744 = vmatmul.mubr.msk.f32.vlgmr.msra.gmra.mxu0 %vm449_vm0, %v4313_v50 }
  0x6d   : > { %3760 = vmatmul.mubr.msk.f32.vlgmr.msra.gmra.mxu1 %vm449_vm0, %v4316_v51  ;;  %3772 = vmatpush3.msra.mxu0 %v2213_v12 }
  0x6e   : > { %3788 = vmatpush3.msra.mxu1 %v2360_v13  ;;  %3746 = vmatprep.mubr.msk.f32.mxu0 %vm449_vm0, %v4329_v54 }
  0x6f   : > { %3762 = vmatprep.mubr.msk.f32.mxu1 %vm449_vm0, %v4332_v55  ;;  %3773 = vmatprep.subr.mxu0 %v2212_v26 }
  0x70   : > { %3789 = vmatprep.subr.mxu1 %v2359_v27  ;;  %3747 = vmatmul.mubr.msk.f32.gmra.mxu0 %vm449_vm0, %v4339_v56 }
  0x71   : > { %3763 = vmatmul.mubr.msk.f32.gmra.mxu1 %vm449_vm0, %v4342_v57  ;;  %3749 = vmatprep.mubr.msk.f32.mxu0 %vm449_vm0, %v4359_v60 }
  0x72   : > { %3765 = vmatprep.mubr.msk.f32.mxu1 %vm449_vm0, %v4362_v61  ;;  %3774 = vmatpush3.msra.mxu0 %v2212_v26 }
  0x73   : > { %3790 = vmatpush3.msra.mxu1 %v2359_v27  ;;  %3803 = vmatprep.subr.mxu0 %v2507_v28 }
  0x74   : > { %3819 = vmatprep.subr.mxu1 %v2654_v29  ;;  %3750 = vmatmul.mubr.msk.f32.gmra.mxu0 %vm449_vm0, %v4365_v62 }
  0x75   : > { %3766 = vmatmul.mubr.msk.f32.gmra.mxu1 %vm449_vm0, %v4368_v63  ;;  %3752 = vmatprep.mubr.msk.f32.mxu0 %vm449_vm0, %v4379_v0 }
  0x76   : > { %3768 = vmatprep.mubr.msk.f32.mxu1 %vm449_vm0, %v4382_v1 }
  0x78   : > { %3753 = vmatmul.mubr.msk.f32.gmra.mxu0 %vm449_vm0, %v4529_v32 }
  0x79   : > { %3769 = vmatmul.mubr.msk.f32.gmra.mxu1 %vm449_vm0, %v4532_v33  ;;  %3775 = vmatprep.mubr.msk.f32.mxu0 %vm449_vm0, %v4117_v10  ;;  %v2801_v10 = vld [vmem:[%s4907_s6 + $0x88] sm:$0xff] }
  0x7a   : > { %3791 = vmatprep.mubr.msk.f32.mxu1 %vm449_vm0, %v4120_v11  ;;  %v2948_v11 = vld [vmem:[%s4908_s7 + $0x88] sm:$0xff] }
  0x7c   : > { %3776 = vmatmul.mubr.msk.f32.vlgmr.msra.gmra.mxu0 %vm449_vm0, %v4133_v14  ;;  %v2211_v14 = vld [vmem:[%s4098_s25 + $0x48] sm:$0xff] }
  0x7d   : > { %3792 = vmatmul.mubr.msk.f32.vlgmr.msra.gmra.mxu1 %vm449_vm0, %v4136_v15  ;;  %3804 = vmatpush3.msra.mxu0 %v2507_v28  ;;  %v2358_v15 = vld [vmem:[%s4104_s28 + $0x48] sm:$0xff]  ;;  %s4851_s28 = scalar_lea.hbm %s4910_s9, %s3398_s26 }
  0x7e   : > { %3820 = vmatpush3.msra.mxu1 %v2654_v29  ;;  %3778 = vmatprep.mubr.msk.f32.mxu0 %vm449_vm0, %v4143_v16  ;;  %v2800_v16 = vld [vmem:[%s4907_s6 + $0x80] sm:$0xff] }
  0x7f   : > { %3794 = vmatprep.mubr.msk.f32.mxu1 %vm449_vm0, %v4146_v17  ;;  %3805 = vmatprep.subr.mxu0 %v2506_v38  ;;  %v2947_v17 = vld [vmem:[%s4908_s7 + $0x80] sm:$0xff] }
  0x80   : > { %3821 = vmatprep.subr.mxu1 %v2653_v39  ;;  %3779 = vmatmul.mubr.msk.f32.gmra.mxu0 %vm449_vm0, %v4163_v20  ;;  %v2505_v20 = vld [vmem:[%s4178_s14 + $0x48] sm:$0xff] }
  0x81   : > { %3795 = vmatmul.mubr.msk.f32.gmra.mxu1 %vm449_vm0, %v4166_v21  ;;  %3781 = vmatprep.mubr.msk.f32.mxu0 %vm449_vm0, %v4169_v22  ;;  %v2652_v21 = vld [vmem:[%s4184_s21 + $0x48] sm:$0xff]  ;;  %s3971_s21 = smov [#allocation2]  }
  0x82   : > { %3797 = vmatprep.mubr.msk.f32.mxu1 %vm449_vm0, %v4172_v23  ;;  %3806 = vmatpush3.msra.mxu0 %v2506_v38  ;;  %v2799_v22 = vld [vmem:[%s4276_s27 + $0x48] sm:$0xff]  ;;  %s3242_s27 = sshll.u32 %s398_s24, 6  ;;  %s3913_s22 = sshll.u32 %s3971_s21, 4  ;;  %s3914_s22 = int_to_ptr.vmem [resolvable:$false] %s3913_s22 }
  0x83   : > { %3822 = vmatpush3.msra.mxu1 %v2653_v39  ;;  %3835 = vmatprep.subr.mxu0 %v2801_v10  ;;  %v2946_v23 = vld [vmem:[%s4282_s17 + $0x48] sm:$0xff]  ;;  %s4832_s17 = scalar_lea.vmem [#allocation2], %s3242_s27  ;;  %s3915_s23 = scalar_lea.vmem %s3914_s22, 2048 }
  0x84   : > { %3851 = vmatprep.subr.mxu1 %v2948_v11  ;;  %3782 = vmatmul.mubr.msk.f32.gmra.mxu0 %vm449_vm0, %v4195_v24  ;;  %v432_v24 = vld [vmem:[%s4909_s8 + $0x8] sm:$0xff]  ;;  %s3116_s29 = sshll.u32 %s4832_s17, 4  ;;  %s4853_s29 = int_to_ptr.vmem [resolvable:$true] %s3116_s29 }
  0x85   : > { %3798 = vmatmul.mubr.msk.f32.gmra.mxu1 %vm449_vm0, %v4198_v25  ;;  %3784 = vmatprep.mubr.msk.f32.mxu0 %vm449_vm0, %v4429_v6  ;;  %s3909_s14 = scalar_lea.vmem %s4853_s29, 1024  ;;  %p3916_p0 = scmp.lt.s32.totalorder %s4853_s29, %s3914_s22 }
  0x86   : > { %3800 = vmatprep.mubr.msk.f32.mxu1 %vm449_vm0, %v4432_v7  ;;  %p3910_p11 = scmp.ne.s32.totalorder %s4853_s29, %s3909_s14  ;;  %p3917_p1 = scmp.lt.s32.totalorder %s3915_s23, %s3909_s14 }
  0x88   : > { %3785 = vmatmul.mubr.msk.f32.gmra.mxu0 %vm449_vm0, %v2211_v14  ;;  %p3911_p12 = pnand %p3910_p11, %p4062_p5  ;;  %p3918_p2 = por %p3917_p1, %p3916_p0 }
  0x89   : > { %3801 = vmatmul.mubr.msk.f32.gmra.mxu1 %vm449_vm0, %v2358_v15  ;;  %3807 = vmatprep.mubr.msk.f32.mxu0 %vm449_vm0, %v4215_v30 }
  0x8a   : > { %3823 = vmatprep.mubr.msk.f32.mxu1 %vm449_vm0, %v4218_v31  ;;  %v431_v31 = vld [vmem:[%s4909_s8] sm:$0xff]  ;;  %p3912_p13 = pneg %p3911_p12 }
  0x8c   : > { %3808 = vmatmul.mubr.msk.f32.vlgmr.msra.gmra.mxu0 %vm449_vm0, %v4231_v34  ;;  %p3919_p3 = pnand %p3918_p2, %p3912_p13 }
  0x8d   : > { %3824 = vmatmul.mubr.msk.f32.vlgmr.msra.gmra.mxu1 %vm449_vm0, %v4234_v35  ;;  %3836 = vmatpush3.msra.mxu0 %v2801_v10 }
  0x8e   : > { %3852 = vmatpush3.msra.mxu1 %v2948_v11  ;;  %3810 = vmatprep.mubr.msk.f32.mxu0 %vm449_vm0, %v4241_v36 }
  0x8f   : > { %3826 = vmatprep.mubr.msk.f32.mxu1 %vm449_vm0, %v4244_v37  ;;  %3837 = vmatprep.subr.mxu0 %v2800_v16  ;;  %v434_v37 = vld [vmem:[%s4909_s8 + $0x18] sm:$0xff] }
  0x90   : > { %3853 = vmatprep.subr.mxu1 %v2947_v17  ;;  %3811 = vmatmul.mubr.msk.f32.gmra.mxu0 %vm449_vm0, %v4261_v40 }
  0x91   : > { %3827 = vmatmul.mubr.msk.f32.gmra.mxu1 %vm449_vm0, %v4264_v41  ;;  %3813 = vmatprep.mubr.msk.f32.mxu0 %vm449_vm0, %v4267_v42 }
  0x92   : > { %3829 = vmatprep.mubr.msk.f32.mxu1 %vm449_vm0, %v4270_v43  ;;  %3838 = vmatpush3.msra.mxu0 %v2800_v16 }
  0x93   : > { %3854 = vmatpush3.msra.mxu1 %v2947_v17 }
  0x94   : > { %3814 = vmatmul.mubr.msk.f32.gmra.mxu0 %vm449_vm0, %v4293_v44  ;;  %v433_v44 = vld [vmem:[%s4909_s8 + $0x10] sm:$0xff] }
  0x95   : > { %3830 = vmatmul.mubr.msk.f32.gmra.mxu1 %vm449_vm0, %v4296_v45  ;;  %3816 = vmatprep.mubr.msk.f32.mxu0 %vm449_vm0, %v4479_v18 }
  0x96   : > { %3832 = vmatprep.mubr.msk.f32.mxu1 %vm449_vm0, %v4482_v19 }
  0x98   : > { %3817 = vmatmul.mubr.msk.f32.gmra.mxu0 %vm449_vm0, %v2505_v20 }
  0x99   : > { %3833 = vmatmul.mubr.msk.f32.gmra.mxu1 %vm449_vm0, %v2652_v21  ;;  %3839 = vmatprep.mubr.msk.f32.mxu0 %vm449_vm0, %v4313_v50 }
  0x9a   : > { %3855 = vmatprep.mubr.msk.f32.mxu1 %vm449_vm0, %v4316_v51 }
  0x9c   : > { %3840 = vmatmul.mubr.msk.f32.vlgmr.msra.gmra.mxu0 %vm449_vm0, %v4329_v54  ;;  %v435_v54 = vld [vmem:[%s4909_s8 + $0x20] sm:$0xff] }
  0x9d   : > { %3856 = vmatmul.mubr.msk.f32.vlgmr.msra.gmra.mxu1 %vm449_vm0, %v4332_v55  ;;  %3842 = vmatprep.mubr.msk.f32.mxu0 %vm449_vm0, %v4339_v56 }
  0x9e   : > { %3858 = vmatprep.mubr.msk.f32.mxu1 %vm449_vm0, %v4342_v57 }
  0xa0   : > { %3843 = vmatmul.mubr.msk.f32.gmra.mxu0 %vm449_vm0, %v4359_v60 }
  0xa1   : > { %3859 = vmatmul.mubr.msk.f32.gmra.mxu1 %vm449_vm0, %v4362_v61  ;;  %3845 = vmatprep.mubr.msk.f32.mxu0 %vm449_vm0, %v4365_v62 }
  0xa2   : > { %3861 = vmatprep.mubr.msk.f32.mxu1 %vm449_vm0, %v4368_v63 }
  0xa4   : > { %3846 = vmatmul.mubr.msk.f32.gmra.mxu0 %vm449_vm0, %v4379_v0  ;;  %v437_v0 = vld [vmem:[%s4909_s8 + $0x30] sm:$0xff] }
  0xa5   : > { %3862 = vmatmul.mubr.msk.f32.gmra.mxu1 %vm449_vm0, %v4382_v1  ;;  %3848 = vmatprep.mubr.msk.f32.mxu0 %vm449_vm0, %v4529_v32 }
  0xa6   : > { %3864 = vmatprep.mubr.msk.f32.mxu1 %vm449_vm0, %v4532_v33 }
  0xa8   : > { %3849 = vmatmul.mubr.msk.f32.gmra.mxu0 %vm449_vm0, %v2799_v22 }
  0xa9   : > { %3865 = vmatmul.mubr.msk.f32.gmra.mxu1 %vm449_vm0, %v2946_v23 }
  0xdc   : > { %v3585_v25 = vpop.f32.mrf.mxu0 }
  0xdd   : > { %v3601_v30 = vpop.f32.mrf.mxu1  ;;  %v580_v34 = vadd.f32 %v3585_v25, %v432_v24 }
  0xde   : > { %v540_v35 = vpop.f32.mrf.mxu0 }
  0xdf   : > { %v687_v36 = vpop.f32.mrf.mxu1  ;;  %v727_v40 = vadd.f32 %v3601_v30, %v580_v34  ;;  %v579_v41 = vadd.f32 %v540_v35, %v431_v31 }
  0xe0   : > { %v3588_v42 = vpop.f32.mrf.mxu0 }
  0xe1   : > { %v3604_v43 = vpop.f32.mrf.mxu1  ;;  %v726_v45 = vadd.f32 %v687_v36, %v579_v41  ;;  %v582_v46 = vadd.f32 %v3588_v42, %v434_v37 }
  0xe2   : > { %v550_v47 = vpop.f32.mrf.mxu0 }
  0xe3   : > { %v697_v48 = vpop.f32.mrf.mxu1  ;;  %v729_v50 = vadd.f32 %v3604_v43, %v582_v46  ;;  %v581_v51 = vadd.f32 %v550_v47, %v433_v44 }
  0xe4   : > { %v3591_v52 = vpop.f32.mrf.mxu0 }
  0xe5   : > { %v3607_v53 = vpop.f32.mrf.mxu1  ;;  %v728_v55 = vadd.f32 %v697_v48, %v581_v51  ;;  %v584_v56 = vadd.f32 %v3591_v52, %v436_v49 }
  0xe6   : > { %v560_v57 = vpop.f32.mrf.mxu0 }
  0xe7   : > { %v707_v58 = vpop.f32.mrf.mxu1  ;;  %v731_v60 = vadd.f32 %v3607_v53, %v584_v56  ;;  %v583_v61 = vadd.f32 %v560_v57, %v435_v54 }
  0xe8   : > { %v3594_v62 = vpop.f32.mrf.mxu0 }
  0xe9   : > { %v3610_v63 = vpop.f32.mrf.mxu1  ;;  %v730_v1 = vadd.f32 %v707_v58, %v583_v61  ;;  %v586_v2 = vadd.f32 %v3594_v62, %v438_v59 }
  0xea   : > { %v570_v3 = vpop.f32.mrf.mxu0 }
  0xeb   : > { %v717_v4 = vpop.f32.mrf.mxu1  ;;  %v733_v5 = vadd.f32 %v3610_v63, %v586_v2  ;;  %v585_v6 = vadd.f32 %v570_v3, %v437_v0 }
  0xec   : > { %v3617_v7 = vpop.f32.mrf.mxu0 }
  0xed   : > { %v3633_v8 = vpop.f32.mrf.mxu1  ;;  %v732_v9 = vadd.f32 %v717_v4, %v585_v6  ;;  %v874_v12 = vadd.f32 %v3617_v7, %v727_v40 }
  0xee   : > { %v834_v13 = vpop.f32.mrf.mxu0 }
  0xef   : > { %v981_v18 = vpop.f32.mrf.mxu1  ;;  %v1021_v19 = vadd.f32 %v3633_v8, %v874_v12  ;;  %v873_v26 = vadd.f32 %v834_v13, %v726_v45 }
  0xf0   : > { %v3620_v27 = vpop.f32.mrf.mxu0 }
  0xf1   : > { %v3636_v28 = vpop.f32.mrf.mxu1  ;;  %v1020_v29 = vadd.f32 %v981_v18, %v873_v26  ;;  %v876_v32 = vadd.f32 %v3620_v27, %v729_v50 }
  0xf2   : > { %v844_v33 = vpop.f32.mrf.mxu0 }
  0xf3   : > { %v991_v38 = vpop.f32.mrf.mxu1  ;;  %v1023_v39 = vadd.f32 %v3636_v28, %v876_v32  ;;  %v875_v10 = vadd.f32 %v844_v33, %v728_v55 }
  0xf4   : > { %v3623_v11 = vpop.f32.mrf.mxu0 }
  0xf5   : > { %v3639_v14 = vpop.f32.mrf.mxu1  ;;  %v1022_v15 = vadd.f32 %v991_v38, %v875_v10  ;;  %v878_v16 = vadd.f32 %v3623_v11, %v731_v60 }
  0xf6   : > { %v854_v17 = vpop.f32.mrf.mxu0 }
  0xf7   : > { %v1001_v20 = vpop.f32.mrf.mxu1  ;;  %v1025_v21 = vadd.f32 %v3639_v14, %v878_v16  ;;  %v877_v22 = vadd.f32 %v854_v17, %v730_v1 }
  0xf8   : > { %v3626_v23 = vpop.f32.mrf.mxu0 }
  0xf9   : > { %v3642_v24 = vpop.f32.mrf.mxu1  ;;  %v1024_v25 = vadd.f32 %v1001_v20, %v877_v22  ;;  %v880_v30 = vadd.f32 %v3626_v23, %v733_v5 }
  0xfa   : > { %v864_v31 = vpop.f32.mrf.mxu0 }
  0xfb   : > { %v1011_v34 = vpop.f32.mrf.mxu1  ;;  %v1027_v35 = vadd.f32 %v3642_v24, %v880_v30  ;;  %v879_v36 = vadd.f32 %v864_v31, %v732_v9 }
  0xfc   : > { %v3649_v37 = vpop.f32.mrf.mxu0 }
  0xfd   : > { %v3665_v40 = vpop.f32.mrf.mxu1  ;;  %v1026_v41 = vadd.f32 %v1011_v34, %v879_v36  ;;  %v1168_v42 = vadd.f32 %v3649_v37, %v1021_v19 }
  0xfe   : > { %v1128_v43 = vpop.f32.mrf.mxu0 }
  0xff   : > { %v1275_v44 = vpop.f32.mrf.mxu1  ;;  %v4676_v45 = vadd.f32 %v3665_v40, %v1168_v42  ;;  %v1167_v46 = vadd.f32 %v1128_v43, %v1020_v29 }
 0x100   : > { %v3652_v47 = vpop.f32.mrf.mxu0 }
 0x101   : > { %v3668_v48 = vpop.f32.mrf.mxu1  ;;  %v4678_v49 = vadd.f32 %v1275_v44, %v1167_v46  ;;  %v1170_v50 = vadd.f32 %v3652_v47, %v1023_v39 }
 0x102   : > { %v1138_v51 = vpop.f32.mrf.mxu0 }
 0x103   : > { %v1285_v52 = vpop.f32.mrf.mxu1  ;;  %v4680_v53 = vadd.f32 %v3668_v48, %v1170_v50  ;;  %v1169_v54 = vadd.f32 %v1138_v51, %v1022_v15 }
 0x104   : > { %v3655_v55 = vpop.f32.mrf.mxu0 }
 0x105   : > { %v3671_v56 = vpop.f32.mrf.mxu1  ;;  %v4682_v57 = vadd.f32 %v1285_v52, %v1169_v54  ;;  %v1172_v58 = vadd.f32 %v3655_v55, %v1025_v21 }
 0x106   : > { %v1148_v59 = vpop.f32.mrf.mxu0 }
 0x107   : > { %v1295_v60 = vpop.f32.mrf.mxu1  ;;  %v4684_v61 = vadd.f32 %v3671_v56, %v1172_v58  ;;  %v1171_v62 = vadd.f32 %v1148_v59, %v1024_v25 }
 0x108   : > { %v3658_v63 = vpop.f32.mrf.mxu0 }
 0x109   : > { %v3674_v0 = vpop.f32.mrf.mxu1  ;;  %v4686_v1 = vadd.f32 %v1295_v60, %v1171_v62  ;;  %v1174_v2 = vadd.f32 %v3658_v63, %v1027_v35 }
 0x10a   : > { %v1158_v3 = vpop.f32.mrf.mxu0 }
 0x10b   : > { %v1305_v4 = vpop.f32.mrf.mxu1  ;;  %v4688_v5 = vadd.f32 %v3674_v0, %v1174_v2  ;;  %v1173_v6 = vadd.f32 %v1158_v3, %v1026_v41 }
 0x10c   : > { %v3681_v7 = vpop.f32.mrf.mxu0 }
 0x10d   : > { %v3697_v8 = vpop.f32.mrf.mxu1  ;;  %v4690_v9 = vadd.f32 %v1305_v4, %v1173_v6  ;;  %v1462_v2 = vadd.f32 %v3681_v7, %v4676_v45 }
 0x10e   : > { %v1422_v12 = vpop.f32.mrf.mxu0 }
 0x10f   : > { %v1569_v13 = vpop.f32.mrf.mxu1  ;;  %v1461_v6 = vadd.f32 %v1422_v12, %v4678_v49 }
 0x110   : > { %v3684_v18 = vpop.f32.mrf.mxu0 }
 0x111   : > { %v4692_v19 = vpop.f32.mrf.mxu1 }
 0x112   : > { %v1432_v26 = vpop.f32.mrf.mxu0 }
 0x113   : > { %v4694_v27 = vpop.f32.mrf.mxu1  ;;  %v1463_v45 = vadd.f32 %v1432_v26, %v4682_v57 }
 0x114   : > { %v3687_v28 = vpop.f32.mrf.mxu0 }
 0x115   : > { %v4696_v29 = vpop.f32.mrf.mxu1 }
 0x116   : > { %v1442_v32 = vpop.f32.mrf.mxu0 }
 0x117   : > { %v4698_v33 = vpop.f32.mrf.mxu1 }
 0x118   : > { %v4700_v38 = vpop.f32.mrf.mxu0 }
 0x119   : > { %v4702_v39 = vpop.f32.mrf.mxu1 }
 0x11a   : > { %v4704_v10 = vpop.f32.mrf.mxu0 }
 0x11b   : > { %v4706_v11 = vpop.f32.mrf.mxu1 }
 0x11c   : > { %v3713_v14 = vpop.f32.mrf.mxu0 }
 0x11d   : > { %v3729_v15 = vpop.f32.mrf.mxu1 }
 0x11e   : > { %v1716_v16 = vpop.f32.mrf.mxu0 }
 0x11f   : > { %v1863_v17 = vpop.f32.mrf.mxu1 }
 0x120   : > { %v3716_v20 = vpop.f32.mrf.mxu0 }
 0x121   : > { %v4708_v21 = vpop.f32.mrf.mxu1 }
 0x122   : > { %v1726_v22 = vpop.f32.mrf.mxu0 }
 0x123   : > { %v4710_v23 = vpop.f32.mrf.mxu1 }
 0x124   : > { %v3719_v24 = vpop.f32.mrf.mxu0 }
 0x125   : > { %v4712_v25 = vpop.f32.mrf.mxu1 }
 0x126   : > { %v4714_v30 = vpop.f32.mrf.mxu0 }
 0x127   : > { %v4716_v31 = vpop.f32.mrf.mxu1 }
 0x128   : > { %v4718_v34 = vpop.f32.mrf.mxu0 }
 0x129   : > { %v4720_v35 = vpop.f32.mrf.mxu1 }
 0x12a   : > { %v4722_v36 = vpop.f32.mrf.mxu0 }
 0x12b   : > { %v4724_v37 = vpop.f32.mrf.mxu1 }
 0x12c   : > { %4913 = vst [vmem:[#allocation5_spill] sm:$0xff] %v4724_v37  ;;  %v3745_v40 = vpop.f32.mrf.mxu0  ;;  %v1466_v37 = vadd.f32 %v3687_v28, %v4684_v61  ;;  %v1468_v61 = vadd.f32 %v4700_v38, %v4688_v5 }
 0x12d   : > { %v3761_v41 = vpop.f32.mrf.mxu1 }
 0x12e   : > { %v2010_v42 = vpop.f32.mrf.mxu0  ;;  %v1613_v26 = vadd.f32 %v4696_v29, %v1466_v37  ;;  %v1615_v5 = vadd.f32 %v4702_v39, %v1468_v61 }
 0x12f   : > { %v4726_v43 = vpop.f32.mrf.mxu1 }
 0x130   : > { %v3748_v44 = vpop.f32.mrf.mxu0 }
 0x131   : > { %v4728_v46 = vpop.f32.mrf.mxu1 }
 0x132   : > { %v4730_v47 = vpop.f32.mrf.mxu0 }
 0x133   : > { %v4732_v48 = vpop.f32.mrf.mxu1 }
 0x134   : > { %v4734_v50 = vpop.f32.mrf.mxu0 }
 0x135   : > { %v4736_v51 = vpop.f32.mrf.mxu1 }
 0x136   : > { %4914 = vst [vmem:[#allocation6_spill] sm:$0xff] %v4736_v51  ;;  %v4738_v52 = vpop.f32.mrf.mxu0 }
 0x137   : > { %v4740_v54 = vpop.f32.mrf.mxu1 }
 0x138   : > { %4915 = vst [vmem:[#allocation7_spill] sm:$0xff] %v4740_v54  ;;  %v4742_v55 = vpop.f32.mrf.mxu0 }
 0x139   : > { %4916 = vst [vmem:[#allocation8_spill] sm:$0xff] %v4742_v55  ;;  %v4744_v56 = vpop.f32.mrf.mxu1 }
 0x13a   : > { %4917 = vst [vmem:[#allocation9_spill] sm:$0xff] %v4744_v56  ;;  %v4746_v58 = vpop.f32.mrf.mxu0 }
 0x13b   : > { %4918 = vst [vmem:[#allocation10_spill] sm:$0xff] %v4746_v58  ;;  %v4748_v59 = vpop.f32.mrf.mxu1  ;;  %v1609_v58 = vadd.f32 %v3697_v8, %v1462_v2  ;;  %v1465_v8 = vadd.f32 %v1442_v32, %v4686_v1 }
 0x13c   : > { %4919 = vst [vmem:[#allocation11_spill] sm:$0xff] %v4748_v59  ;;  %v3777_v60 = vpop.f32.mrf.mxu0  ;;  %v1464_v59 = vadd.f32 %v3684_v18, %v4680_v53 }
 0x13d   : > { %v4750_v62 = vpop.f32.mrf.mxu1  ;;  %v1756_v7 = vadd.f32 %v3713_v14, %v1609_v58  ;;  %v1612_v32 = vadd.f32 %v4698_v33, %v1465_v8  ;;  %v1467_v58 = vadd.f32 %v4704_v10, %v4690_v9  ;;  %v1762_v10 = vadd.f32 %v4718_v34, %v1615_v5 }
 0x13e   : > { %v2304_v63 = vpop.f32.mrf.mxu0  ;;  %v1611_v12 = vadd.f32 %v4692_v19, %v1464_v59 }
 0x13f   : > { %v4752_v0 = vpop.f32.mrf.mxu1  ;;  %v1903_v2 = vadd.f32 %v3729_v15, %v1756_v7  ;;  %v1759_v38 = vadd.f32 %v4714_v30, %v1612_v32  ;;  %v1614_v33 = vadd.f32 %v4706_v11, %v1467_v58  ;;  %v1909_v34 = vadd.f32 %v4720_v35, %v1762_v10  ;;  %v4927_v61 = vld [vmem:[#allocation7_spill] sm:$0xff] }
 0x140   : > { %4920 = vst [vmem:[#allocation12_spill] sm:$0xff] %v4752_v0  ;;  %v4755_v3 = vpop.f32.mrf.mxu0  ;;  %v1608_v0 = vadd.f32 %v1569_v13, %v1461_v6  ;;  %v1610_v13 = vadd.f32 %v4694_v27, %v1463_v45  ;;  %v1758_v57 = vadd.f32 %v3716_v20, %v1611_v12  ;;  %v1760_v27 = vadd.f32 %v3719_v24, %v1613_v26 }
 0x141   : > { %v4757_v4 = vpop.f32.mrf.mxu1  ;;  %v2050_v1 = vadd.f32 %v3745_v40, %v1903_v2  ;;  %v1906_v30 = vadd.f32 %v4716_v31, %v1759_v38  ;;  %v1761_v6 = vadd.f32 %v4722_v36, %v1614_v33  ;;  %v4923_v36 = vld [vmem:[#allocation5_spill] sm:$0xff] }
 0x142   : > { %4921 = vst [vmem:[#allocation13_spill] sm:$0xff] %v4757_v4  ;;  %v4760_v54 = vpop.f32.mrf.mxu0  ;;  %v1905_v29 = vadd.f32 %v4708_v21, %v1758_v57  ;;  %v1907_v9 = vadd.f32 %v4712_v25, %v1760_v27 }
 0x143   : > { %v4762_v56 = vpop.f32.mrf.mxu1  ;;  %v2053_v45 = vadd.f32 %v4738_v52, %v1906_v30  ;;  %v1908_v12 = vadd.f32 %v4923_v36, %v1761_v6  ;;  %v4932_v33 = vld [vmem:[#allocation11_spill] sm:$0xff] }
 0x144   : > { %4922 = vst [vmem:[#allocation14_spill] sm:$0xff] %v4762_v56  ;;  %v4765_v55 = vpop.f32.mrf.mxu0  ;;  %v1755_v56 = vadd.f32 %v1716_v16, %v1608_v0  ;;  %v1757_v16 = vadd.f32 %v1726_v22, %v1610_v13  ;;  %v2197_v22 = vadd.f32 %v3761_v41, %v2050_v1  ;;  %v2052_v40 = vadd.f32 %v3748_v44, %v1905_v29  ;;  %v4925_v13 = vld [vmem:[#allocation8_spill] sm:$0xff]  ;;  %v4930_v29 = vld [vmem:[#allocation9_spill] sm:$0xff] }
 0x145   : > { %v4767_v51 = vpop.f32.mrf.mxu1  ;;  %v2056_v2 = vadd.f32 %v4925_v13, %v1909_v34 }
 0x146   : > { %v4771_v4 = vpop.f32.mrf.mxu0  ;;  %v1902_v19 = vadd.f32 %v1863_v17, %v1755_v56  ;;  %v1904_v17 = vadd.f32 %v4710_v23, %v1757_v16  ;;  %v2054_v23 = vadd.f32 %v4734_v50, %v1907_v9  ;;  %v2199_v11 = vadd.f32 %v4728_v46, %v2052_v40  ;;  %v4924_v50 = vld [vmem:[#allocation6_spill] sm:$0xff] }
 0x147   : > { %v4773_v49 = vpop.f32.mrf.mxu1  ;;  %v4926_v35 = vld [vmem:[#allocation12_spill] sm:$0xff] }
 0x148   : > { %v4777_v53 = vpop.f32.mrf.mxu0  ;;  %v2049_v37 = vadd.f32 %v2010_v42, %v1902_v19  ;;  %v2051_v39 = vadd.f32 %v4730_v47, %v1904_v17  ;;  %v2344_v42 = vadd.f32 %v3777_v60, %v2197_v22  ;;  %v2346_v31 = vadd.f32 %v4755_v3, %v2199_v11  ;;  %v4928_v19 = vld [vmem:[#allocation10_spill] sm:$0xff] }
 0x149   : > { %v4779_v18 = vpop.f32.mrf.mxu1  ;;  %v2201_v8 = vadd.f32 %v4924_v50, %v2054_v23  ;;  %v4929_v32 = vld [vmem:[#allocation13_spill] sm:$0xff] }
 0x14a   : > { %v4785_v28 = vpop.f32.mrf.mxu0  ;;  %v2196_v21 = vadd.f32 %v4726_v43, %v2049_v37  ;;  %v2198_v47 = vadd.f32 %v4732_v48, %v2051_v39  ;;  %v2491_v60 = vadd.f32 %v4750_v62, %v2344_v42  ;;  %v2200_v48 = vadd.f32 %v4927_v61, %v2053_v45 }
 0x14b   : > { %v4787_v14 = vpop.f32.mrf.mxu1  ;;  %v2055_v62 = vadd.f32 %v4928_v19, %v1908_v12  ;;  %v2348_v3 = vadd.f32 %v4765_v55, %v2201_v8  ;;  %v2493_v58 = vadd.f32 %v4929_v32, %v2346_v31  ;;  %v2203_v37 = vadd.f32 %v4930_v29, %v2056_v2 }
 0x14c   : > { %v3809_v15 = vpop.f32.mrf.mxu0  ;;  %v2343_v25 = vadd.f32 %v2304_v63, %v2196_v21  ;;  %v2345_v52 = vadd.f32 %v4760_v54, %v2198_v47  ;;  %v2347_v5 = vadd.f32 %v4771_v4, %v2200_v48  ;;  %v4931_v54 = vld [vmem:[#allocation14_spill] sm:$0xff] }
 0x14d   : > { %v3825_v20 = vpop.f32.mrf.mxu1  ;;  %v2638_v26 = vadd.f32 %v3809_v15, %v2491_v60  ;;  %v2202_v9 = vadd.f32 %v4932_v33, %v2055_v62  ;;  %v2495_v55 = vadd.f32 %v4767_v51, %v2348_v3  ;;  %v2350_v10 = vadd.f32 %v4777_v53, %v2203_v37 }
 0x14e   : > { %v2598_v59 = vpop.f32.mrf.mxu0  ;;  %v2490_v57 = vadd.f32 %v4926_v35, %v2343_v25  ;;  %v2492_v15 = vadd.f32 %v4931_v54, %v2345_v52  ;;  %v2494_v4 = vadd.f32 %v4773_v49, %v2347_v5 }
 0x14f   : > { %v2745_v0 = vpop.f32.mrf.mxu1  ;;  %v2785_v22 = vadd.f32 %v3825_v20, %v2638_v26  ;;  %v2349_v6 = vadd.f32 %v4785_v28, %v2202_v9  ;;  %v2497_v51 = vadd.f32 %v4779_v18, %v2350_v10 }
 0x150   : > { %v3812_v24 = vpop.f32.mrf.mxu0  ;;  %v2637_v27 = vadd.f32 %v2598_v59, %v2490_v57 }
 0x151   : > { %v3828_v56 = vpop.f32.mrf.mxu1  ;;  %v2640_v40 = vadd.f32 %v3812_v24, %v2493_v58  ;;  %v2496_v36 = vadd.f32 %v4787_v14, %v2349_v6 }
 0x152   : > { %v2608_v41 = vpop.f32.mrf.mxu0  ;;  %v2784_v39 = vadd.f32 %v2745_v0, %v2637_v27 }
 0x153   : > { %v2755_v44 = vpop.f32.mrf.mxu1  ;;  %v2639_v42 = vadd.f32 %v2608_v41, %v2492_v15  ;;  %v2787_v11 = vadd.f32 %v3828_v56, %v2640_v40 }
 0x154   : > { %v3815_v7 = vpop.f32.mrf.mxu0 }
 0x155   : > { %v3831_v43 = vpop.f32.mrf.mxu1  ;;  %v2642_v23 = vadd.f32 %v3815_v7, %v2495_v55  ;;  %v2786_v0 = vadd.f32 %v2755_v44, %v2639_v42 }
 0x156   : > { %v2618_v46 = vpop.f32.mrf.mxu0 }
 0x157   : > { %v2765_v63 = vpop.f32.mrf.mxu1  ;;  %v2641_v53 = vadd.f32 %v2618_v46, %v2494_v4  ;;  %v2789_v49 = vadd.f32 %v3831_v43, %v2642_v23 }
 0x158   : > { %v3818_v16 = vpop.f32.mrf.mxu0 }
 0x159   : > { %v3834_v1 = vpop.f32.mrf.mxu1  ;;  %v2644_v7 = vadd.f32 %v3818_v16, %v2497_v51  ;;  %v2788_v44 = vadd.f32 %v2765_v63, %v2641_v53 }
 0x15a   : > { %v2628_v38 = vpop.f32.mrf.mxu0 }
 0x15b   : > { %v2775_v17 = vpop.f32.mrf.mxu1  ;;  %v2643_v2 = vadd.f32 %v2628_v38, %v2496_v36  ;;  %v2791_v52 = vadd.f32 %v3834_v1, %v2644_v7 }
 0x15c   : > { %v3841_v21 = vpop.f32.mrf.mxu0 }
 0x15d   : > { %v3857_v59 = vpop.f32.mrf.mxu1  ;;  %v2932_v30 = vadd.f32 %v3841_v21, %v2785_v22  ;;  %v2790_v62 = vadd.f32 %v2775_v17, %v2643_v2 }
 0x15e   : > { %v2892_v20 = vpop.f32.mrf.mxu0 }
 0x15f   : > { %v3039_v24 = vpop.f32.mrf.mxu1  ;;  %v3079_v25 = vadd.f32 %v3857_v59, %v2932_v30  ;;  %v2931_v34 = vadd.f32 %v2892_v20, %v2784_v39 }
 0x160   : > { %v3844_v45 = vpop.f32.mrf.mxu0 }
 0x161   : > { %v3860_v47 = vpop.f32.mrf.mxu1  ;;  %v3087_v41 = vmax.f32 %v3079_v25, 0.0  ;;  %v3078_v60 = vadd.f32 %v3039_v24, %v2931_v34  ;;  %v2934_v31 = vadd.f32 %v3844_v45, %v2787_v11 }
 0x162   : > { %v2902_v12 = vpop.f32.mrf.mxu0 }
 0x163   : > { %v3049_v28 = vpop.f32.mrf.mxu1  ;;  %3095 = vst.msk [vmem:[%s4832_s17 + $0x8] sm:$0xff] %vm449_vm0, %v3087_v41  ;;  %v3086_v18 = vmax.f32 %v3078_v60, 0.0  ;;  %v3081_v56 = vadd.f32 %v3860_v47, %v2934_v31  ;;  %v2933_v50 = vadd.f32 %v2902_v12, %v2786_v0 }
 0x164   : > { %v3847_v8 = vpop.f32.mrf.mxu0 }
 0x165   : > { %v3863_v13 = vpop.f32.mrf.mxu1  ;;  %3094 = vst.msk [vmem:[%s4832_s17] sm:$0xff] %vm449_vm0, %v3086_v18  ;;  %v3089_v14 = vmax.f32 %v3081_v56, 0.0  ;;  %v3080_v43 = vadd.f32 %v3049_v28, %v2933_v50  ;;  %v2936_v46 = vadd.f32 %v3847_v8, %v2789_v49 }
 0x166   : > { %v2912_v35 = vpop.f32.mrf.mxu0 }
 0x167   : > { %v3059_v57 = vpop.f32.mrf.mxu1  ;;  %3097 = vst.msk [vmem:[%s4832_s17 + $0x18] sm:$0xff] %vm449_vm0, %v3089_v14  ;;  %v3088_v26 = vmax.f32 %v3080_v43, 0.0  ;;  %v3083_v61 = vadd.f32 %v3863_v13, %v2936_v46  ;;  %v2935_v63 = vadd.f32 %v2912_v35, %v2788_v44 }
 0x168   : > { %v3850_v48 = vpop.f32.mrf.mxu0 }
 0x169   : > { %v3866_v19 = vpop.f32.mrf.mxu1  ;;  %3096 = vst.msk [vmem:[%s4832_s17 + $0x10] sm:$0xff] %vm449_vm0, %v3088_v26  ;;  %v3091_v3 = vmax.f32 %v3083_v61, 0.0  ;;  %v3082_v16 = vadd.f32 %v3059_v57, %v2935_v63  ;;  %v2938_v32 = vadd.f32 %v3850_v48, %v2791_v52 }
 0x16a   : > { %v2922_v58 = vpop.f32.mrf.mxu0 }
 0x16b   : > { %3099 = vst.msk [vmem:[%s4832_s17 + $0x28] sm:$0xff] %vm449_vm0, %v3091_v3  ;;  %v3090_v1 = vmax.f32 %v3082_v16, 0.0  ;;  %v3085_v27 = vadd.f32 %v3866_v19, %v2938_v32  ;;  %v2937_v29 = vadd.f32 %v2922_v58, %v2790_v62  ;;  %v3069_v37 = vpop.f32.mrf.mxu1 }
 0x16d   : > { %3098 = vst.msk [vmem:[%s4832_s17 + $0x20] sm:$0xff] %vm449_vm0, %v3090_v1  ;;  %v3093_v5 = vmax.f32 %v3085_v27, 0.0  ;;  %v3084_v38 = vadd.f32 %v3069_v37, %v2937_v29 }
 0x16f   : > { %3101 = vst.msk [vmem:[%s4832_s17 + $0x38] sm:$0xff] %vm449_vm0, %v3093_v5  ;;  %v3092_v17 = vmax.f32 %v3084_v38, 0.0 }
 0x171   : > { %3100 = vst.msk [vmem:[%s4832_s17 + $0x30] sm:$0xff] %vm449_vm0, %v3092_v17 }
 0x172   : > { %3922 = shalt.err (!%p3919_p3)
}
 0x173   : > { %s3923_s24 = scalar_lea.hbm %s4851_s28, 1024  ;;  %s3927_s26 = scalar_lea.hbm %s4910_s9, 4096 }
 0x174   : > { %p3924_p4 = scmp.ne.s32.totalorder %s4851_s28, %s3923_s24  ;;  %p3928_p9 = scmp.lt.s32.totalorder %s4851_s28, %s4910_s9 }
 0x175   : > { %p3929_p10 = scmp.lt.s32.totalorder %s3927_s26, %s3923_s24 }
 0x176   : > { %p3925_p7 = pnand %p3924_p4, %p4062_p5 }
 0x177   : > { %p3930_p11 = por %p3929_p10, %p3928_p9 }
 0x178   : > { %p3926_p8 = pneg %p3925_p7 }
 0x17a   : > { %p3931_p12 = pnand %p3930_p11, %p3926_p8 }
 0x17c   : > { %3934 = shalt.err (!%p3931_p12)
}
 0x17d   : > { %s3972_s14 = smov 128   ;;  %s3973_s21 = smov 8  }
 0x17e   : > { %3868 = dma.vmem_to_hbm [thread:$0]  (%p4062_p5), %s4853_s29, 1024, %s4851_s28, %s4861_s13, %s3972_s14, %s3972_s14, %s3973_s21  }
 0x17f PF: > { %p3874_p13 = scmp.ge.s32.totalorder %s3969_s12, 2  ;;  %s3131_s22 = sand.u32 1, %s3957_s30  }
 0x180   : > { %s3132_s23 = scalar_lea.sflag [#allocation3], %s3131_s22 }
 0x181   : > { %p3871_p0 = pnand %p3874_p13, %p4066_p6 }
 0x183   : > { %p3872_p1 = pneg %p3871_p0 }
 0x185   : > { %3952 = dma.done.wait (%p3872_p1), %s3132_s23, 1024  }
 0x186   : > { %3954 = vsyncadd (%p3872_p1), %s3132_s23, 4294966272  ;;  %p19_p2 = scmp.ge.s32.totalorder %s4049_s15, 6   ;;  %s4933_s30 = smov %s3961_s10 }
 0x187   : > { %s4934_s10 = smov %s3965_s11  ;;  %s4935_s11 = smov %s4060_s18 }
 0x188   : > { %s4936_s12 = smov %s4049_s15  ;;  %21 = sbr.rel (!%p19_p2) target bundleno = 3 (0x3), region = 106 }
 0x18d   :  { %3137 = vsyncpa [#allocation3], 1 }
 0x18e   :  { %3139 = vsyncpa [#allocation3 + $0x1], 1 }

</bundles_post_ra>
